<compile_context>
chip_gen: v7x
topology: tpu7x:2x2x1
jax: 0.10.0
libtpu: 0.0.40
codegen_flags: <defaults>
</compile_context>

<pallas_src>
import functools

import jax
import jax.numpy as jnp
from jax import lax
from jax.experimental import pallas as pl
from jax.experimental.pallas import tpu as pltpu


def _upsample_kernel(x_ref, w_ref, o_ref, *, H, W, Cin, Cout, TH):
    """One (batch, H-tile) step: conv3x3 + PixelShuffle(2), NCHW in / NCHW out.

    x_ref: (1, Cin, H, W)       full image for this batch element (resident)
    w_ref: (3, Cout, 3*Cin)     bf16, [dh, q, dw*Cin + ci]; q is group-major
    o_ref: (1, C, 2*TH, 2*W)    C = Cout // 4, final pixel-shuffled layout
    """
    C = Cout // 4
    t = pl.program_id(1)
    nt = pl.num_programs(1)

    # 0/1 scatter matrices implementing the PixelShuffle width interleave:
    #   s0[w, 2w] = 1 (even output columns), s1[w, 2w+1] = 1 (odd columns).
    rr = lax.broadcasted_iota(jnp.int32, (W, 2 * W), 0)
    cc = lax.broadcasted_iota(jnp.int32, (W, 2 * W), 1)
    s0 = (cc == 2 * rr).astype(jnp.float32)
    s1 = (cc == 2 * rr + 1).astype(jnp.float32)

    def load_row(rloc):
        # rloc: static row offset inside the tile, in [-1, TH].  Global input
        # row is t*TH + rloc; the two halo rows are masked to zero at the image
        # boundary (this replaces the wrapper-level jnp.pad of the old kernel).
        if 0 <= rloc < TH:
            return x_ref[0, :, pl.ds(t * TH + rloc, 1), :][:, 0, :]
        if rloc < 0:  # one row above the tile
            row = x_ref[0, :, pl.ds(jnp.maximum(t * TH - 1, 0), 1), :][:, 0, :]
            return jnp.where(t > 0, row, jnp.zeros_like(row))
        # one row below the tile
        row = x_ref[0, :, pl.ds(jnp.minimum(t * TH + TH, H - 1), 1), :][:, 0, :]
        return jnp.where(t + 1 < nt, row, jnp.zeros_like(row))

    for h in range(TH):
        # ---- 3x3 conv for output row t*TH + h: 3 MXU matmuls with K = 3*Cin --
        y = jnp.zeros((Cout, W), dtype=jnp.float32)
        for dh in range(3):
            row = load_row(h + dh - 1)                              # (Cin, W)
            zc = jnp.zeros((Cin, 1), dtype=row.dtype)
            left = jnp.concatenate([zc, row[:, :W - 1]], axis=1)    # tap dw = 0
            right = jnp.concatenate([row[:, 1:], zc], axis=1)       # tap dw = 2
            rhs = jnp.concatenate([left, row, right], axis=0)       # (3*Cin, W)
            y = y + jnp.dot(w_ref[dh], rhs.astype(jnp.bfloat16),
                            preferred_element_type=jnp.float32)
        # ---- fused PixelShuffle(2): group g = 2*i + j sits at rows [g*C, (g+1)*C)
        for i in range(2):
            ya = y[(2 * i) * C:(2 * i + 1) * C, :]      # j = 0 -> even columns
            yb = y[(2 * i + 1) * C:(2 * i + 2) * C, :]  # j = 1 -> odd columns
            out_row = (jnp.dot(ya, s0, preferred_element_type=jnp.float32)
                       + jnp.dot(yb, s1, preferred_element_type=jnp.float32))
            o_ref[0, :, 2 * h + i, :] = out_row.astype(o_ref.dtype)


def upsample_forward(x_nchw, w_oihw):
    """Equivalent of Upsample.forward: x (N, n_feat, H, W), w (2*n_feat, n_feat, 3, 3)."""
    N, Cin, H, W = x_nchw.shape
    Cout = w_oihw.shape[0]
    assert w_oihw.shape == (Cout, Cin, 3, 3)
    assert Cout == 2 * Cin and Cout % 4 == 0, "PixelShuffle(2) needs Cout % 4 == 0"
    C = Cout // 4

    # H tile: 8 conv rows (16 shuffled rows) per grid step when H allows.
    TH = 8 if H % 8 == 0 else H
    nt = H // TH

    # Weight: OIHW -> (dh, q, dw*Cin + ci) in bf16, output channels permuted
    # group-major (q = (2*i + j)*C + c) so PixelShuffle is a static row slice.
    perm = jnp.arange(Cout).reshape(C, 4).T.reshape(-1)
    w3 = jnp.transpose(w_oihw, (2, 0, 3, 1))[:, perm, :, :]
    w3 = w3.reshape(3, Cout, 3 * Cin).astype(jnp.bfloat16)

    kernel = functools.partial(_upsample_kernel, H=H, W=W, Cin=Cin, Cout=Cout, TH=TH)

    itemsize = x_nchw.dtype.itemsize
    cost = pl.CostEstimate(
        flops=2 * N * H * W * 9 * Cin * Cout + 2 * N * C * 2 * H * 2 * W * W,
        transcendentals=0,
        bytes_accessed=(N * Cin * H * W * itemsize            # input
                        + 3 * Cout * 3 * Cin * 2              # bf16 weights
                        + N * C * 2 * H * 2 * W * itemsize),  # shuffled output
    )

    # NOTE: the input block is the whole (Cin, H, W) image, kept resident across
    # the H-tile axis so the 1-row halo needs no re-fetch; only the 2x larger
    # output is spatially tiled.  For very large images the input should also be
    # H-tiled with a manual halo DMA (memory_space=pl.ANY + make_async_copy).
    return pl.pallas_call(
        kernel,
        out_shape=jax.ShapeDtypeStruct((N, C, 2 * H, 2 * W), x_nchw.dtype),
        grid_spec=pltpu.PrefetchScalarGridSpec(
            num_scalar_prefetch=0,
            grid=(N, nt),
            in_specs=[
                pl.BlockSpec((1, Cin, H, W), lambda n, t: (n, 0, 0, 0)),
                pl.BlockSpec((3, Cout, 3 * Cin), lambda n, t: (0, 0, 0)),
            ],
            out_specs=pl.BlockSpec((1, C, 2 * TH, 2 * W), lambda n, t: (n, 0, t, 0)),
        ),
        compiler_params=pltpu.CompilerParams(
            dimension_semantics=("parallel", "parallel"),
            vmem_limit_bytes=48 * 1024 * 1024,
        ),
        cost_estimate=cost,
    )(x_nchw, w3)


def _reference_forward(x_nchw, w_oihw):
    """Pure-JAX (XLA) reference; inputs bf16-rounded like the kernel's MXU path."""
    xb = x_nchw.astype(jnp.bfloat16).astype(jnp.float32)
    wb = w_oihw.astype(jnp.bfloat16).astype(jnp.float32)
    y = lax.conv_general_dilated(
        xb, wb, window_strides=(1, 1), padding="SAME",
        dimension_numbers=("NCHW", "OIHW", "NCHW"),
        precision=lax.Precision.HIGHEST,
    )
    N, Crr, H, W = y.shape
    r = 2
    C = Crr // (r * r)
    y = y.reshape(N, C, r, r, H, W)
    y = jnp.transpose(y, (0, 1, 4, 2, 5, 3))
    return y.reshape(N, C, H * r, W * r)


if __name__ == "__main__":
    key = jax.random.PRNGKey(0)
    k_x, k_w = jax.random.split(key)

    n_feat = 4
    N, H, W = 2, 16, 16

    x = jax.random.normal(k_x, (N, n_feat, H, W), dtype=jnp.float32)
    # Deterministic conv weight init (kaiming-uniform-ish scale), OIHW like PyTorch.
    fan_in = n_feat * 3 * 3
    bound = (1.0 / fan_in) ** 0.5
    w = jax.random.uniform(k_w, (2 * n_feat, n_feat, 3, 3), dtype=jnp.float32,
                           minval=-bound, maxval=bound)

    out = jax.block_until_ready(jax.jit(upsample_forward)(x, w))
    ref = jax.block_until_ready(_reference_forward(x, w))

    assert out.shape == (N, n_feat // 2, 2 * H, 2 * W), out.shape
    # Kernel uses bf16 MXU operands with f32 accumulation -> compare against a
    # bf16-rounded-input f32 reference with a matching tolerance.
    assert jnp.allclose(out, ref, atol=1e-2, rtol=1e-2), "mismatch vs XLA reference"

    print("KERNEL_OK")
</pallas_src>

<mosaic_0001>
module attributes {stable_mosaic.version = 11 : i64} {
  func.func @_upsample_kernel(%arg0: i32, %arg1: i32, %arg2: memref<1x4x16x16xf32, #tpu.memory_space<vmem>>, %arg3: memref<3x8x12xbf16, #tpu.memory_space<vmem>>, %arg4: memref<1x2x16x32xf32, #tpu.memory_space<vmem>>) attributes {dimension_semantics = [#tpu.dimension_semantics<parallel>, #tpu.dimension_semantics<parallel>], iteration_bounds = array<i64: 2, 2>, scalar_prefetch = 0 : i64, scratch_operands = 0 : i64, tpu.core_type = #tpu.core_type<tc>, window_params = [{transform_indices = @transform_0, window_bounds = array<i64: 1, 4, 16, 16>}, {pipeline_mode = #tpu.pipeline_mode<synchronous>, transform_indices = @transform_1, window_bounds = array<i64: 3, 8, 12>}, {transform_indices = @transform_2, window_bounds = array<i64: 1, 2, 16, 32>}]} {
    %0 = tpu.iota {dimensions = array<i32: 0>} : vector<16x32xi32>
    %1 = tpu.iota {dimensions = array<i32: 1>} : vector<16x32xi32>
    %c2_i32 = arith.constant 2 : i32
    %2 = vector.broadcast %c2_i32 : i32 to vector<16x32xi32>
    %3 = arith.muli %2, %0 : vector<16x32xi32>
    %4 = arith.cmpi eq, %1, %3 : vector<16x32xi32>
    %5 = arith.extui %4 : vector<16x32xi1> to vector<16x32xi32>
    %6 = arith.sitofp %5 : vector<16x32xi32> to vector<16x32xf32>
    %c2_i32_0 = arith.constant 2 : i32
    %7 = vector.broadcast %c2_i32_0 : i32 to vector<16x32xi32>
    %8 = arith.muli %7, %0 : vector<16x32xi32>
    %c1_i32 = arith.constant 1 : i32
    %9 = vector.broadcast %c1_i32 : i32 to vector<16x32xi32>
    %10 = arith.addi %8, %9 : vector<16x32xi32>
    %11 = arith.cmpi eq, %1, %10 : vector<16x32xi32>
    %12 = arith.extui %11 : vector<16x32xi1> to vector<16x32xi32>
    %13 = arith.sitofp %12 : vector<16x32xi32> to vector<16x32xf32>
    %cst = arith.constant 0.000000e+00 : f32
    %14 = vector.broadcast %cst : f32 to vector<8x16xf32>
    %c8_i32 = arith.constant 8 : i32
    %15 = arith.muli %arg1, %c8_i32 : i32
    %c1_i32_1 = arith.constant 1 : i32
    %16 = arith.subi %15, %c1_i32_1 : i32
    %c0_i32 = arith.constant 0 : i32
    %17 = arith.maxsi %16, %c0_i32 : i32
    %c0 = arith.constant 0 : index
    %c0_2 = arith.constant 0 : index
    %18 = arith.index_cast %17 : i32 to index
    %c0_3 = arith.constant 0 : index
    %19 = vector.load %arg2[%c0, %c0_2, %18, %c0_3] : memref<1x4x16x16xf32, #tpu.memory_space<vmem>>, vector<1x4x1x16xf32>
    %20 = vector.shape_cast %19 : vector<1x4x1x16xf32> to vector<4x1x16xf32>
    %21 = vector.shape_cast %20 : vector<4x1x16xf32> to vector<4x16xf32>
    %c0_i32_4 = arith.constant 0 : i32
    %22 = arith.cmpi sgt, %arg1, %c0_i32_4 : i32
    %cst_5 = arith.constant 0.000000e+00 : f32
    %23 = vector.broadcast %cst_5 : f32 to vector<4x16xf32>
    %24 = arith.select %22, %21, %23 : vector<4x16xf32>
    %cst_6 = arith.constant 0.000000e+00 : f32
    %25 = vector.broadcast %cst_6 : f32 to vector<4x1xf32>
    %26 = vector.extract_strided_slice %24 {offsets = [0, 0], sizes = [4, 15], strides = [1, 1]} : vector<4x16xf32> to vector<4x15xf32>
    %27 = tpu.concatenate %25, %26 in 1 : vector<4x1xf32>, vector<4x15xf32> -> vector<4x16xf32>
    %28 = vector.extract_strided_slice %24 {offsets = [0, 1], sizes = [4, 15], strides = [1, 1]} : vector<4x16xf32> to vector<4x15xf32>
    %29 = tpu.concatenate %28, %25 in 1 : vector<4x15xf32>, vector<4x1xf32> -> vector<4x16xf32>
    %30 = tpu.concatenate %27, %24, %29 in 0 : vector<4x16xf32>, vector<4x16xf32>, vector<4x16xf32> -> vector<12x16xf32>
    %c0_7 = arith.constant 0 : index
    %c0_8 = arith.constant 0 : index
    %c0_9 = arith.constant 0 : index
    %31 = vector.load %arg3[%c0_7, %c0_8, %c0_9] : memref<3x8x12xbf16, #tpu.memory_space<vmem>>, vector<1x8x12xbf16>
    %32 = vector.shape_cast %31 : vector<1x8x12xbf16> to vector<8x12xbf16>
    %33 = arith.truncf %30 : vector<12x16xf32> to vector<12x16xbf16>
    %cst_10 = arith.constant dense<0.000000e+00> : vector<8x16xf32>
    %34 = tpu.matmul %32, %33, %cst_10 {dimension_numbers = #tpu.dot_dimension_numbers<[1], [0], [0], [1], [0, 0, 1, 1], [], []>} : vector<8x12xbf16>, vector<12x16xbf16>, vector<8x16xf32> -> vector<8x16xf32>
    %35 = arith.addf %14, %34 : vector<8x16xf32>
    %c8_i32_11 = arith.constant 8 : i32
    %36 = arith.muli %arg1, %c8_i32_11 : i32
    %c0_i32_12 = arith.constant 0 : i32
    %37 = arith.addi %36, %c0_i32_12 : i32
    %c0_13 = arith.constant 0 : index
    %c0_14 = arith.constant 0 : index
    %38 = arith.index_cast %37 : i32 to index
    %c0_15 = arith.constant 0 : index
    %39 = vector.load %arg2[%c0_13, %c0_14, %38, %c0_15] : memref<1x4x16x16xf32, #tpu.memory_space<vmem>>, vector<1x4x1x16xf32>
    %40 = vector.shape_cast %39 : vector<1x4x1x16xf32> to vector<4x1x16xf32>
    %41 = vector.shape_cast %40 : vector<4x1x16xf32> to vector<4x16xf32>
    %cst_16 = arith.constant 0.000000e+00 : f32
    %42 = vector.broadcast %cst_16 : f32 to vector<4x1xf32>
    %43 = vector.extract_strided_slice %41 {offsets = [0, 0], sizes = [4, 15], strides = [1, 1]} : vector<4x16xf32> to vector<4x15xf32>
    %44 = tpu.concatenate %42, %43 in 1 : vector<4x1xf32>, vector<4x15xf32> -> vector<4x16xf32>
    %45 = vector.extract_strided_slice %41 {offsets = [0, 1], sizes = [4, 15], strides = [1, 1]} : vector<4x16xf32> to vector<4x15xf32>
    %46 = tpu.concatenate %45, %42 in 1 : vector<4x15xf32>, vector<4x1xf32> -> vector<4x16xf32>
    %47 = tpu.concatenate %44, %41, %46 in 0 : vector<4x16xf32>, vector<4x16xf32>, vector<4x16xf32> -> vector<12x16xf32>
    %c1 = arith.constant 1 : index
    %c0_17 = arith.constant 0 : index
    %c0_18 = arith.constant 0 : index
    %48 = vector.load %arg3[%c1, %c0_17, %c0_18] : memref<3x8x12xbf16, #tpu.memory_space<vmem>>, vector<1x8x12xbf16>
    %49 = vector.shape_cast %48 : vector<1x8x12xbf16> to vector<8x12xbf16>
    %50 = arith.truncf %47 : vector<12x16xf32> to vector<12x16xbf16>
    %cst_19 = arith.constant dense<0.000000e+00> : vector<8x16xf32>
    %51 = tpu.matmul %49, %50, %cst_19 {dimension_numbers = #tpu.dot_dimension_numbers<[1], [0], [0], [1], [0, 0, 1, 1], [], []>} : vector<8x12xbf16>, vector<12x16xbf16>, vector<8x16xf32> -> vector<8x16xf32>
    %52 = arith.addf %35, %51 : vector<8x16xf32>
    %c8_i32_20 = arith.constant 8 : i32
    %53 = arith.muli %arg1, %c8_i32_20 : i32
    %c1_i32_21 = arith.constant 1 : i32
    %54 = arith.addi %53, %c1_i32_21 : i32
    %c0_22 = arith.constant 0 : index
    %c0_23 = arith.constant 0 : index
    %55 = arith.index_cast %54 : i32 to index
    %c0_24 = arith.constant 0 : index
    %56 = vector.load %arg2[%c0_22, %c0_23, %55, %c0_24] : memref<1x4x16x16xf32, #tpu.memory_space<vmem>>, vector<1x4x1x16xf32>
    %57 = vector.shape_cast %56 : vector<1x4x1x16xf32> to vector<4x1x16xf32>
    %58 = vector.shape_cast %57 : vector<4x1x16xf32> to vector<4x16xf32>
    %cst_25 = arith.constant 0.000000e+00 : f32
    %59 = vector.broadcast %cst_25 : f32 to vector<4x1xf32>
    %60 = vector.extract_strided_slice %58 {offsets = [0, 0], sizes = [4, 15], strides = [1, 1]} : vector<4x16xf32> to vector<4x15xf32>
    %61 = tpu.concatenate %59, %60 in 1 : vector<4x1xf32>, vector<4x15xf32> -> vector<4x16xf32>
    %62 = vector.extract_strided_slice %58 {offsets = [0, 1], sizes = [4, 15], strides = [1, 1]} : vector<4x16xf32> to vector<4x15xf32>
    %63 = tpu.concatenate %62, %59 in 1 : vector<4x15xf32>, vector<4x1xf32> -> vector<4x16xf32>
    %64 = tpu.concatenate %61, %58, %63 in 0 : vector<4x16xf32>, vector<4x16xf32>, vector<4x16xf32> -> vector<12x16xf32>
    %c2 = arith.constant 2 : index
    %c0_26 = arith.constant 0 : index
    %c0_27 = arith.constant 0 : index
    %65 = vector.load %arg3[%c2, %c0_26, %c0_27] : memref<3x8x12xbf16, #tpu.memory_space<vmem>>, vector<1x8x12xbf16>
    %66 = vector.shape_cast %65 : vector<1x8x12xbf16> to vector<8x12xbf16>
    %67 = arith.truncf %64 : vector<12x16xf32> to vector<12x16xbf16>
    %cst_28 = arith.constant dense<0.000000e+00> : vector<8x16xf32>
    %68 = tpu.matmul %66, %67, %cst_28 {dimension_numbers = #tpu.dot_dimension_numbers<[1], [0], [0], [1], [0, 0, 1, 1], [], []>} : vector<8x12xbf16>, vector<12x16xbf16>, vector<8x16xf32> -> vector<8x16xf32>
    %69 = arith.addf %52, %68 : vector<8x16xf32>
    %70 = vector.extract_strided_slice %69 {offsets = [0, 0], sizes = [2, 16], strides = [1, 1]} : vector<8x16xf32> to vector<2x16xf32>
    %71 = vector.extract_strided_slice %69 {offsets = [2, 0], sizes = [2, 16], strides = [1, 1]} : vector<8x16xf32> to vector<2x16xf32>
    %cst_29 = arith.constant dense<0.000000e+00> : vector<2x32xf32>
    %72 = tpu.matmul %70, %6, %cst_29 {dimension_numbers = #tpu.dot_dimension_numbers<[1], [0], [0], [1], [0, 0, 1, 1], [], []>} : vector<2x16xf32>, vector<16x32xf32>, vector<2x32xf32> -> vector<2x32xf32>
    %cst_30 = arith.constant dense<0.000000e+00> : vector<2x32xf32>
    %73 = tpu.matmul %71, %13, %cst_30 {dimension_numbers = #tpu.dot_dimension_numbers<[1], [0], [0], [1], [0, 0, 1, 1], [], []>} : vector<2x16xf32>, vector<16x32xf32>, vector<2x32xf32> -> vector<2x32xf32>
    %74 = arith.addf %72, %73 : vector<2x32xf32>
    %c0_31 = arith.constant 0 : index
    %c0_32 = arith.constant 0 : index
    %c0_33 = arith.constant 0 : index
    %c0_34 = arith.constant 0 : index
    %75 = vector.load %arg4[%c0_31, %c0_32, %c0_33, %c0_34] : memref<1x2x16x32xf32, #tpu.memory_space<vmem>>, vector<1x2x1x32xf32>
    %76 = vector.shape_cast %75 : vector<1x2x1x32xf32> to vector<2x32xf32>
    %77 = vector.shape_cast %74 : vector<2x32xf32> to vector<1x2x1x32xf32>
    tpu.vector_store %arg4[%c0_31, %c0_32, %c0_33, %c0_34], %77 {strides = array<i32>} : memref<1x2x16x32xf32, #tpu.memory_space<vmem>>, vector<1x2x1x32xf32>,
    %78 = vector.extract_strided_slice %69 {offsets = [4, 0], sizes = [2, 16], strides = [1, 1]} : vector<8x16xf32> to vector<2x16xf32>
    %79 = vector.extract_strided_slice %69 {offsets = [6, 0], sizes = [2, 16], strides = [1, 1]} : vector<8x16xf32> to vector<2x16xf32>
    %cst_35 = arith.constant dense<0.000000e+00> : vector<2x32xf32>
    %80 = tpu.matmul %78, %6, %cst_35 {dimension_numbers = #tpu.dot_dimension_numbers<[1], [0], [0], [1], [0, 0, 1, 1], [], []>} : vector<2x16xf32>, vector<16x32xf32>, vector<2x32xf32> -> vector<2x32xf32>
    %cst_36 = arith.constant dense<0.000000e+00> : vector<2x32xf32>
    %81 = tpu.matmul %79, %13, %cst_36 {dimension_numbers = #tpu.dot_dimension_numbers<[1], [0], [0], [1], [0, 0, 1, 1], [], []>} : vector<2x16xf32>, vector<16x32xf32>, vector<2x32xf32> -> vector<2x32xf32>
    %82 = arith.addf %80, %81 : vector<2x32xf32>
    %c0_37 = arith.constant 0 : index
    %c0_38 = arith.constant 0 : index
    %c1_39 = arith.constant 1 : index
    %c0_40 = arith.constant 0 : index
    %83 = vector.load %arg4[%c0_37, %c0_38, %c1_39, %c0_40] : memref<1x2x16x32xf32, #tpu.memory_space<vmem>>, vector<1x2x1x32xf32>
    %84 = vector.shape_cast %83 : vector<1x2x1x32xf32> to vector<2x32xf32>
    %85 = vector.shape_cast %82 : vector<2x32xf32> to vector<1x2x1x32xf32>
    tpu.vector_store %arg4[%c0_37, %c0_38, %c1_39, %c0_40], %85 {strides = array<i32>} : memref<1x2x16x32xf32, #tpu.memory_space<vmem>>, vector<1x2x1x32xf32>,
    %cst_41 = arith.constant 0.000000e+00 : f32
    %86 = vector.broadcast %cst_41 : f32 to vector<8x16xf32>
    %c8_i32_42 = arith.constant 8 : i32
    %87 = arith.muli %arg1, %c8_i32_42 : i32
    %c0_i32_43 = arith.constant 0 : i32
    %88 = arith.addi %87, %c0_i32_43 : i32
    %c0_44 = arith.constant 0 : index
    %c0_45 = arith.constant 0 : index
    %89 = arith.index_cast %88 : i32 to index
    %c0_46 = arith.constant 0 : index
    %90 = vector.load %arg2[%c0_44, %c0_45, %89, %c0_46] : memref<1x4x16x16xf32, #tpu.memory_space<vmem>>, vector<1x4x1x16xf32>
    %91 = vector.shape_cast %90 : vector<1x4x1x16xf32> to vector<4x1x16xf32>
    %92 = vector.shape_cast %91 : vector<4x1x16xf32> to vector<4x16xf32>
    %cst_47 = arith.constant 0.000000e+00 : f32
    %93 = vector.broadcast %cst_47 : f32 to vector<4x1xf32>
    %94 = vector.extract_strided_slice %92 {offsets = [0, 0], sizes = [4, 15], strides = [1, 1]} : vector<4x16xf32> to vector<4x15xf32>
    %95 = tpu.concatenate %93, %94 in 1 : vector<4x1xf32>, vector<4x15xf32> -> vector<4x16xf32>
    %96 = vector.extract_strided_slice %92 {offsets = [0, 1], sizes = [4, 15], strides = [1, 1]} : vector<4x16xf32> to vector<4x15xf32>
    %97 = tpu.concatenate %96, %93 in 1 : vector<4x15xf32>, vector<4x1xf32> -> vector<4x16xf32>
    %98 = tpu.concatenate %95, %92, %97 in 0 : vector<4x16xf32>, vector<4x16xf32>, vector<4x16xf32> -> vector<12x16xf32>
    %c0_48 = arith.constant 0 : index
    %c0_49 = arith.constant 0 : index
    %c0_50 = arith.constant 0 : index
    %99 = vector.load %arg3[%c0_48, %c0_49, %c0_50] : memref<3x8x12xbf16, #tpu.memory_space<vmem>>, vector<1x8x12xbf16>
    %100 = vector.shape_cast %99 : vector<1x8x12xbf16> to vector<8x12xbf16>
    %101 = arith.truncf %98 : vector<12x16xf32> to vector<12x16xbf16>
    %cst_51 = arith.constant dense<0.000000e+00> : vector<8x16xf32>
    %102 = tpu.matmul %100, %101, %cst_51 {dimension_numbers = #tpu.dot_dimension_numbers<[1], [0], [0], [1], [0, 0, 1, 1], [], []>} : vector<8x12xbf16>, vector<12x16xbf16>, vector<8x16xf32> -> vector<8x16xf32>
    %103 = arith.addf %86, %102 : vector<8x16xf32>
    %c8_i32_52 = arith.constant 8 : i32
    %104 = arith.muli %arg1, %c8_i32_52 : i32
    %c1_i32_53 = arith.constant 1 : i32
    %105 = arith.addi %104, %c1_i32_53 : i32
    %c0_54 = arith.constant 0 : index
    %c0_55 = arith.constant 0 : index
    %106 = arith.index_cast %105 : i32 to index
    %c0_56 = arith.constant 0 : index
    %107 = vector.load %arg2[%c0_54, %c0_55, %106, %c0_56] : memref<1x4x16x16xf32, #tpu.memory_space<vmem>>, vector<1x4x1x16xf32>
    %108 = vector.shape_cast %107 : vector<1x4x1x16xf32> to vector<4x1x16xf32>
    %109 = vector.shape_cast %108 : vector<4x1x16xf32> to vector<4x16xf32>
    %cst_57 = arith.constant 0.000000e+00 : f32
    %110 = vector.broadcast %cst_57 : f32 to vector<4x1xf32>
    %111 = vector.extract_strided_slice %109 {offsets = [0, 0], sizes = [4, 15], strides = [1, 1]} : vector<4x16xf32> to vector<4x15xf32>
    %112 = tpu.concatenate %110, %111 in 1 : vector<4x1xf32>, vector<4x15xf32> -> vector<4x16xf32>
    %113 = vector.extract_strided_slice %109 {offsets = [0, 1], sizes = [4, 15], strides = [1, 1]} : vector<4x16xf32> to vector<4x15xf32>
    %114 = tpu.concatenate %113, %110 in 1 : vector<4x15xf32>, vector<4x1xf32> -> vector<4x16xf32>
    %115 = tpu.concatenate %112, %109, %114 in 0 : vector<4x16xf32>, vector<4x16xf32>, vector<4x16xf32> -> vector<12x16xf32>
    %c1_58 = arith.constant 1 : index
    %c0_59 = arith.constant 0 : index
    %c0_60 = arith.constant 0 : index
    %116 = vector.load %arg3[%c1_58, %c0_59, %c0_60] : memref<3x8x12xbf16, #tpu.memory_space<vmem>>, vector<1x8x12xbf16>
    %117 = vector.shape_cast %116 : vector<1x8x12xbf16> to vector<8x12xbf16>
    %118 = arith.truncf %115 : vector<12x16xf32> to vector<12x16xbf16>
    %cst_61 = arith.constant dense<0.000000e+00> : vector<8x16xf32>
    %119 = tpu.matmul %117, %118, %cst_61 {dimension_numbers = #tpu.dot_dimension_numbers<[1], [0], [0], [1], [0, 0, 1, 1], [], []>} : vector<8x12xbf16>, vector<12x16xbf16>, vector<8x16xf32> -> vector<8x16xf32>
    %120 = arith.addf %103, %119 : vector<8x16xf32>
    %c8_i32_62 = arith.constant 8 : i32
    %121 = arith.muli %arg1, %c8_i32_62 : i32
    %c2_i32_63 = arith.constant 2 : i32
    %122 = arith.addi %121, %c2_i32_63 : i32
    %c0_64 = arith.constant 0 : index
    %c0_65 = arith.constant 0 : index
    %123 = arith.index_cast %122 : i32 to index
    %c0_66 = arith.constant 0 : index
    %124 = vector.load %arg2[%c0_64, %c0_65, %123, %c0_66] : memref<1x4x16x16xf32, #tpu.memory_space<vmem>>, vector<1x4x1x16xf32>
    %125 = vector.shape_cast %124 : vector<1x4x1x16xf32> to vector<4x1x16xf32>
    %126 = vector.shape_cast %125 : vector<4x1x16xf32> to vector<4x16xf32>
    %cst_67 = arith.constant 0.000000e+00 : f32
    %127 = vector.broadcast %cst_67 : f32 to vector<4x1xf32>
    %128 = vector.extract_strided_slice %126 {offsets = [0, 0], sizes = [4, 15], strides = [1, 1]} : vector<4x16xf32> to vector<4x15xf32>
    %129 = tpu.concatenate %127, %128 in 1 : vector<4x1xf32>, vector<4x15xf32> -> vector<4x16xf32>
    %130 = vector.extract_strided_slice %126 {offsets = [0, 1], sizes = [4, 15], strides = [1, 1]} : vector<4x16xf32> to vector<4x15xf32>
    %131 = tpu.concatenate %130, %127 in 1 : vector<4x15xf32>, vector<4x1xf32> -> vector<4x16xf32>
    %132 = tpu.concatenate %129, %126, %131 in 0 : vector<4x16xf32>, vector<4x16xf32>, vector<4x16xf32> -> vector<12x16xf32>
    %c2_68 = arith.constant 2 : index
    %c0_69 = arith.constant 0 : index
    %c0_70 = arith.constant 0 : index
    %133 = vector.load %arg3[%c2_68, %c0_69, %c0_70] : memref<3x8x12xbf16, #tpu.memory_space<vmem>>, vector<1x8x12xbf16>
    %134 = vector.shape_cast %133 : vector<1x8x12xbf16> to vector<8x12xbf16>
    %135 = arith.truncf %132 : vector<12x16xf32> to vector<12x16xbf16>
    %cst_71 = arith.constant dense<0.000000e+00> : vector<8x16xf32>
    %136 = tpu.matmul %134, %135, %cst_71 {dimension_numbers = #tpu.dot_dimension_numbers<[1], [0], [0], [1], [0, 0, 1, 1], [], []>} : vector<8x12xbf16>, vector<12x16xbf16>, vector<8x16xf32> -> vector<8x16xf32>
    %137 = arith.addf %120, %136 : vector<8x16xf32>
    %138 = vector.extract_strided_slice %137 {offsets = [0, 0], sizes = [2, 16], strides = [1, 1]} : vector<8x16xf32> to vector<2x16xf32>
    %139 = vector.extract_strided_slice %137 {offsets = [2, 0], sizes = [2, 16], strides = [1, 1]} : vector<8x16xf32> to vector<2x16xf32>
    %cst_72 = arith.constant dense<0.000000e+00> : vector<2x32xf32>
    %140 = tpu.matmul %138, %6, %cst_72 {dimension_numbers = #tpu.dot_dimension_numbers<[1], [0], [0], [1], [0, 0, 1, 1], [], []>} : vector<2x16xf32>, vector<16x32xf32>, vector<2x32xf32> -> vector<2x32xf32>
    %cst_73 = arith.constant dense<0.000000e+00> : vector<2x32xf32>
    %141 = tpu.matmul %139, %13, %cst_73 {dimension_numbers = #tpu.dot_dimension_numbers<[1], [0], [0], [1], [0, 0, 1, 1], [], []>} : vector<2x16xf32>, vector<16x32xf32>, vector<2x32xf32> -> vector<2x32xf32>
    %142 = arith.addf %140, %141 : vector<2x32xf32>
    %c0_74 = arith.constant 0 : index
    %c0_75 = arith.constant 0 : index
    %c2_76 = arith.constant 2 : index
    %c0_77 = arith.constant 0 : index
    %143 = vector.load %arg4[%c0_74, %c0_75, %c2_76, %c0_77] : memref<1x2x16x32xf32, #tpu.memory_space<vmem>>, vector<1x2x1x32xf32>
    %144 = vector.shape_cast %143 : vector<1x2x1x32xf32> to vector<2x32xf32>
    %145 = vector.shape_cast %142 : vector<2x32xf32> to vector<1x2x1x32xf32>
    tpu.vector_store %arg4[%c0_74, %c0_75, %c2_76, %c0_77], %145 {strides = array<i32>} : memref<1x2x16x32xf32, #tpu.memory_space<vmem>>, vector<1x2x1x32xf32>,
    %146 = vector.extract_strided_slice %137 {offsets = [4, 0], sizes = [2, 16], strides = [1, 1]} : vector<8x16xf32> to vector<2x16xf32>
    %147 = vector.extract_strided_slice %137 {offsets = [6, 0], sizes = [2, 16], strides = [1, 1]} : vector<8x16xf32> to vector<2x16xf32>
    %cst_78 = arith.constant dense<0.000000e+00> : vector<2x32xf32>
    %148 = tpu.matmul %146, %6, %cst_78 {dimension_numbers = #tpu.dot_dimension_numbers<[1], [0], [0], [1], [0, 0, 1, 1], [], []>} : vector<2x16xf32>, vector<16x32xf32>, vector<2x32xf32> -> vector<2x32xf32>
    %cst_79 = arith.constant dense<0.000000e+00> : vector<2x32xf32>
    %149 = tpu.matmul %147, %13, %cst_79 {dimension_numbers = #tpu.dot_dimension_numbers<[1], [0], [0], [1], [0, 0, 1, 1], [], []>} : vector<2x16xf32>, vector<16x32xf32>, vector<2x32xf32> -> vector<2x32xf32>
    %150 = arith.addf %148, %149 : vector<2x32xf32>
    %c0_80 = arith.constant 0 : index
    %c0_81 = arith.constant 0 : index
    %c3 = arith.constant 3 : index
    %c0_82 = arith.constant 0 : index
    %151 = vector.load %arg4[%c0_80, %c0_81, %c3, %c0_82] : memref<1x2x16x32xf32, #tpu.memory_space<vmem>>, vector<1x2x1x32xf32>
    %152 = vector.shape_cast %151 : vector<1x2x1x32xf32> to vector<2x32xf32>
    %153 = vector.shape_cast %150 : vector<2x32xf32> to vector<1x2x1x32xf32>
    tpu.vector_store %arg4[%c0_80, %c0_81, %c3, %c0_82], %153 {strides = array<i32>} : memref<1x2x16x32xf32, #tpu.memory_space<vmem>>, vector<1x2x1x32xf32>,
    %cst_83 = arith.constant 0.000000e+00 : f32
    %154 = vector.broadcast %cst_83 : f32 to vector<8x16xf32>
    %c8_i32_84 = arith.constant 8 : i32
    %155 = arith.muli %arg1, %c8_i32_84 : i32
    %c1_i32_85 = arith.constant 1 : i32
    %156 = arith.addi %155, %c1_i32_85 : i32
    %c0_86 = arith.constant 0 : index
    %c0_87 = arith.constant 0 : index
    %157 = arith.index_cast %156 : i32 to index
    %c0_88 = arith.constant 0 : index
    %158 = vector.load %arg2[%c0_86, %c0_87, %157, %c0_88] : memref<1x4x16x16xf32, #tpu.memory_space<vmem>>, vector<1x4x1x16xf32>
    %159 = vector.shape_cast %158 : vector<1x4x1x16xf32> to vector<4x1x16xf32>
    %160 = vector.shape_cast %159 : vector<4x1x16xf32> to vector<4x16xf32>
    %cst_89 = arith.constant 0.000000e+00 : f32
    %161 = vector.broadcast %cst_89 : f32 to vector<4x1xf32>
    %162 = vector.extract_strided_slice %160 {offsets = [0, 0], sizes = [4, 15], strides = [1, 1]} : vector<4x16xf32> to vector<4x15xf32>
    %163 = tpu.concatenate %161, %162 in 1 : vector<4x1xf32>, vector<4x15xf32> -> vector<4x16xf32>
    %164 = vector.extract_strided_slice %160 {offsets = [0, 1], sizes = [4, 15], strides = [1, 1]} : vector<4x16xf32> to vector<4x15xf32>
    %165 = tpu.concatenate %164, %161 in 1 : vector<4x15xf32>, vector<4x1xf32> -> vector<4x16xf32>
    %166 = tpu.concatenate %163, %160, %165 in 0 : vector<4x16xf32>, vector<4x16xf32>, vector<4x16xf32> -> vector<12x16xf32>
    %c0_90 = arith.constant 0 : index
    %c0_91 = arith.constant 0 : index
    %c0_92 = arith.constant 0 : index
    %167 = vector.load %arg3[%c0_90, %c0_91, %c0_92] : memref<3x8x12xbf16, #tpu.memory_space<vmem>>, vector<1x8x12xbf16>
    %168 = vector.shape_cast %167 : vector<1x8x12xbf16> to vector<8x12xbf16>
    %169 = arith.truncf %166 : vector<12x16xf32> to vector<12x16xbf16>
    %cst_93 = arith.constant dense<0.000000e+00> : vector<8x16xf32>
    %170 = tpu.matmul %168, %169, %cst_93 {dimension_numbers = #tpu.dot_dimension_numbers<[1], [0], [0], [1], [0, 0, 1, 1], [], []>} : vector<8x12xbf16>, vector<12x16xbf16>, vector<8x16xf32> -> vector<8x16xf32>
    %171 = arith.addf %154, %170 : vector<8x16xf32>
    %c8_i32_94 = arith.constant 8 : i32
    %172 = arith.muli %arg1, %c8_i32_94 : i32
    %c2_i32_95 = arith.constant 2 : i32
    %173 = arith.addi %172, %c2_i32_95 : i32
    %c0_96 = arith.constant 0 : index
    %c0_97 = arith.constant 0 : index
    %174 = arith.index_cast %173 : i32 to index
    %c0_98 = arith.constant 0 : index
    %175 = vector.load %arg2[%c0_96, %c0_97, %174, %c0_98] : memref<1x4x16x16xf32, #tpu.memory_space<vmem>>, vector<1x4x1x16xf32>
    %176 = vector.shape_cast %175 : vector<1x4x1x16xf32> to vector<4x1x16xf32>
    %177 = vector.shape_cast %176 : vector<4x1x16xf32> to vector<4x16xf32>
    %cst_99 = arith.constant 0.000000e+00 : f32
    %178 = vector.broadcast %cst_99 : f32 to vector<4x1xf32>
    %179 = vector.extract_strided_slice %177 {offsets = [0, 0], sizes = [4, 15], strides = [1, 1]} : vector<4x16xf32> to vector<4x15xf32>
    %180 = tpu.concatenate %178, %179 in 1 : vector<4x1xf32>, vector<4x15xf32> -> vector<4x16xf32>
    %181 = vector.extract_strided_slice %177 {offsets = [0, 1], sizes = [4, 15], strides = [1, 1]} : vector<4x16xf32> to vector<4x15xf32>
    %182 = tpu.concatenate %181, %178 in 1 : vector<4x15xf32>, vector<4x1xf32> -> vector<4x16xf32>
    %183 = tpu.concatenate %180, %177, %182 in 0 : vector<4x16xf32>, vector<4x16xf32>, vector<4x16xf32> -> vector<12x16xf32>
    %c1_100 = arith.constant 1 : index
    %c0_101 = arith.constant 0 : index
    %c0_102 = arith.constant 0 : index
    %184 = vector.load %arg3[%c1_100, %c0_101, %c0_102] : memref<3x8x12xbf16, #tpu.memory_space<vmem>>, vector<1x8x12xbf16>
    %185 = vector.shape_cast %184 : vector<1x8x12xbf16> to vector<8x12xbf16>
    %186 = arith.truncf %183 : vector<12x16xf32> to vector<12x16xbf16>
    %cst_103 = arith.constant dense<0.000000e+00> : vector<8x16xf32>
    %187 = tpu.matmul %185, %186, %cst_103 {dimension_numbers = #tpu.dot_dimension_numbers<[1], [0], [0], [1], [0, 0, 1, 1], [], []>} : vector<8x12xbf16>, vector<12x16xbf16>, vector<8x16xf32> -> vector<8x16xf32>
    %188 = arith.addf %171, %187 : vector<8x16xf32>
    %c8_i32_104 = arith.constant 8 : i32
    %189 = arith.muli %arg1, %c8_i32_104 : i32
    %c3_i32 = arith.constant 3 : i32
    %190 = arith.addi %189, %c3_i32 : i32
    %c0_105 = arith.constant 0 : index
    %c0_106 = arith.constant 0 : index
    %191 = arith.index_cast %190 : i32 to index
    %c0_107 = arith.constant 0 : index
    %192 = vector.load %arg2[%c0_105, %c0_106, %191, %c0_107] : memref<1x4x16x16xf32, #tpu.memory_space<vmem>>, vector<1x4x1x16xf32>
    %193 = vector.shape_cast %192 : vector<1x4x1x16xf32> to vector<4x1x16xf32>
    %194 = vector.shape_cast %193 : vector<4x1x16xf32> to vector<4x16xf32>
    %cst_108 = arith.constant 0.000000e+00 : f32
    %195 = vector.broadcast %cst_108 : f32 to vector<4x1xf32>
    %196 = vector.extract_strided_slice %194 {offsets = [0, 0], sizes = [4, 15], strides = [1, 1]} : vector<4x16xf32> to vector<4x15xf32>
    %197 = tpu.concatenate %195, %196 in 1 : vector<4x1xf32>, vector<4x15xf32> -> vector<4x16xf32>
    %198 = vector.extract_strided_slice %194 {offsets = [0, 1], sizes = [4, 15], strides = [1, 1]} : vector<4x16xf32> to vector<4x15xf32>
    %199 = tpu.concatenate %198, %195 in 1 : vector<4x15xf32>, vector<4x1xf32> -> vector<4x16xf32>
    %200 = tpu.concatenate %197, %194, %199 in 0 : vector<4x16xf32>, vector<4x16xf32>, vector<4x16xf32> -> vector<12x16xf32>
    %c2_109 = arith.constant 2 : index
    %c0_110 = arith.constant 0 : index
    %c0_111 = arith.constant 0 : index
    %201 = vector.load %arg3[%c2_109, %c0_110, %c0_111] : memref<3x8x12xbf16, #tpu.memory_space<vmem>>, vector<1x8x12xbf16>
    %202 = vector.shape_cast %201 : vector<1x8x12xbf16> to vector<8x12xbf16>
    %203 = arith.truncf %200 : vector<12x16xf32> to vector<12x16xbf16>
    %cst_112 = arith.constant dense<0.000000e+00> : vector<8x16xf32>
    %204 = tpu.matmul %202, %203, %cst_112 {dimension_numbers = #tpu.dot_dimension_numbers<[1], [0], [0], [1], [0, 0, 1, 1], [], []>} : vector<8x12xbf16>, vector<12x16xbf16>, vector<8x16xf32> -> vector<8x16xf32>
    %205 = arith.addf %188, %204 : vector<8x16xf32>
    %206 = vector.extract_strided_slice %205 {offsets = [0, 0], sizes = [2, 16], strides = [1, 1]} : vector<8x16xf32> to vector<2x16xf32>
    %207 = vector.extract_strided_slice %205 {offsets = [2, 0], sizes = [2, 16], strides = [1, 1]} : vector<8x16xf32> to vector<2x16xf32>
    %cst_113 = arith.constant dense<0.000000e+00> : vector<2x32xf32>
    %208 = tpu.matmul %206, %6, %cst_113 {dimension_numbers = #tpu.dot_dimension_numbers<[1], [0], [0], [1], [0, 0, 1, 1], [], []>} : vector<2x16xf32>, vector<16x32xf32>, vector<2x32xf32> -> vector<2x32xf32>
    %cst_114 = arith.constant dense<0.000000e+00> : vector<2x32xf32>
    %209 = tpu.matmul %207, %13, %cst_114 {dimension_numbers = #tpu.dot_dimension_numbers<[1], [0], [0], [1], [0, 0, 1, 1], [], []>} : vector<2x16xf32>, vector<16x32xf32>, vector<2x32xf32> -> vector<2x32xf32>
    %210 = arith.addf %208, %209 : vector<2x32xf32>
    %c0_115 = arith.constant 0 : index
    %c0_116 = arith.constant 0 : index
    %c4 = arith.constant 4 : index
    %c0_117 = arith.constant 0 : index
    %211 = vector.load %arg4[%c0_115, %c0_116, %c4, %c0_117] : memref<1x2x16x32xf32, #tpu.memory_space<vmem>>, vector<1x2x1x32xf32>
    %212 = vector.shape_cast %211 : vector<1x2x1x32xf32> to vector<2x32xf32>
    %213 = vector.shape_cast %210 : vector<2x32xf32> to vector<1x2x1x32xf32>
    tpu.vector_store %arg4[%c0_115, %c0_116, %c4, %c0_117], %213 {strides = array<i32>} : memref<1x2x16x32xf32, #tpu.memory_space<vmem>>, vector<1x2x1x32xf32>,
    %214 = vector.extract_strided_slice %205 {offsets = [4, 0], sizes = [2, 16], strides = [1, 1]} : vector<8x16xf32> to vector<2x16xf32>
    %215 = vector.extract_strided_slice %205 {offsets = [6, 0], sizes = [2, 16], strides = [1, 1]} : vector<8x16xf32> to vector<2x16xf32>
    %cst_118 = arith.constant dense<0.000000e+00> : vector<2x32xf32>
    %216 = tpu.matmul %214, %6, %cst_118 {dimension_numbers = #tpu.dot_dimension_numbers<[1], [0], [0], [1], [0, 0, 1, 1], [], []>} : vector<2x16xf32>, vector<16x32xf32>, vector<2x32xf32> -> vector<2x32xf32>
    %cst_119 = arith.constant dense<0.000000e+00> : vector<2x32xf32>
    %217 = tpu.matmul %215, %13, %cst_119 {dimension_numbers = #tpu.dot_dimension_numbers<[1], [0], [0], [1], [0, 0, 1, 1], [], []>} : vector<2x16xf32>, vector<16x32xf32>, vector<2x32xf32> -> vector<2x32xf32>
    %218 = arith.addf %216, %217 : vector<2x32xf32>
    %c0_120 = arith.constant 0 : index
    %c0_121 = arith.constant 0 : index
    %c5 = arith.constant 5 : index
    %c0_122 = arith.constant 0 : index
    %219 = vector.load %arg4[%c0_120, %c0_121, %c5, %c0_122] : memref<1x2x16x32xf32, #tpu.memory_space<vmem>>, vector<1x2x1x32xf32>
    %220 = vector.shape_cast %219 : vector<1x2x1x32xf32> to vector<2x32xf32>
    %221 = vector.shape_cast %218 : vector<2x32xf32> to vector<1x2x1x32xf32>
    tpu.vector_store %arg4[%c0_120, %c0_121, %c5, %c0_122], %221 {strides = array<i32>} : memref<1x2x16x32xf32, #tpu.memory_space<vmem>>, vector<1x2x1x32xf32>,
    %cst_123 = arith.constant 0.000000e+00 : f32
    %222 = vector.broadcast %cst_123 : f32 to vector<8x16xf32>
    %c8_i32_124 = arith.constant 8 : i32
    %223 = arith.muli %arg1, %c8_i32_124 : i32
    %c2_i32_125 = arith.constant 2 : i32
    %224 = arith.addi %223, %c2_i32_125 : i32
    %c0_126 = arith.constant 0 : index
    %c0_127 = arith.constant 0 : index
    %225 = arith.index_cast %224 : i32 to index
    %c0_128 = arith.constant 0 : index
    %226 = vector.load %arg2[%c0_126, %c0_127, %225, %c0_128] : memref<1x4x16x16xf32, #tpu.memory_space<vmem>>, vector<1x4x1x16xf32>
    %227 = vector.shape_cast %226 : vector<1x4x1x16xf32> to vector<4x1x16xf32>
    %228 = vector.shape_cast %227 : vector<4x1x16xf32> to vector<4x16xf32>
    %cst_129 = arith.constant 0.000000e+00 : f32
    %229 = vector.broadcast %cst_129 : f32 to vector<4x1xf32>
    %230 = vector.extract_strided_slice %228 {offsets = [0, 0], sizes = [4, 15], strides = [1, 1]} : vector<4x16xf32> to vector<4x15xf32>
    %231 = tpu.concatenate %229, %230 in 1 : vector<4x1xf32>, vector<4x15xf32> -> vector<4x16xf32>
    %232 = vector.extract_strided_slice %228 {offsets = [0, 1], sizes = [4, 15], strides = [1, 1]} : vector<4x16xf32> to vector<4x15xf32>
    %233 = tpu.concatenate %232, %229 in 1 : vector<4x15xf32>, vector<4x1xf32> -> vector<4x16xf32>
    %234 = tpu.concatenate %231, %228, %233 in 0 : vector<4x16xf32>, vector<4x16xf32>, vector<4x16xf32> -> vector<12x16xf32>
    %c0_130 = arith.constant 0 : index
    %c0_131 = arith.constant 0 : index
    %c0_132 = arith.constant 0 : index
    %235 = vector.load %arg3[%c0_130, %c0_131, %c0_132] : memref<3x8x12xbf16, #tpu.memory_space<vmem>>, vector<1x8x12xbf16>
    %236 = vector.shape_cast %235 : vector<1x8x12xbf16> to vector<8x12xbf16>
    %237 = arith.truncf %234 : vector<12x16xf32> to vector<12x16xbf16>
    %cst_133 = arith.constant dense<0.000000e+00> : vector<8x16xf32>
    %238 = tpu.matmul %236, %237, %cst_133 {dimension_numbers = #tpu.dot_dimension_numbers<[1], [0], [0], [1], [0, 0, 1, 1], [], []>} : vector<8x12xbf16>, vector<12x16xbf16>, vector<8x16xf32> -> vector<8x16xf32>
    %239 = arith.addf %222, %238 : vector<8x16xf32>
    %c8_i32_134 = arith.constant 8 : i32
    %240 = arith.muli %arg1, %c8_i32_134 : i32
    %c3_i32_135 = arith.constant 3 : i32
    %241 = arith.addi %240, %c3_i32_135 : i32
    %c0_136 = arith.constant 0 : index
    %c0_137 = arith.constant 0 : index
    %242 = arith.index_cast %241 : i32 to index
    %c0_138 = arith.constant 0 : index
    %243 = vector.load %arg2[%c0_136, %c0_137, %242, %c0_138] : memref<1x4x16x16xf32, #tpu.memory_space<vmem>>, vector<1x4x1x16xf32>
    %244 = vector.shape_cast %243 : vector<1x4x1x16xf32> to vector<4x1x16xf32>
    %245 = vector.shape_cast %244 : vector<4x1x16xf32> to vector<4x16xf32>
    %cst_139 = arith.constant 0.000000e+00 : f32
    %246 = vector.broadcast %cst_139 : f32 to vector<4x1xf32>
    %247 = vector.extract_strided_slice %245 {offsets = [0, 0], sizes = [4, 15], strides = [1, 1]} : vector<4x16xf32> to vector<4x15xf32>
    %248 = tpu.concatenate %246, %247 in 1 : vector<4x1xf32>, vector<4x15xf32> -> vector<4x16xf32>
    %249 = vector.extract_strided_slice %245 {offsets = [0, 1], sizes = [4, 15], strides = [1, 1]} : vector<4x16xf32> to vector<4x15xf32>
    %250 = tpu.concatenate %249, %246 in 1 : vector<4x15xf32>, vector<4x1xf32> -> vector<4x16xf32>
    %251 = tpu.concatenate %248, %245, %250 in 0 : vector<4x16xf32>, vector<4x16xf32>, vector<4x16xf32> -> vector<12x16xf32>
    %c1_140 = arith.constant 1 : index
    %c0_141 = arith.constant 0 : index
    %c0_142 = arith.constant 0 : index
    %252 = vector.load %arg3[%c1_140, %c0_141, %c0_142] : memref<3x8x12xbf16, #tpu.memory_space<vmem>>, vector<1x8x12xbf16>
    %253 = vector.shape_cast %252 : vector<1x8x12xbf16> to vector<8x12xbf16>
    %254 = arith.truncf %251 : vector<12x16xf32> to vector<12x16xbf16>
    %cst_143 = arith.constant dense<0.000000e+00> : vector<8x16xf32>
    %255 = tpu.matmul %253, %254, %cst_143 {dimension_numbers = #tpu.dot_dimension_numbers<[1], [0], [0], [1], [0, 0, 1, 1], [], []>} : vector<8x12xbf16>, vector<12x16xbf16>, vector<8x16xf32> -> vector<8x16xf32>
    %256 = arith.addf %239, %255 : vector<8x16xf32>
    %c8_i32_144 = arith.constant 8 : i32
    %257 = arith.muli %arg1, %c8_i32_144 : i32
    %c4_i32 = arith.constant 4 : i32
    %258 = arith.addi %257, %c4_i32 : i32
    %c0_145 = arith.constant 0 : index
    %c0_146 = arith.constant 0 : index
    %259 = arith.index_cast %258 : i32 to index
    %c0_147 = arith.constant 0 : index
    %260 = vector.load %arg2[%c0_145, %c0_146, %259, %c0_147] : memref<1x4x16x16xf32, #tpu.memory_space<vmem>>, vector<1x4x1x16xf32>
    %261 = vector.shape_cast %260 : vector<1x4x1x16xf32> to vector<4x1x16xf32>
    %262 = vector.shape_cast %261 : vector<4x1x16xf32> to vector<4x16xf32>
    %cst_148 = arith.constant 0.000000e+00 : f32
    %263 = vector.broadcast %cst_148 : f32 to vector<4x1xf32>
    %264 = vector.extract_strided_slice %262 {offsets = [0, 0], sizes = [4, 15], strides = [1, 1]} : vector<4x16xf32> to vector<4x15xf32>
    %265 = tpu.concatenate %263, %264 in 1 : vector<4x1xf32>, vector<4x15xf32> -> vector<4x16xf32>
    %266 = vector.extract_strided_slice %262 {offsets = [0, 1], sizes = [4, 15], strides = [1, 1]} : vector<4x16xf32> to vector<4x15xf32>
    %267 = tpu.concatenate %266, %263 in 1 : vector<4x15xf32>, vector<4x1xf32> -> vector<4x16xf32>
    %268 = tpu.concatenate %265, %262, %267 in 0 : vector<4x16xf32>, vector<4x16xf32>, vector<4x16xf32> -> vector<12x16xf32>
    %c2_149 = arith.constant 2 : index
    %c0_150 = arith.constant 0 : index
    %c0_151 = arith.constant 0 : index
    %269 = vector.load %arg3[%c2_149, %c0_150, %c0_151] : memref<3x8x12xbf16, #tpu.memory_space<vmem>>, vector<1x8x12xbf16>
    %270 = vector.shape_cast %269 : vector<1x8x12xbf16> to vector<8x12xbf16>
    %271 = arith.truncf %268 : vector<12x16xf32> to vector<12x16xbf16>
    %cst_152 = arith.constant dense<0.000000e+00> : vector<8x16xf32>
    %272 = tpu.matmul %270, %271, %cst_152 {dimension_numbers = #tpu.dot_dimension_numbers<[1], [0], [0], [1], [0, 0, 1, 1], [], []>} : vector<8x12xbf16>, vector<12x16xbf16>, vector<8x16xf32> -> vector<8x16xf32>
    %273 = arith.addf %256, %272 : vector<8x16xf32>
    %274 = vector.extract_strided_slice %273 {offsets = [0, 0], sizes = [2, 16], strides = [1, 1]} : vector<8x16xf32> to vector<2x16xf32>
    %275 = vector.extract_strided_slice %273 {offsets = [2, 0], sizes = [2, 16], strides = [1, 1]} : vector<8x16xf32> to vector<2x16xf32>
    %cst_153 = arith.constant dense<0.000000e+00> : vector<2x32xf32>
    %276 = tpu.matmul %274, %6, %cst_153 {dimension_numbers = #tpu.dot_dimension_numbers<[1], [0], [0], [1], [0, 0, 1, 1], [], []>} : vector<2x16xf32>, vector<16x32xf32>, vector<2x32xf32> -> vector<2x32xf32>
    %cst_154 = arith.constant dense<0.000000e+00> : vector<2x32xf32>
    %277 = tpu.matmul %275, %13, %cst_154 {dimension_numbers = #tpu.dot_dimension_numbers<[1], [0], [0], [1], [0, 0, 1, 1], [], []>} : vector<2x16xf32>, vector<16x32xf32>, vector<2x32xf32> -> vector<2x32xf32>
    %278 = arith.addf %276, %277 : vector<2x32xf32>
    %c0_155 = arith.constant 0 : index
    %c0_156 = arith.constant 0 : index
    %c6 = arith.constant 6 : index
    %c0_157 = arith.constant 0 : index
    %279 = vector.load %arg4[%c0_155, %c0_156, %c6, %c0_157] : memref<1x2x16x32xf32, #tpu.memory_space<vmem>>, vector<1x2x1x32xf32>
    %280 = vector.shape_cast %279 : vector<1x2x1x32xf32> to vector<2x32xf32>
    %281 = vector.shape_cast %278 : vector<2x32xf32> to vector<1x2x1x32xf32>
    tpu.vector_store %arg4[%c0_155, %c0_156, %c6, %c0_157], %281 {strides = array<i32>} : memref<1x2x16x32xf32, #tpu.memory_space<vmem>>, vector<1x2x1x32xf32>,
    %282 = vector.extract_strided_slice %273 {offsets = [4, 0], sizes = [2, 16], strides = [1, 1]} : vector<8x16xf32> to vector<2x16xf32>
    %283 = vector.extract_strided_slice %273 {offsets = [6, 0], sizes = [2, 16], strides = [1, 1]} : vector<8x16xf32> to vector<2x16xf32>
    %cst_158 = arith.constant dense<0.000000e+00> : vector<2x32xf32>
    %284 = tpu.matmul %282, %6, %cst_158 {dimension_numbers = #tpu.dot_dimension_numbers<[1], [0], [0], [1], [0, 0, 1, 1], [], []>} : vector<2x16xf32>, vector<16x32xf32>, vector<2x32xf32> -> vector<2x32xf32>
    %cst_159 = arith.constant dense<0.000000e+00> : vector<2x32xf32>
    %285 = tpu.matmul %283, %13, %cst_159 {dimension_numbers = #tpu.dot_dimension_numbers<[1], [0], [0], [1], [0, 0, 1, 1], [], []>} : vector<2x16xf32>, vector<16x32xf32>, vector<2x32xf32> -> vector<2x32xf32>
    %286 = arith.addf %284, %285 : vector<2x32xf32>
    %c0_160 = arith.constant 0 : index
    %c0_161 = arith.constant 0 : index
    %c7 = arith.constant 7 : index
    %c0_162 = arith.constant 0 : index
    %287 = vector.load %arg4[%c0_160, %c0_161, %c7, %c0_162] : memref<1x2x16x32xf32, #tpu.memory_space<vmem>>, vector<1x2x1x32xf32>
    %288 = vector.shape_cast %287 : vector<1x2x1x32xf32> to vector<2x32xf32>
    %289 = vector.shape_cast %286 : vector<2x32xf32> to vector<1x2x1x32xf32>
    tpu.vector_store %arg4[%c0_160, %c0_161, %c7, %c0_162], %289 {strides = array<i32>} : memref<1x2x16x32xf32, #tpu.memory_space<vmem>>, vector<1x2x1x32xf32>,
    %cst_163 = arith.constant 0.000000e+00 : f32
    %290 = vector.broadcast %cst_163 : f32 to vector<8x16xf32>
    %c8_i32_164 = arith.constant 8 : i32
    %291 = arith.muli %arg1, %c8_i32_164 : i32
    %c3_i32_165 = arith.constant 3 : i32
    %292 = arith.addi %291, %c3_i32_165 : i32
    %c0_166 = arith.constant 0 : index
    %c0_167 = arith.constant 0 : index
    %293 = arith.index_cast %292 : i32 to index
    %c0_168 = arith.constant 0 : index
    %294 = vector.load %arg2[%c0_166, %c0_167, %293, %c0_168] : memref<1x4x16x16xf32, #tpu.memory_space<vmem>>, vector<1x4x1x16xf32>
    %295 = vector.shape_cast %294 : vector<1x4x1x16xf32> to vector<4x1x16xf32>
    %296 = vector.shape_cast %295 : vector<4x1x16xf32> to vector<4x16xf32>
    %cst_169 = arith.constant 0.000000e+00 : f32
    %297 = vector.broadcast %cst_169 : f32 to vector<4x1xf32>
    %298 = vector.extract_strided_slice %296 {offsets = [0, 0], sizes = [4, 15], strides = [1, 1]} : vector<4x16xf32> to vector<4x15xf32>
    %299 = tpu.concatenate %297, %298 in 1 : vector<4x1xf32>, vector<4x15xf32> -> vector<4x16xf32>
    %300 = vector.extract_strided_slice %296 {offsets = [0, 1], sizes = [4, 15], strides = [1, 1]} : vector<4x16xf32> to vector<4x15xf32>
    %301 = tpu.concatenate %300, %297 in 1 : vector<4x15xf32>, vector<4x1xf32> -> vector<4x16xf32>
    %302 = tpu.concatenate %299, %296, %301 in 0 : vector<4x16xf32>, vector<4x16xf32>, vector<4x16xf32> -> vector<12x16xf32>
    %c0_170 = arith.constant 0 : index
    %c0_171 = arith.constant 0 : index
    %c0_172 = arith.constant 0 : index
    %303 = vector.load %arg3[%c0_170, %c0_171, %c0_172] : memref<3x8x12xbf16, #tpu.memory_space<vmem>>, vector<1x8x12xbf16>
    %304 = vector.shape_cast %303 : vector<1x8x12xbf16> to vector<8x12xbf16>
    %305 = arith.truncf %302 : vector<12x16xf32> to vector<12x16xbf16>
    %cst_173 = arith.constant dense<0.000000e+00> : vector<8x16xf32>
    %306 = tpu.matmul %304, %305, %cst_173 {dimension_numbers = #tpu.dot_dimension_numbers<[1], [0], [0], [1], [0, 0, 1, 1], [], []>} : vector<8x12xbf16>, vector<12x16xbf16>, vector<8x16xf32> -> vector<8x16xf32>
    %307 = arith.addf %290, %306 : vector<8x16xf32>
    %c8_i32_174 = arith.constant 8 : i32
    %308 = arith.muli %arg1, %c8_i32_174 : i32
    %c4_i32_175 = arith.constant 4 : i32
    %309 = arith.addi %308, %c4_i32_175 : i32
    %c0_176 = arith.constant 0 : index
    %c0_177 = arith.constant 0 : index
    %310 = arith.index_cast %309 : i32 to index
    %c0_178 = arith.constant 0 : index
    %311 = vector.load %arg2[%c0_176, %c0_177, %310, %c0_178] : memref<1x4x16x16xf32, #tpu.memory_space<vmem>>, vector<1x4x1x16xf32>
    %312 = vector.shape_cast %311 : vector<1x4x1x16xf32> to vector<4x1x16xf32>
    %313 = vector.shape_cast %312 : vector<4x1x16xf32> to vector<4x16xf32>
    %cst_179 = arith.constant 0.000000e+00 : f32
    %314 = vector.broadcast %cst_179 : f32 to vector<4x1xf32>
    %315 = vector.extract_strided_slice %313 {offsets = [0, 0], sizes = [4, 15], strides = [1, 1]} : vector<4x16xf32> to vector<4x15xf32>
    %316 = tpu.concatenate %314, %315 in 1 : vector<4x1xf32>, vector<4x15xf32> -> vector<4x16xf32>
    %317 = vector.extract_strided_slice %313 {offsets = [0, 1], sizes = [4, 15], strides = [1, 1]} : vector<4x16xf32> to vector<4x15xf32>
    %318 = tpu.concatenate %317, %314 in 1 : vector<4x15xf32>, vector<4x1xf32> -> vector<4x16xf32>
    %319 = tpu.concatenate %316, %313, %318 in 0 : vector<4x16xf32>, vector<4x16xf32>, vector<4x16xf32> -> vector<12x16xf32>
    %c1_180 = arith.constant 1 : index
    %c0_181 = arith.constant 0 : index
    %c0_182 = arith.constant 0 : index
    %320 = vector.load %arg3[%c1_180, %c0_181, %c0_182] : memref<3x8x12xbf16, #tpu.memory_space<vmem>>, vector<1x8x12xbf16>
    %321 = vector.shape_cast %320 : vector<1x8x12xbf16> to vector<8x12xbf16>
    %322 = arith.truncf %319 : vector<12x16xf32> to vector<12x16xbf16>
    %cst_183 = arith.constant dense<0.000000e+00> : vector<8x16xf32>
    %323 = tpu.matmul %321, %322, %cst_183 {dimension_numbers = #tpu.dot_dimension_numbers<[1], [0], [0], [1], [0, 0, 1, 1], [], []>} : vector<8x12xbf16>, vector<12x16xbf16>, vector<8x16xf32> -> vector<8x16xf32>
    %324 = arith.addf %307, %323 : vector<8x16xf32>
    %c8_i32_184 = arith.constant 8 : i32
    %325 = arith.muli %arg1, %c8_i32_184 : i32
    %c5_i32 = arith.constant 5 : i32
    %326 = arith.addi %325, %c5_i32 : i32
    %c0_185 = arith.constant 0 : index
    %c0_186 = arith.constant 0 : index
    %327 = arith.index_cast %326 : i32 to index
    %c0_187 = arith.constant 0 : index
    %328 = vector.load %arg2[%c0_185, %c0_186, %327, %c0_187] : memref<1x4x16x16xf32, #tpu.memory_space<vmem>>, vector<1x4x1x16xf32>
    %329 = vector.shape_cast %328 : vector<1x4x1x16xf32> to vector<4x1x16xf32>
    %330 = vector.shape_cast %329 : vector<4x1x16xf32> to vector<4x16xf32>
    %cst_188 = arith.constant 0.000000e+00 : f32
    %331 = vector.broadcast %cst_188 : f32 to vector<4x1xf32>
    %332 = vector.extract_strided_slice %330 {offsets = [0, 0], sizes = [4, 15], strides = [1, 1]} : vector<4x16xf32> to vector<4x15xf32>
    %333 = tpu.concatenate %331, %332 in 1 : vector<4x1xf32>, vector<4x15xf32> -> vector<4x16xf32>
    %334 = vector.extract_strided_slice %330 {offsets = [0, 1], sizes = [4, 15], strides = [1, 1]} : vector<4x16xf32> to vector<4x15xf32>
    %335 = tpu.concatenate %334, %331 in 1 : vector<4x15xf32>, vector<4x1xf32> -> vector<4x16xf32>
    %336 = tpu.concatenate %333, %330, %335 in 0 : vector<4x16xf32>, vector<4x16xf32>, vector<4x16xf32> -> vector<12x16xf32>
    %c2_189 = arith.constant 2 : index
    %c0_190 = arith.constant 0 : index
    %c0_191 = arith.constant 0 : index
    %337 = vector.load %arg3[%c2_189, %c0_190, %c0_191] : memref<3x8x12xbf16, #tpu.memory_space<vmem>>, vector<1x8x12xbf16>
    %338 = vector.shape_cast %337 : vector<1x8x12xbf16> to vector<8x12xbf16>
    %339 = arith.truncf %336 : vector<12x16xf32> to vector<12x16xbf16>
    %cst_192 = arith.constant dense<0.000000e+00> : vector<8x16xf32>
    %340 = tpu.matmul %338, %339, %cst_192 {dimension_numbers = #tpu.dot_dimension_numbers<[1], [0], [0], [1], [0, 0, 1, 1], [], []>} : vector<8x12xbf16>, vector<12x16xbf16>, vector<8x16xf32> -> vector<8x16xf32>
    %341 = arith.addf %324, %340 : vector<8x16xf32>
    %342 = vector.extract_strided_slice %341 {offsets = [0, 0], sizes = [2, 16], strides = [1, 1]} : vector<8x16xf32> to vector<2x16xf32>
    %343 = vector.extract_strided_slice %341 {offsets = [2, 0], sizes = [2, 16], strides = [1, 1]} : vector<8x16xf32> to vector<2x16xf32>
    %cst_193 = arith.constant dense<0.000000e+00> : vector<2x32xf32>
    %344 = tpu.matmul %342, %6, %cst_193 {dimension_numbers = #tpu.dot_dimension_numbers<[1], [0], [0], [1], [0, 0, 1, 1], [], []>} : vector<2x16xf32>, vector<16x32xf32>, vector<2x32xf32> -> vector<2x32xf32>
    %cst_194 = arith.constant dense<0.000000e+00> : vector<2x32xf32>
    %345 = tpu.matmul %343, %13, %cst_194 {dimension_numbers = #tpu.dot_dimension_numbers<[1], [0], [0], [1], [0, 0, 1, 1], [], []>} : vector<2x16xf32>, vector<16x32xf32>, vector<2x32xf32> -> vector<2x32xf32>
    %346 = arith.addf %344, %345 : vector<2x32xf32>
    %c0_195 = arith.constant 0 : index
    %c0_196 = arith.constant 0 : index
    %c8 = arith.constant 8 : index
    %c0_197 = arith.constant 0 : index
    %347 = vector.load %arg4[%c0_195, %c0_196, %c8, %c0_197] : memref<1x2x16x32xf32, #tpu.memory_space<vmem>>, vector<1x2x1x32xf32>
    %348 = vector.shape_cast %347 : vector<1x2x1x32xf32> to vector<2x32xf32>
    %349 = vector.shape_cast %346 : vector<2x32xf32> to vector<1x2x1x32xf32>
    tpu.vector_store %arg4[%c0_195, %c0_196, %c8, %c0_197], %349 {strides = array<i32>} : memref<1x2x16x32xf32, #tpu.memory_space<vmem>>, vector<1x2x1x32xf32>,
    %350 = vector.extract_strided_slice %341 {offsets = [4, 0], sizes = [2, 16], strides = [1, 1]} : vector<8x16xf32> to vector<2x16xf32>
    %351 = vector.extract_strided_slice %341 {offsets = [6, 0], sizes = [2, 16], strides = [1, 1]} : vector<8x16xf32> to vector<2x16xf32>
    %cst_198 = arith.constant dense<0.000000e+00> : vector<2x32xf32>
    %352 = tpu.matmul %350, %6, %cst_198 {dimension_numbers = #tpu.dot_dimension_numbers<[1], [0], [0], [1], [0, 0, 1, 1], [], []>} : vector<2x16xf32>, vector<16x32xf32>, vector<2x32xf32> -> vector<2x32xf32>
    %cst_199 = arith.constant dense<0.000000e+00> : vector<2x32xf32>
    %353 = tpu.matmul %351, %13, %cst_199 {dimension_numbers = #tpu.dot_dimension_numbers<[1], [0], [0], [1], [0, 0, 1, 1], [], []>} : vector<2x16xf32>, vector<16x32xf32>, vector<2x32xf32> -> vector<2x32xf32>
    %354 = arith.addf %352, %353 : vector<2x32xf32>
    %c0_200 = arith.constant 0 : index
    %c0_201 = arith.constant 0 : index
    %c9 = arith.constant 9 : index
    %c0_202 = arith.constant 0 : index
    %355 = vector.load %arg4[%c0_200, %c0_201, %c9, %c0_202] : memref<1x2x16x32xf32, #tpu.memory_space<vmem>>, vector<1x2x1x32xf32>
    %356 = vector.shape_cast %355 : vector<1x2x1x32xf32> to vector<2x32xf32>
    %357 = vector.shape_cast %354 : vector<2x32xf32> to vector<1x2x1x32xf32>
    tpu.vector_store %arg4[%c0_200, %c0_201, %c9, %c0_202], %357 {strides = array<i32>} : memref<1x2x16x32xf32, #tpu.memory_space<vmem>>, vector<1x2x1x32xf32>,
    %cst_203 = arith.constant 0.000000e+00 : f32
    %358 = vector.broadcast %cst_203 : f32 to vector<8x16xf32>
    %c8_i32_204 = arith.constant 8 : i32
    %359 = arith.muli %arg1, %c8_i32_204 : i32
    %c4_i32_205 = arith.constant 4 : i32
    %360 = arith.addi %359, %c4_i32_205 : i32
    %c0_206 = arith.constant 0 : index
    %c0_207 = arith.constant 0 : index
    %361 = arith.index_cast %360 : i32 to index
    %c0_208 = arith.constant 0 : index
    %362 = vector.load %arg2[%c0_206, %c0_207, %361, %c0_208] : memref<1x4x16x16xf32, #tpu.memory_space<vmem>>, vector<1x4x1x16xf32>
    %363 = vector.shape_cast %362 : vector<1x4x1x16xf32> to vector<4x1x16xf32>
    %364 = vector.shape_cast %363 : vector<4x1x16xf32> to vector<4x16xf32>
    %cst_209 = arith.constant 0.000000e+00 : f32
    %365 = vector.broadcast %cst_209 : f32 to vector<4x1xf32>
    %366 = vector.extract_strided_slice %364 {offsets = [0, 0], sizes = [4, 15], strides = [1, 1]} : vector<4x16xf32> to vector<4x15xf32>
    %367 = tpu.concatenate %365, %366 in 1 : vector<4x1xf32>, vector<4x15xf32> -> vector<4x16xf32>
    %368 = vector.extract_strided_slice %364 {offsets = [0, 1], sizes = [4, 15], strides = [1, 1]} : vector<4x16xf32> to vector<4x15xf32>
    %369 = tpu.concatenate %368, %365 in 1 : vector<4x15xf32>, vector<4x1xf32> -> vector<4x16xf32>
    %370 = tpu.concatenate %367, %364, %369 in 0 : vector<4x16xf32>, vector<4x16xf32>, vector<4x16xf32> -> vector<12x16xf32>
    %c0_210 = arith.constant 0 : index
    %c0_211 = arith.constant 0 : index
    %c0_212 = arith.constant 0 : index
    %371 = vector.load %arg3[%c0_210, %c0_211, %c0_212] : memref<3x8x12xbf16, #tpu.memory_space<vmem>>, vector<1x8x12xbf16>
    %372 = vector.shape_cast %371 : vector<1x8x12xbf16> to vector<8x12xbf16>
    %373 = arith.truncf %370 : vector<12x16xf32> to vector<12x16xbf16>
    %cst_213 = arith.constant dense<0.000000e+00> : vector<8x16xf32>
    %374 = tpu.matmul %372, %373, %cst_213 {dimension_numbers = #tpu.dot_dimension_numbers<[1], [0], [0], [1], [0, 0, 1, 1], [], []>} : vector<8x12xbf16>, vector<12x16xbf16>, vector<8x16xf32> -> vector<8x16xf32>
    %375 = arith.addf %358, %374 : vector<8x16xf32>
    %c8_i32_214 = arith.constant 8 : i32
    %376 = arith.muli %arg1, %c8_i32_214 : i32
    %c5_i32_215 = arith.constant 5 : i32
    %377 = arith.addi %376, %c5_i32_215 : i32
    %c0_216 = arith.constant 0 : index
    %c0_217 = arith.constant 0 : index
    %378 = arith.index_cast %377 : i32 to index
    %c0_218 = arith.constant 0 : index
    %379 = vector.load %arg2[%c0_216, %c0_217, %378, %c0_218] : memref<1x4x16x16xf32, #tpu.memory_space<vmem>>, vector<1x4x1x16xf32>
    %380 = vector.shape_cast %379 : vector<1x4x1x16xf32> to vector<4x1x16xf32>
    %381 = vector.shape_cast %380 : vector<4x1x16xf32> to vector<4x16xf32>
    %cst_219 = arith.constant 0.000000e+00 : f32
    %382 = vector.broadcast %cst_219 : f32 to vector<4x1xf32>
    %383 = vector.extract_strided_slice %381 {offsets = [0, 0], sizes = [4, 15], strides = [1, 1]} : vector<4x16xf32> to vector<4x15xf32>
    %384 = tpu.concatenate %382, %383 in 1 : vector<4x1xf32>, vector<4x15xf32> -> vector<4x16xf32>
    %385 = vector.extract_strided_slice %381 {offsets = [0, 1], sizes = [4, 15], strides = [1, 1]} : vector<4x16xf32> to vector<4x15xf32>
    %386 = tpu.concatenate %385, %382 in 1 : vector<4x15xf32>, vector<4x1xf32> -> vector<4x16xf32>
    %387 = tpu.concatenate %384, %381, %386 in 0 : vector<4x16xf32>, vector<4x16xf32>, vector<4x16xf32> -> vector<12x16xf32>
    %c1_220 = arith.constant 1 : index
    %c0_221 = arith.constant 0 : index
    %c0_222 = arith.constant 0 : index
    %388 = vector.load %arg3[%c1_220, %c0_221, %c0_222] : memref<3x8x12xbf16, #tpu.memory_space<vmem>>, vector<1x8x12xbf16>
    %389 = vector.shape_cast %388 : vector<1x8x12xbf16> to vector<8x12xbf16>
    %390 = arith.truncf %387 : vector<12x16xf32> to vector<12x16xbf16>
    %cst_223 = arith.constant dense<0.000000e+00> : vector<8x16xf32>
    %391 = tpu.matmul %389, %390, %cst_223 {dimension_numbers = #tpu.dot_dimension_numbers<[1], [0], [0], [1], [0, 0, 1, 1], [], []>} : vector<8x12xbf16>, vector<12x16xbf16>, vector<8x16xf32> -> vector<8x16xf32>
    %392 = arith.addf %375, %391 : vector<8x16xf32>
    %c8_i32_224 = arith.constant 8 : i32
    %393 = arith.muli %arg1, %c8_i32_224 : i32
    %c6_i32 = arith.constant 6 : i32
    %394 = arith.addi %393, %c6_i32 : i32
    %c0_225 = arith.constant 0 : index
    %c0_226 = arith.constant 0 : index
    %395 = arith.index_cast %394 : i32 to index
    %c0_227 = arith.constant 0 : index
    %396 = vector.load %arg2[%c0_225, %c0_226, %395, %c0_227] : memref<1x4x16x16xf32, #tpu.memory_space<vmem>>, vector<1x4x1x16xf32>
    %397 = vector.shape_cast %396 : vector<1x4x1x16xf32> to vector<4x1x16xf32>
    %398 = vector.shape_cast %397 : vector<4x1x16xf32> to vector<4x16xf32>
    %cst_228 = arith.constant 0.000000e+00 : f32
    %399 = vector.broadcast %cst_228 : f32 to vector<4x1xf32>
    %400 = vector.extract_strided_slice %398 {offsets = [0, 0], sizes = [4, 15], strides = [1, 1]} : vector<4x16xf32> to vector<4x15xf32>
    %401 = tpu.concatenate %399, %400 in 1 : vector<4x1xf32>, vector<4x15xf32> -> vector<4x16xf32>
    %402 = vector.extract_strided_slice %398 {offsets = [0, 1], sizes = [4, 15], strides = [1, 1]} : vector<4x16xf32> to vector<4x15xf32>
    %403 = tpu.concatenate %402, %399 in 1 : vector<4x15xf32>, vector<4x1xf32> -> vector<4x16xf32>
    %404 = tpu.concatenate %401, %398, %403 in 0 : vector<4x16xf32>, vector<4x16xf32>, vector<4x16xf32> -> vector<12x16xf32>
    %c2_229 = arith.constant 2 : index
    %c0_230 = arith.constant 0 : index
    %c0_231 = arith.constant 0 : index
    %405 = vector.load %arg3[%c2_229, %c0_230, %c0_231] : memref<3x8x12xbf16, #tpu.memory_space<vmem>>, vector<1x8x12xbf16>
    %406 = vector.shape_cast %405 : vector<1x8x12xbf16> to vector<8x12xbf16>
    %407 = arith.truncf %404 : vector<12x16xf32> to vector<12x16xbf16>
    %cst_232 = arith.constant dense<0.000000e+00> : vector<8x16xf32>
    %408 = tpu.matmul %406, %407, %cst_232 {dimension_numbers = #tpu.dot_dimension_numbers<[1], [0], [0], [1], [0, 0, 1, 1], [], []>} : vector<8x12xbf16>, vector<12x16xbf16>, vector<8x16xf32> -> vector<8x16xf32>
    %409 = arith.addf %392, %408 : vector<8x16xf32>
    %410 = vector.extract_strided_slice %409 {offsets = [0, 0], sizes = [2, 16], strides = [1, 1]} : vector<8x16xf32> to vector<2x16xf32>
    %411 = vector.extract_strided_slice %409 {offsets = [2, 0], sizes = [2, 16], strides = [1, 1]} : vector<8x16xf32> to vector<2x16xf32>
    %cst_233 = arith.constant dense<0.000000e+00> : vector<2x32xf32>
    %412 = tpu.matmul %410, %6, %cst_233 {dimension_numbers = #tpu.dot_dimension_numbers<[1], [0], [0], [1], [0, 0, 1, 1], [], []>} : vector<2x16xf32>, vector<16x32xf32>, vector<2x32xf32> -> vector<2x32xf32>
    %cst_234 = arith.constant dense<0.000000e+00> : vector<2x32xf32>
    %413 = tpu.matmul %411, %13, %cst_234 {dimension_numbers = #tpu.dot_dimension_numbers<[1], [0], [0], [1], [0, 0, 1, 1], [], []>} : vector<2x16xf32>, vector<16x32xf32>, vector<2x32xf32> -> vector<2x32xf32>
    %414 = arith.addf %412, %413 : vector<2x32xf32>
    %c0_235 = arith.constant 0 : index
    %c0_236 = arith.constant 0 : index
    %c10 = arith.constant 10 : index
    %c0_237 = arith.constant 0 : index
    %415 = vector.load %arg4[%c0_235, %c0_236, %c10, %c0_237] : memref<1x2x16x32xf32, #tpu.memory_space<vmem>>, vector<1x2x1x32xf32>
    %416 = vector.shape_cast %415 : vector<1x2x1x32xf32> to vector<2x32xf32>
    %417 = vector.shape_cast %414 : vector<2x32xf32> to vector<1x2x1x32xf32>
    tpu.vector_store %arg4[%c0_235, %c0_236, %c10, %c0_237], %417 {strides = array<i32>} : memref<1x2x16x32xf32, #tpu.memory_space<vmem>>, vector<1x2x1x32xf32>,
    %418 = vector.extract_strided_slice %409 {offsets = [4, 0], sizes = [2, 16], strides = [1, 1]} : vector<8x16xf32> to vector<2x16xf32>
    %419 = vector.extract_strided_slice %409 {offsets = [6, 0], sizes = [2, 16], strides = [1, 1]} : vector<8x16xf32> to vector<2x16xf32>
    %cst_238 = arith.constant dense<0.000000e+00> : vector<2x32xf32>
    %420 = tpu.matmul %418, %6, %cst_238 {dimension_numbers = #tpu.dot_dimension_numbers<[1], [0], [0], [1], [0, 0, 1, 1], [], []>} : vector<2x16xf32>, vector<16x32xf32>, vector<2x32xf32> -> vector<2x32xf32>
    %cst_239 = arith.constant dense<0.000000e+00> : vector<2x32xf32>
    %421 = tpu.matmul %419, %13, %cst_239 {dimension_numbers = #tpu.dot_dimension_numbers<[1], [0], [0], [1], [0, 0, 1, 1], [], []>} : vector<2x16xf32>, vector<16x32xf32>, vector<2x32xf32> -> vector<2x32xf32>
    %422 = arith.addf %420, %421 : vector<2x32xf32>
    %c0_240 = arith.constant 0 : index
    %c0_241 = arith.constant 0 : index
    %c11 = arith.constant 11 : index
    %c0_242 = arith.constant 0 : index
    %423 = vector.load %arg4[%c0_240, %c0_241, %c11, %c0_242] : memref<1x2x16x32xf32, #tpu.memory_space<vmem>>, vector<1x2x1x32xf32>
    %424 = vector.shape_cast %423 : vector<1x2x1x32xf32> to vector<2x32xf32>
    %425 = vector.shape_cast %422 : vector<2x32xf32> to vector<1x2x1x32xf32>
    tpu.vector_store %arg4[%c0_240, %c0_241, %c11, %c0_242], %425 {strides = array<i32>} : memref<1x2x16x32xf32, #tpu.memory_space<vmem>>, vector<1x2x1x32xf32>,
    %cst_243 = arith.constant 0.000000e+00 : f32
    %426 = vector.broadcast %cst_243 : f32 to vector<8x16xf32>
    %c8_i32_244 = arith.constant 8 : i32
    %427 = arith.muli %arg1, %c8_i32_244 : i32
    %c5_i32_245 = arith.constant 5 : i32
    %428 = arith.addi %427, %c5_i32_245 : i32
    %c0_246 = arith.constant 0 : index
    %c0_247 = arith.constant 0 : index
    %429 = arith.index_cast %428 : i32 to index
    %c0_248 = arith.constant 0 : index
    %430 = vector.load %arg2[%c0_246, %c0_247, %429, %c0_248] : memref<1x4x16x16xf32, #tpu.memory_space<vmem>>, vector<1x4x1x16xf32>
    %431 = vector.shape_cast %430 : vector<1x4x1x16xf32> to vector<4x1x16xf32>
    %432 = vector.shape_cast %431 : vector<4x1x16xf32> to vector<4x16xf32>
    %cst_249 = arith.constant 0.000000e+00 : f32
    %433 = vector.broadcast %cst_249 : f32 to vector<4x1xf32>
    %434 = vector.extract_strided_slice %432 {offsets = [0, 0], sizes = [4, 15], strides = [1, 1]} : vector<4x16xf32> to vector<4x15xf32>
    %435 = tpu.concatenate %433, %434 in 1 : vector<4x1xf32>, vector<4x15xf32> -> vector<4x16xf32>
    %436 = vector.extract_strided_slice %432 {offsets = [0, 1], sizes = [4, 15], strides = [1, 1]} : vector<4x16xf32> to vector<4x15xf32>
    %437 = tpu.concatenate %436, %433 in 1 : vector<4x15xf32>, vector<4x1xf32> -> vector<4x16xf32>
    %438 = tpu.concatenate %435, %432, %437 in 0 : vector<4x16xf32>, vector<4x16xf32>, vector<4x16xf32> -> vector<12x16xf32>
    %c0_250 = arith.constant 0 : index
    %c0_251 = arith.constant 0 : index
    %c0_252 = arith.constant 0 : index
    %439 = vector.load %arg3[%c0_250, %c0_251, %c0_252] : memref<3x8x12xbf16, #tpu.memory_space<vmem>>, vector<1x8x12xbf16>
    %440 = vector.shape_cast %439 : vector<1x8x12xbf16> to vector<8x12xbf16>
    %441 = arith.truncf %438 : vector<12x16xf32> to vector<12x16xbf16>
    %cst_253 = arith.constant dense<0.000000e+00> : vector<8x16xf32>
    %442 = tpu.matmul %440, %441, %cst_253 {dimension_numbers = #tpu.dot_dimension_numbers<[1], [0], [0], [1], [0, 0, 1, 1], [], []>} : vector<8x12xbf16>, vector<12x16xbf16>, vector<8x16xf32> -> vector<8x16xf32>
    %443 = arith.addf %426, %442 : vector<8x16xf32>
    %c8_i32_254 = arith.constant 8 : i32
    %444 = arith.muli %arg1, %c8_i32_254 : i32
    %c6_i32_255 = arith.constant 6 : i32
    %445 = arith.addi %444, %c6_i32_255 : i32
    %c0_256 = arith.constant 0 : index
    %c0_257 = arith.constant 0 : index
    %446 = arith.index_cast %445 : i32 to index
    %c0_258 = arith.constant 0 : index
    %447 = vector.load %arg2[%c0_256, %c0_257, %446, %c0_258] : memref<1x4x16x16xf32, #tpu.memory_space<vmem>>, vector<1x4x1x16xf32>
    %448 = vector.shape_cast %447 : vector<1x4x1x16xf32> to vector<4x1x16xf32>
    %449 = vector.shape_cast %448 : vector<4x1x16xf32> to vector<4x16xf32>
    %cst_259 = arith.constant 0.000000e+00 : f32
    %450 = vector.broadcast %cst_259 : f32 to vector<4x1xf32>
    %451 = vector.extract_strided_slice %449 {offsets = [0, 0], sizes = [4, 15], strides = [1, 1]} : vector<4x16xf32> to vector<4x15xf32>
    %452 = tpu.concatenate %450, %451 in 1 : vector<4x1xf32>, vector<4x15xf32> -> vector<4x16xf32>
    %453 = vector.extract_strided_slice %449 {offsets = [0, 1], sizes = [4, 15], strides = [1, 1]} : vector<4x16xf32> to vector<4x15xf32>
    %454 = tpu.concatenate %453, %450 in 1 : vector<4x15xf32>, vector<4x1xf32> -> vector<4x16xf32>
    %455 = tpu.concatenate %452, %449, %454 in 0 : vector<4x16xf32>, vector<4x16xf32>, vector<4x16xf32> -> vector<12x16xf32>
    %c1_260 = arith.constant 1 : index
    %c0_261 = arith.constant 0 : index
    %c0_262 = arith.constant 0 : index
    %456 = vector.load %arg3[%c1_260, %c0_261, %c0_262] : memref<3x8x12xbf16, #tpu.memory_space<vmem>>, vector<1x8x12xbf16>
    %457 = vector.shape_cast %456 : vector<1x8x12xbf16> to vector<8x12xbf16>
    %458 = arith.truncf %455 : vector<12x16xf32> to vector<12x16xbf16>
    %cst_263 = arith.constant dense<0.000000e+00> : vector<8x16xf32>
    %459 = tpu.matmul %457, %458, %cst_263 {dimension_numbers = #tpu.dot_dimension_numbers<[1], [0], [0], [1], [0, 0, 1, 1], [], []>} : vector<8x12xbf16>, vector<12x16xbf16>, vector<8x16xf32> -> vector<8x16xf32>
    %460 = arith.addf %443, %459 : vector<8x16xf32>
    %c8_i32_264 = arith.constant 8 : i32
    %461 = arith.muli %arg1, %c8_i32_264 : i32
    %c7_i32 = arith.constant 7 : i32
    %462 = arith.addi %461, %c7_i32 : i32
    %c0_265 = arith.constant 0 : index
    %c0_266 = arith.constant 0 : index
    %463 = arith.index_cast %462 : i32 to index
    %c0_267 = arith.constant 0 : index
    %464 = vector.load %arg2[%c0_265, %c0_266, %463, %c0_267] : memref<1x4x16x16xf32, #tpu.memory_space<vmem>>, vector<1x4x1x16xf32>
    %465 = vector.shape_cast %464 : vector<1x4x1x16xf32> to vector<4x1x16xf32>
    %466 = vector.shape_cast %465 : vector<4x1x16xf32> to vector<4x16xf32>
    %cst_268 = arith.constant 0.000000e+00 : f32
    %467 = vector.broadcast %cst_268 : f32 to vector<4x1xf32>
    %468 = vector.extract_strided_slice %466 {offsets = [0, 0], sizes = [4, 15], strides = [1, 1]} : vector<4x16xf32> to vector<4x15xf32>
    %469 = tpu.concatenate %467, %468 in 1 : vector<4x1xf32>, vector<4x15xf32> -> vector<4x16xf32>
    %470 = vector.extract_strided_slice %466 {offsets = [0, 1], sizes = [4, 15], strides = [1, 1]} : vector<4x16xf32> to vector<4x15xf32>
    %471 = tpu.concatenate %470, %467 in 1 : vector<4x15xf32>, vector<4x1xf32> -> vector<4x16xf32>
    %472 = tpu.concatenate %469, %466, %471 in 0 : vector<4x16xf32>, vector<4x16xf32>, vector<4x16xf32> -> vector<12x16xf32>
    %c2_269 = arith.constant 2 : index
    %c0_270 = arith.constant 0 : index
    %c0_271 = arith.constant 0 : index
    %473 = vector.load %arg3[%c2_269, %c0_270, %c0_271] : memref<3x8x12xbf16, #tpu.memory_space<vmem>>, vector<1x8x12xbf16>
    %474 = vector.shape_cast %473 : vector<1x8x12xbf16> to vector<8x12xbf16>
    %475 = arith.truncf %472 : vector<12x16xf32> to vector<12x16xbf16>
    %cst_272 = arith.constant dense<0.000000e+00> : vector<8x16xf32>
    %476 = tpu.matmul %474, %475, %cst_272 {dimension_numbers = #tpu.dot_dimension_numbers<[1], [0], [0], [1], [0, 0, 1, 1], [], []>} : vector<8x12xbf16>, vector<12x16xbf16>, vector<8x16xf32> -> vector<8x16xf32>
    %477 = arith.addf %460, %476 : vector<8x16xf32>
    %478 = vector.extract_strided_slice %477 {offsets = [0, 0], sizes = [2, 16], strides = [1, 1]} : vector<8x16xf32> to vector<2x16xf32>
    %479 = vector.extract_strided_slice %477 {offsets = [2, 0], sizes = [2, 16], strides = [1, 1]} : vector<8x16xf32> to vector<2x16xf32>
    %cst_273 = arith.constant dense<0.000000e+00> : vector<2x32xf32>
    %480 = tpu.matmul %478, %6, %cst_273 {dimension_numbers = #tpu.dot_dimension_numbers<[1], [0], [0], [1], [0, 0, 1, 1], [], []>} : vector<2x16xf32>, vector<16x32xf32>, vector<2x32xf32> -> vector<2x32xf32>
    %cst_274 = arith.constant dense<0.000000e+00> : vector<2x32xf32>
    %481 = tpu.matmul %479, %13, %cst_274 {dimension_numbers = #tpu.dot_dimension_numbers<[1], [0], [0], [1], [0, 0, 1, 1], [], []>} : vector<2x16xf32>, vector<16x32xf32>, vector<2x32xf32> -> vector<2x32xf32>
    %482 = arith.addf %480, %481 : vector<2x32xf32>
    %c0_275 = arith.constant 0 : index
    %c0_276 = arith.constant 0 : index
    %c12 = arith.constant 12 : index
    %c0_277 = arith.constant 0 : index
    %483 = vector.load %arg4[%c0_275, %c0_276, %c12, %c0_277] : memref<1x2x16x32xf32, #tpu.memory_space<vmem>>, vector<1x2x1x32xf32>
    %484 = vector.shape_cast %483 : vector<1x2x1x32xf32> to vector<2x32xf32>
    %485 = vector.shape_cast %482 : vector<2x32xf32> to vector<1x2x1x32xf32>
    tpu.vector_store %arg4[%c0_275, %c0_276, %c12, %c0_277], %485 {strides = array<i32>} : memref<1x2x16x32xf32, #tpu.memory_space<vmem>>, vector<1x2x1x32xf32>,
    %486 = vector.extract_strided_slice %477 {offsets = [4, 0], sizes = [2, 16], strides = [1, 1]} : vector<8x16xf32> to vector<2x16xf32>
    %487 = vector.extract_strided_slice %477 {offsets = [6, 0], sizes = [2, 16], strides = [1, 1]} : vector<8x16xf32> to vector<2x16xf32>
    %cst_278 = arith.constant dense<0.000000e+00> : vector<2x32xf32>
    %488 = tpu.matmul %486, %6, %cst_278 {dimension_numbers = #tpu.dot_dimension_numbers<[1], [0], [0], [1], [0, 0, 1, 1], [], []>} : vector<2x16xf32>, vector<16x32xf32>, vector<2x32xf32> -> vector<2x32xf32>
    %cst_279 = arith.constant dense<0.000000e+00> : vector<2x32xf32>
    %489 = tpu.matmul %487, %13, %cst_279 {dimension_numbers = #tpu.dot_dimension_numbers<[1], [0], [0], [1], [0, 0, 1, 1], [], []>} : vector<2x16xf32>, vector<16x32xf32>, vector<2x32xf32> -> vector<2x32xf32>
    %490 = arith.addf %488, %489 : vector<2x32xf32>
    %c0_280 = arith.constant 0 : index
    %c0_281 = arith.constant 0 : index
    %c13 = arith.constant 13 : index
    %c0_282 = arith.constant 0 : index
    %491 = vector.load %arg4[%c0_280, %c0_281, %c13, %c0_282] : memref<1x2x16x32xf32, #tpu.memory_space<vmem>>, vector<1x2x1x32xf32>
    %492 = vector.shape_cast %491 : vector<1x2x1x32xf32> to vector<2x32xf32>
    %493 = vector.shape_cast %490 : vector<2x32xf32> to vector<1x2x1x32xf32>
    tpu.vector_store %arg4[%c0_280, %c0_281, %c13, %c0_282], %493 {strides = array<i32>} : memref<1x2x16x32xf32, #tpu.memory_space<vmem>>, vector<1x2x1x32xf32>,
    %cst_283 = arith.constant 0.000000e+00 : f32
    %494 = vector.broadcast %cst_283 : f32 to vector<8x16xf32>
    %c8_i32_284 = arith.constant 8 : i32
    %495 = arith.muli %arg1, %c8_i32_284 : i32
    %c6_i32_285 = arith.constant 6 : i32
    %496 = arith.addi %495, %c6_i32_285 : i32
    %c0_286 = arith.constant 0 : index
    %c0_287 = arith.constant 0 : index
    %497 = arith.index_cast %496 : i32 to index
    %c0_288 = arith.constant 0 : index
    %498 = vector.load %arg2[%c0_286, %c0_287, %497, %c0_288] : memref<1x4x16x16xf32, #tpu.memory_space<vmem>>, vector<1x4x1x16xf32>
    %499 = vector.shape_cast %498 : vector<1x4x1x16xf32> to vector<4x1x16xf32>
    %500 = vector.shape_cast %499 : vector<4x1x16xf32> to vector<4x16xf32>
    %cst_289 = arith.constant 0.000000e+00 : f32
    %501 = vector.broadcast %cst_289 : f32 to vector<4x1xf32>
    %502 = vector.extract_strided_slice %500 {offsets = [0, 0], sizes = [4, 15], strides = [1, 1]} : vector<4x16xf32> to vector<4x15xf32>
    %503 = tpu.concatenate %501, %502 in 1 : vector<4x1xf32>, vector<4x15xf32> -> vector<4x16xf32>
    %504 = vector.extract_strided_slice %500 {offsets = [0, 1], sizes = [4, 15], strides = [1, 1]} : vector<4x16xf32> to vector<4x15xf32>
    %505 = tpu.concatenate %504, %501 in 1 : vector<4x15xf32>, vector<4x1xf32> -> vector<4x16xf32>
    %506 = tpu.concatenate %503, %500, %505 in 0 : vector<4x16xf32>, vector<4x16xf32>, vector<4x16xf32> -> vector<12x16xf32>
    %c0_290 = arith.constant 0 : index
    %c0_291 = arith.constant 0 : index
    %c0_292 = arith.constant 0 : index
    %507 = vector.load %arg3[%c0_290, %c0_291, %c0_292] : memref<3x8x12xbf16, #tpu.memory_space<vmem>>, vector<1x8x12xbf16>
    %508 = vector.shape_cast %507 : vector<1x8x12xbf16> to vector<8x12xbf16>
    %509 = arith.truncf %506 : vector<12x16xf32> to vector<12x16xbf16>
    %cst_293 = arith.constant dense<0.000000e+00> : vector<8x16xf32>
    %510 = tpu.matmul %508, %509, %cst_293 {dimension_numbers = #tpu.dot_dimension_numbers<[1], [0], [0], [1], [0, 0, 1, 1], [], []>} : vector<8x12xbf16>, vector<12x16xbf16>, vector<8x16xf32> -> vector<8x16xf32>
    %511 = arith.addf %494, %510 : vector<8x16xf32>
    %c8_i32_294 = arith.constant 8 : i32
    %512 = arith.muli %arg1, %c8_i32_294 : i32
    %c7_i32_295 = arith.constant 7 : i32
    %513 = arith.addi %512, %c7_i32_295 : i32
    %c0_296 = arith.constant 0 : index
    %c0_297 = arith.constant 0 : index
    %514 = arith.index_cast %513 : i32 to index
    %c0_298 = arith.constant 0 : index
    %515 = vector.load %arg2[%c0_296, %c0_297, %514, %c0_298] : memref<1x4x16x16xf32, #tpu.memory_space<vmem>>, vector<1x4x1x16xf32>
    %516 = vector.shape_cast %515 : vector<1x4x1x16xf32> to vector<4x1x16xf32>
    %517 = vector.shape_cast %516 : vector<4x1x16xf32> to vector<4x16xf32>
    %cst_299 = arith.constant 0.000000e+00 : f32
    %518 = vector.broadcast %cst_299 : f32 to vector<4x1xf32>
    %519 = vector.extract_strided_slice %517 {offsets = [0, 0], sizes = [4, 15], strides = [1, 1]} : vector<4x16xf32> to vector<4x15xf32>
    %520 = tpu.concatenate %518, %519 in 1 : vector<4x1xf32>, vector<4x15xf32> -> vector<4x16xf32>
    %521 = vector.extract_strided_slice %517 {offsets = [0, 1], sizes = [4, 15], strides = [1, 1]} : vector<4x16xf32> to vector<4x15xf32>
    %522 = tpu.concatenate %521, %518 in 1 : vector<4x15xf32>, vector<4x1xf32> -> vector<4x16xf32>
    %523 = tpu.concatenate %520, %517, %522 in 0 : vector<4x16xf32>, vector<4x16xf32>, vector<4x16xf32> -> vector<12x16xf32>
    %c1_300 = arith.constant 1 : index
    %c0_301 = arith.constant 0 : index
    %c0_302 = arith.constant 0 : index
    %524 = vector.load %arg3[%c1_300, %c0_301, %c0_302] : memref<3x8x12xbf16, #tpu.memory_space<vmem>>, vector<1x8x12xbf16>
    %525 = vector.shape_cast %524 : vector<1x8x12xbf16> to vector<8x12xbf16>
    %526 = arith.truncf %523 : vector<12x16xf32> to vector<12x16xbf16>
    %cst_303 = arith.constant dense<0.000000e+00> : vector<8x16xf32>
    %527 = tpu.matmul %525, %526, %cst_303 {dimension_numbers = #tpu.dot_dimension_numbers<[1], [0], [0], [1], [0, 0, 1, 1], [], []>} : vector<8x12xbf16>, vector<12x16xbf16>, vector<8x16xf32> -> vector<8x16xf32>
    %528 = arith.addf %511, %527 : vector<8x16xf32>
    %c8_i32_304 = arith.constant 8 : i32
    %529 = arith.muli %arg1, %c8_i32_304 : i32
    %c8_i32_305 = arith.constant 8 : i32
    %530 = arith.addi %529, %c8_i32_305 : i32
    %c15_i32 = arith.constant 15 : i32
    %531 = arith.minsi %530, %c15_i32 : i32
    %c0_306 = arith.constant 0 : index
    %c0_307 = arith.constant 0 : index
    %532 = arith.index_cast %531 : i32 to index
    %c0_308 = arith.constant 0 : index
    %533 = vector.load %arg2[%c0_306, %c0_307, %532, %c0_308] : memref<1x4x16x16xf32, #tpu.memory_space<vmem>>, vector<1x4x1x16xf32>
    %534 = vector.shape_cast %533 : vector<1x4x1x16xf32> to vector<4x1x16xf32>
    %535 = vector.shape_cast %534 : vector<4x1x16xf32> to vector<4x16xf32>
    %c1_i32_309 = arith.constant 1 : i32
    %536 = arith.addi %arg1, %c1_i32_309 : i32
    %c2_i32_310 = arith.constant 2 : i32
    %537 = arith.cmpi slt, %536, %c2_i32_310 : i32
    %cst_311 = arith.constant 0.000000e+00 : f32
    %538 = vector.broadcast %cst_311 : f32 to vector<4x16xf32>
    %539 = arith.select %537, %535, %538 : vector<4x16xf32>
    %cst_312 = arith.constant 0.000000e+00 : f32
    %540 = vector.broadcast %cst_312 : f32 to vector<4x1xf32>
    %541 = vector.extract_strided_slice %539 {offsets = [0, 0], sizes = [4, 15], strides = [1, 1]} : vector<4x16xf32> to vector<4x15xf32>
    %542 = tpu.concatenate %540, %541 in 1 : vector<4x1xf32>, vector<4x15xf32> -> vector<4x16xf32>
    %543 = vector.extract_strided_slice %539 {offsets = [0, 1], sizes = [4, 15], strides = [1, 1]} : vector<4x16xf32> to vector<4x15xf32>
    %544 = tpu.concatenate %543, %540 in 1 : vector<4x15xf32>, vector<4x1xf32> -> vector<4x16xf32>
    %545 = tpu.concatenate %542, %539, %544 in 0 : vector<4x16xf32>, vector<4x16xf32>, vector<4x16xf32> -> vector<12x16xf32>
    %c2_313 = arith.constant 2 : index
    %c0_314 = arith.constant 0 : index
    %c0_315 = arith.constant 0 : index
    %546 = vector.load %arg3[%c2_313, %c0_314, %c0_315] : memref<3x8x12xbf16, #tpu.memory_space<vmem>>, vector<1x8x12xbf16>
    %547 = vector.shape_cast %546 : vector<1x8x12xbf16> to vector<8x12xbf16>
    %548 = arith.truncf %545 : vector<12x16xf32> to vector<12x16xbf16>
    %cst_316 = arith.constant dense<0.000000e+00> : vector<8x16xf32>
    %549 = tpu.matmul %547, %548, %cst_316 {dimension_numbers = #tpu.dot_dimension_numbers<[1], [0], [0], [1], [0, 0, 1, 1], [], []>} : vector<8x12xbf16>, vector<12x16xbf16>, vector<8x16xf32> -> vector<8x16xf32>
    %550 = arith.addf %528, %549 : vector<8x16xf32>
    %551 = vector.extract_strided_slice %550 {offsets = [0, 0], sizes = [2, 16], strides = [1, 1]} : vector<8x16xf32> to vector<2x16xf32>
    %552 = vector.extract_strided_slice %550 {offsets = [2, 0], sizes = [2, 16], strides = [1, 1]} : vector<8x16xf32> to vector<2x16xf32>
    %cst_317 = arith.constant dense<0.000000e+00> : vector<2x32xf32>
    %553 = tpu.matmul %551, %6, %cst_317 {dimension_numbers = #tpu.dot_dimension_numbers<[1], [0], [0], [1], [0, 0, 1, 1], [], []>} : vector<2x16xf32>, vector<16x32xf32>, vector<2x32xf32> -> vector<2x32xf32>
    %cst_318 = arith.constant dense<0.000000e+00> : vector<2x32xf32>
    %554 = tpu.matmul %552, %13, %cst_318 {dimension_numbers = #tpu.dot_dimension_numbers<[1], [0], [0], [1], [0, 0, 1, 1], [], []>} : vector<2x16xf32>, vector<16x32xf32>, vector<2x32xf32> -> vector<2x32xf32>
    %555 = arith.addf %553, %554 : vector<2x32xf32>
    %c0_319 = arith.constant 0 : index
    %c0_320 = arith.constant 0 : index
    %c14 = arith.constant 14 : index
    %c0_321 = arith.constant 0 : index
    %556 = vector.load %arg4[%c0_319, %c0_320, %c14, %c0_321] : memref<1x2x16x32xf32, #tpu.memory_space<vmem>>, vector<1x2x1x32xf32>
    %557 = vector.shape_cast %556 : vector<1x2x1x32xf32> to vector<2x32xf32>
    %558 = vector.shape_cast %555 : vector<2x32xf32> to vector<1x2x1x32xf32>
    tpu.vector_store %arg4[%c0_319, %c0_320, %c14, %c0_321], %558 {strides = array<i32>} : memref<1x2x16x32xf32, #tpu.memory_space<vmem>>, vector<1x2x1x32xf32>,
    %559 = vector.extract_strided_slice %550 {offsets = [4, 0], sizes = [2, 16], strides = [1, 1]} : vector<8x16xf32> to vector<2x16xf32>
    %560 = vector.extract_strided_slice %550 {offsets = [6, 0], sizes = [2, 16], strides = [1, 1]} : vector<8x16xf32> to vector<2x16xf32>
    %cst_322 = arith.constant dense<0.000000e+00> : vector<2x32xf32>
    %561 = tpu.matmul %559, %6, %cst_322 {dimension_numbers = #tpu.dot_dimension_numbers<[1], [0], [0], [1], [0, 0, 1, 1], [], []>} : vector<2x16xf32>, vector<16x32xf32>, vector<2x32xf32> -> vector<2x32xf32>
    %cst_323 = arith.constant dense<0.000000e+00> : vector<2x32xf32>
    %562 = tpu.matmul %560, %13, %cst_323 {dimension_numbers = #tpu.dot_dimension_numbers<[1], [0], [0], [1], [0, 0, 1, 1], [], []>} : vector<2x16xf32>, vector<16x32xf32>, vector<2x32xf32> -> vector<2x32xf32>
    %563 = arith.addf %561, %562 : vector<2x32xf32>
    %c0_324 = arith.constant 0 : index
    %c0_325 = arith.constant 0 : index
    %c15 = arith.constant 15 : index
    %c0_326 = arith.constant 0 : index
    %564 = vector.load %arg4[%c0_324, %c0_325, %c15, %c0_326] : memref<1x2x16x32xf32, #tpu.memory_space<vmem>>, vector<1x2x1x32xf32>
    %565 = vector.shape_cast %564 : vector<1x2x1x32xf32> to vector<2x32xf32>
    %566 = vector.shape_cast %563 : vector<2x32xf32> to vector<1x2x1x32xf32>
    tpu.vector_store %arg4[%c0_324, %c0_325, %c15, %c0_326], %566 {strides = array<i32>} : memref<1x2x16x32xf32, #tpu.memory_space<vmem>>, vector<1x2x1x32xf32>,
    return
  }
  func.func @transform_0(%arg0: i32, %arg1: i32) -> (i32, i32, i32, i32) {
    %c0_i32 = arith.constant 0 : i32
    %c0_i32_0 = arith.constant 0 : i32
    %c0_i32_1 = arith.constant 0 : i32
    %c0_i32_2 = arith.constant 0 : i32
    return %arg0, %c0_i32, %c0_i32_0, %c0_i32_1 : i32, i32, i32, i32
  }
  func.func @transform_1(%arg0: i32, %arg1: i32) -> (i32, i32, i32) {
    %c0_i32 = arith.constant 0 : i32
    %c0_i32_0 = arith.constant 0 : i32
    %c0_i32_1 = arith.constant 0 : i32
    %c0_i32_2 = arith.constant 0 : i32
    return %c0_i32, %c0_i32_0, %c0_i32_1 : i32, i32, i32
  }
  func.func @transform_2(%arg0: i32, %arg1: i32) -> (i32, i32, i32, i32) {
    %c0_i32 = arith.constant 0 : i32
    %c0_i32_0 = arith.constant 0 : i32
    %c0_i32_1 = arith.constant 0 : i32
    return %arg0, %c0_i32, %arg1, %c0_i32_0 : i32, i32, i32, i32
  }
}

</mosaic_0001>

<bundles_post_ra>
// kernel: upsample_forward.1
= control target key start
LH: loop header
LB: loop body
LE: loop exit
PB: predicated region body
PF: predicated region fallthrough
CT: control target
= control target key end

     0   :  { %7 = vsyncpa [#allocation3], 0  ;;  %s7634_s0 = inlined_call_operand.vmem [shape: f32[2,4,16,16], index: 0, kind: input, shape index: {}]   ;;  %s7635_s1 = inlined_call_operand.vmem [shape: bf16[3,8,12], index: 1, kind: input, shape index: {}]   ;;  %s7636_s2 = inlined_call_operand.hbm [shape: f32[2,2,32,32], index: 2, kind: output, shape index: {}]  }
   0x1   :  { %9 = vsyncpa [#allocation3 + $0x1], 0  ;;  %s6189_s9 = smov 0   ;;  %s6191_s10 = smov 0  }
   0x2   :  { %s6193_s11 = smov 0   ;;  %s6195_s12 = smov 0  }
   0x3   :  { %s6197_s13 = smov 0   ;;  %s6199_s14 = smov 0  }
   0x4   :  { %s6201_s15 = smov 0   ;;  %s6203_s16 = smov 0  }
   0x5 LB: > { %s5053_s17 = sadd.s32 4294967295, %s6158_s16   ;;  %s5054_s18 = sadd.s32 4294967294, %s6158_s16   ;;  %s6158_s16 = sphi %s6203_s16, %s15_s16   ;;  %s6154_s15 = sphi %s6201_s15, %s7731_s15   ;;  %s6150_s14 = sphi %s6199_s14, %s7730_s14   ;;  %s6146_s13 = sphi %s6197_s13, %s7729_s13   ;;  %s6142_s12 = sphi %s6195_s12, %s7728_s12   ;;  %s6138_s11 = sphi %s6193_s11, %s7727_s11   ;;  %s6134_s10 = sphi %s6191_s10, %s7726_s10   ;;  %s6130_s9 = sphi %s6189_s9, %s7725_s9  }
   0x6   : > { %s24_s19 = sadd.s32 1, %s6150_s14  ;;  %s27_s20 = sadd.s32 1, %s6154_s15 }
   0x7   : > { %p25_p0 = scmp.ge.s32.totalorder %s24_s19, 2  ;;  %p93_p1 = scmp.ne.s32.totalorder %s6138_s11, %s6134_s10 }
   0x8   : > { %p94_p2 = scmp.eq.s32.totalorder %s5053_s17, 3  ;;  %p99_p5 = scmp.ne.s32.totalorder %s6134_s10, %s6130_s9 }
   0x9   : > { %s7733_s19 = smov (%p25_p0, %s24_s19), 0  ;;  %s7735_s20 = smov (!%p25_p0, %s27_s20), %s6154_s15 }
   0xa   : > { %s79_s21 = ssub.s32 %s6150_s14, %s7733_s19  ;;  %p6240_p3 = por %p94_p2, %p93_p1 }
   0xb   : > { %p29_p4 = scmp.ge.s32.totalorder %s7735_s20, 2  ;;  %p100_p6 = scmp.eq.s32.totalorder %s5054_s18, 3 }
   0xc   : > { %p5057_p7 = scmp.ge.s32.totalorder %s6158_s16, 1  ;;  %p129_p9 = scmp.lt.s32.totalorder %s6158_s16, 5 }
   0xd   : > { %s7737_s20 = smov (%p29_p4, %s7735_s20), 0  ;;  %p6249_p8 = por %p100_p6, %p99_p5 }
   0xe   : > { %s78_s24 = ssub.s32 %s6154_s15, %s7737_s20  ;;  %s83_s25 = sadd.s32 1, %s6138_s11 }
   0xf   : > { %s80_s26 = sor.u32 %s79_s21, %s78_s24  ;;  %p130_p10 = pnand %p5057_p7, %p129_p9 }
  0x10   : > { %p81_p11 = scmp.eq.s32.totalorder %s80_s26, 0  ;;  %p151_p12 = scmp.lt.s32.totalorder (!%p130_p10), %s6146_s13, 1  ;;  %vm201_vm0 = vcmask (!%p130_p10), 1041409   ;;  %vm204_vm1 = vcmask (!%p130_p10), 1042434   ;;  %vm7640_vm2 = vcmask (!%p130_p10), 1043459   ;;  %vm221_vm3 = vcmask (!%p130_p10), 1045509  }
  0x11   : > { %133 = sbr.rel (%p130_p10) target bundleno = 2483 (0x9b3), region = 28  ;;  %s6262_s28 = sshll.u32 (!%p130_p10), %s6142_s12, 3  ;;  %vm224_vm4 = vcmask (!%p130_p10), 1046534   ;;  %vm227_vm5 = vcmask (!%p130_p10), 1047559   ;;  %v6160_v3 = vmov (!%p130_p10), 0.0   ;;  %vm6163_vm7 = vmmov (!%p130_p10), 0  }
  0x12   : > { %s6258_s27 = scalar_select %p81_p11, %s6138_s11, %s83_s25  }
  0x13   : > { %s5066_s29 = sadd.s32 (!%p130_p10), 4294967295, %s6262_s28  ;;  %p188_p0 = scmp.gt.s32.totalorder (!%p130_p10), %s6142_s12, 0  ;;  %5441 = vmatprep.subr.bf16.mxu0 (!%p130_p10), %v6160_v3  ;;  %5443 = vmatprep.mubr.msk.bf16.mxu0 (!%p130_p10), %vm6163_vm7, %v6160_v3  ;;  %vm212_vm8 = vcmask (!%p130_p10), 7168   ;;  %vm217_vm9 = vcmask (!%p130_p10), 121856   ;;  %vm230_vm10 = vcmask (!%p130_p10), 1043456   ;;  %vm7638_vm11 = vcmask (!%p130_p10), 1045504  }
  0x14   : > { %p6271_p13 = scmp.gt.s32.totalorder (!%p130_p10), %s5066_s29, 0  ;;  %s6161_s21 = smov (!%p130_p10), 1   ;;  %5463 = vmatprep.mubr.msk.f32.mxu1 (!%p130_p10), %vm6163_vm7, %v6160_v3  ;;  %vm7637_vm12 = vcmask (!%p130_p10), 97280  }
  0x15   : > { %s6162_s24 = smov (!%p130_p10), 127   ;;  %s4468_s4 = sadd.s32 (!%p130_p10), 8, %s6262_s28 }
  0x16   : > { %p4469_p1 = scmp.lt.s32.totalorder (!%p130_p10), %s4468_s4, 15 }
  0x18   : > { %s152_s30 = scalar_select %p151_p12, %s6146_s13, 1 }
  0x19   : > { %s7739_s29 = smov (!%p6271_p13, %s5066_s29), 0  ;;  %s7741_s4 = smov (!%p4469_p1, %s4468_s4), 15 }
  0x1a   : > { %s5296_s3 = sshll.u32 %s152_s30, 6 }
  0x1b   : > { %s6269_s6 = scalar_lea.vmem %s7634_s0, %s5296_s3 }
  0x1c   : > { %s6277_s8 = scalar_lea.vmem %s6269_s6, %s6262_s28  ;;  %s183_s18 = scalar_lea.vmem %s6269_s6, %s7739_s29 }
  0x1d   : > { %v235_v0 = vld [vmem:[%s6277_s8] sm:$0x1]  ;;  %v236_v1 = vld [vmem:[%s6277_s8 + $0x10] sm:$0x1]  ;;  %v5071_v12 = vld [vmem:[%s6277_s8 + $0x1] sm:$0x1]  ;;  %s4471_s5 = scalar_lea.vmem %s6269_s6, %s7741_s4 }
  0x1e   : > { %v237_v2 = vld [vmem:[%s6277_s8 + $0x20] sm:$0x1]  ;;  %v238_v4 = vld [vmem:[%s6277_s8 + $0x30] sm:$0x1]  ;;  %v243_v5 = vrot.slane %v236_v1, 7  ;;  %v257_v7 = vrot.slane %v235_v0, 4 }
  0x1f   : > { %v245_v6 = vrot.slane %v237_v2, 6  ;;  %v258_v8 = vrot.slane %v236_v1, 3  ;;  %v247_v9 = vrot.slane %v238_v4, 5  ;;  %v260_v10 = vrot.slane %v237_v2, 2  ;;  %s189_s17 = scalar_select %p188_p0, 1, 0 }
  0x20   : > { %v262_v11 = vrot.slane %v238_v4, 1  ;;  %v244_v13 = vsel %vm201_vm0, %v243_v5, %v235_v0  ;;  %v5072_v14 = vld [vmem:[%s6277_s8 + $0x11] sm:$0x1]  ;;  %v5073_v15 = vld [vmem:[%s6277_s8 + $0x21] sm:$0x1]  ;;  %v387_v21 = vrot.slane %v5071_v12, 4 }
  0x21   : > { %v259_v16 = vsel %vm221_vm3, %v258_v8, %v257_v7  ;;  %v246_v17 = vsel %vm204_vm1, %v245_v6, %v244_v13  ;;  %v5074_v18 = vld [vmem:[%s6277_s8 + $0x31] sm:$0x1]  ;;  %v373_v19 = vrot.slane %v5072_v14, 7  ;;  %v375_v20 = vrot.slane %v5073_v15, 6  ;;  %v184_v23 = vld [vmem:[%s183_s18] sm:$0x1] }
  0x22   : > { %v248_v22 = vsel %vm7640_vm2, %v247_v9, %v246_v17  ;;  %v185_v24 = vld [vmem:[%s183_s18 + $0x10] sm:$0x1]  ;;  %v186_v25 = vld [vmem:[%s183_s18 + $0x20] sm:$0x1]  ;;  %v190_v26 = vstv %s189_s17  ;;  %v261_v27 = vsel %vm224_vm4, %v260_v10, %v259_v16  ;;  %v377_v30 = vrot.slane %v5074_v18, 5  ;;  %s148_s29 = sand.u32 1, %s6134_s10  }
  0x23   : > { %249 = vrot.lane.b32.xlu0 %v248_v22, %s6161_s21  ;;  %v187_v28 = vld [vmem:[%s183_s18 + $0x30] sm:$0x1]  ;;  %vm191_vm6 = vcmp.eq.s32.totalorder %v190_v26, 1  ;;  %v374_v29 = vsel %vm201_vm0, %v373_v19, %v5071_v12  ;;  %v388_v31 = vrot.slane %v5072_v14, 3  ;;  %v390_v46 = vrot.slane %v5073_v15, 2  ;;  %s5058_s30 = sshll.u32 %s148_s29, 5 }
  0x24   : > { %v192_v32 = vsel %vm191_vm6, %v184_v23, 0.0  ;;  %v193_v33 = vsel %vm191_vm6, %v185_v24, 0.0  ;;  %v194_v34 = vsel %vm191_vm6, %v186_v25, 0.0  ;;  %v195_v35 = vsel %vm191_vm6, %v187_v28, 0.0  ;;  %v6325_v57 = vld [vmem:[%s6277_s8 + $0x1] sm:$0x1] }
  0x25   : > { %v200_v36 = vrot.slane %v193_v33, 7  ;;  %v203_v37 = vrot.slane %v194_v34, 6  ;;  %v206_v38 = vrot.slane %v195_v35, 5  ;;  %v219_v39 = vrot.slane %v192_v32, 4  ;;  %v6328_v58 = vld [vmem:[%s6277_s8 + $0x11] sm:$0x1] }
  0x26   : > { %v220_v40 = vrot.slane %v193_v33, 3  ;;  %v223_v41 = vrot.slane %v194_v34, 2  ;;  %v226_v42 = vrot.slane %v195_v35, 1  ;;  %v376_v43 = vsel %vm204_vm1, %v375_v20, %v374_v29  ;;  %v6331_v59 = vld [vmem:[%s6277_s8 + $0x21] sm:$0x1]  ;;  %s6695_s3 = scalar_lea.vmem [#allocation2], %s5058_s30 }
  0x27   : > { %v202_v44 = vsel %vm201_vm0, %v200_v36, %v192_v32  ;;  %253 = vrot.lane.b32.xlu0 %v248_v22, %s6162_s24  ;;  %v378_v45 = vsel %vm7640_vm2, %v377_v30, %v376_v43  ;;  %v392_v47 = vrot.slane %v5074_v18, 1  ;;  %v263_v49 = vsel %vm227_vm5, %v262_v11, %v261_v27  ;;  %v6334_v60 = vld [vmem:[%s6277_s8 + $0x31] sm:$0x1]  ;;  %v6340_v0 = vld [vmem:[%s6277_s8] sm:$0x1]  ;;  %s4476_s28 = sadd.s32 1, %s6142_s12 }
  0x28   : > { %v205_v48 = vsel %vm204_vm1, %v203_v37, %v202_v44  ;;  %v222_v50 = vsel %vm221_vm3, %v220_v40, %v219_v39  ;;  %v389_v53 = vsel %vm221_vm3, %v388_v31, %v387_v21  ;;  %v835_v61 = vrot.slane %v6328_v58, 7  ;;  %v6345_v2 = vld [vmem:[%s6277_s8 + $0x10] sm:$0x1]  ;;  %v6348_v4 = vld [vmem:[%s6277_s8 + $0x20] sm:$0x1]  ;;  %p4477_p2 = scmp.lt.s32.totalorder %s4476_s28, 2 }
  0x29   : > { %v208_v51 = vsel %vm7640_vm2, %v206_v38, %v205_v48  ;;  %v225_v52 = vsel %vm224_vm4, %v223_v41, %v222_v50  ;;  %v391_v55 = vsel %vm224_vm4, %v390_v46, %v389_v53  ;;  %v837_v62 = vrot.slane %v6331_v59, 6  ;;  %v6351_v5 = vld [vmem:[%s6277_s8 + $0x30] sm:$0x1]  ;;  %v6360_v12 = vld [vmem:[%s6277_s8 + $0x2] sm:$0x1] }
  0x2a   : > { %209 = vrot.lane.b32.xlu1 %v208_v51, %s6161_s21  ;;  %v228_v54 = vsel %vm227_vm5, %v226_v42, %v225_v52  ;;  %v6320_v56 = vsel %vm227_vm5, %v392_v47, %v391_v55  ;;  %v839_v63 = vrot.slane %v6334_v60, 5  ;;  %v836_v1 = vsel %vm201_vm0, %v835_v61, %v6325_v57  ;;  %v6363_v13 = vld [vmem:[%s6277_s8 + $0x12] sm:$0x1]  ;;  %v6370_v15 = vld [vmem:[%s6277_s8 + $0x22] sm:$0x1] }
  0x2b   : > { %379 = vrot.lane.b32.xlu0 %v378_v45, %s6161_s21  ;;  %v6164_v6 = vmov 0.0|0.0   ;;  %v838_v7 = vsel %vm204_vm1, %v837_v62, %v836_v1  ;;  %v802_v8 = vrot.slane %v6345_v2, 7  ;;  %v804_v9 = vrot.slane %v6348_v4, 6  ;;  %v6373_v16 = vld [vmem:[%s6277_s8 + $0x32] sm:$0x1] }
  0x2c   : > { %5809 = vmatprep.subr.bf16.mxu1 %v6164_v6  ;;  %v806_v10 = vrot.slane %v6351_v5, 5  ;;  %v840_v11 = vsel %vm7640_vm2, %v839_v63, %v838_v7  ;;  %v962_v17 = vrot.slane %v6363_v13, 7  ;;  %v964_v19 = vrot.slane %v6370_v15, 6  ;;  %v5067_v34 = vld [vmem:[%s7635_s1 + $0x4] sm:$0xf] }
  0x2d   : > { %v803_v14 = vsel %vm201_vm0, %v802_v8, %v6340_v0  ;;  %v966_v20 = vrot.slane %v6373_v16, 5  ;;  %v232_v46 = vld [vmem:[%s7635_s1] sm:$0xf]  ;;  %v5075_v48 = vld [vmem:[%s7635_s1 + $0x8] sm:$0xf]  ;;  %v849_v1 = vrot.slane %v6325_v57, 4 }
  0x2e   : > { %214 = vrot.lane.b32.xlu1 %v208_v51, %s6162_s24  ;;  %v805_v18 = vsel %vm204_vm1, %v804_v9, %v803_v14  ;;  %v963_v22 = vsel %vm201_vm0, %v962_v17, %v6360_v12  ;;  %v6165_v62 = vmov 1.0|1.0   ;;  %v850_v7 = vrot.slane %v6328_v58, 3 }
  0x2f   : > { %841 = vrot.lane.b32.xlu0 %v840_v11, %s6161_s21  ;;  %v807_v21 = vsel %vm7640_vm2, %v806_v10, %v805_v18  ;;  %v965_v23 = vsel %vm204_vm1, %v964_v19, %v963_v22  ;;  %v852_v8 = vrot.slane %v6331_v59, 2  ;;  %v854_v9 = vrot.slane %v6334_v60, 1  ;;  %v6473_v22 = vld [vmem:[%s6277_s8 + $0x12] sm:$0x1] }
  0x30   : > { %v967_v24 = vsel %vm7640_vm2, %v966_v20, %v965_v23  ;;  %v851_v10 = vsel %vm221_vm3, %v850_v7, %v849_v1  ;;  %v816_v17 = vrot.slane %v6340_v0, 4  ;;  %v817_v57 = vrot.slane %v6345_v2, 3  ;;  %v6479_v23 = vld [vmem:[%s6277_s8 + $0x32] sm:$0x1] }
  0x31   : > { %v819_v58 = vrot.slane %v6348_v4, 2  ;;  %v821_v59 = vrot.slane %v6351_v5, 1  ;;  %v976_v18 = vrot.slane %v6360_v12, 4  ;;  %v977_v19 = vrot.slane %v6363_v13, 3  ;;  %v6470_v13 = vld [vmem:[%s6277_s8 + $0x2] sm:$0x1] }
  0x32   : > { %383 = vrot.lane.b32.xlu1 %v378_v45, %s6162_s24  ;;  %v818_v60 = vsel %vm221_vm3, %v817_v57, %v816_v17  ;;  %v979_v0 = vrot.slane %v6370_v15, 2  ;;  %v981_v4 = vrot.slane %v6373_v16, 1  ;;  %v6476_v15 = vld [vmem:[%s6277_s8 + $0x22] sm:$0x1] }
  0x33   : > { %808 = vrot.lane.b32.xlu0 %v807_v21, %s6161_s21  ;;  %v820_v20 = vsel %vm224_vm4, %v819_v58, %v818_v60  ;;  %v978_v5 = vsel %vm221_vm3, %v977_v19, %v976_v18  ;;  %v1423_v16 = vrot.slane %v6476_v15, 6  ;;  %v5093_v19 = vld [vmem:[%s7635_s1 + $0x4] sm:$0xf] }
  0x34   : > { %v6461_v2 = vsel %vm227_vm5, %v821_v59, %v820_v20 }
  0x36   : > { %845 = vrot.lane.b32.xlu1 %v840_v11, %s6162_s24  ;;  %v853_v11 = vsel %vm224_vm4, %v852_v8, %v851_v10 }
  0x37   : > { %968 = vrot.lane.b32.xlu0 %v967_v24, %s6161_s21  ;;  %v6449_v14 = vsel %vm227_vm5, %v854_v9, %v853_v11 }
  0x3a   : > { %812 = vrot.lane.b32.xlu1 %v807_v21, %s6162_s24  ;;  %v980_v21 = vsel %vm224_vm4, %v979_v0, %v978_v5 }
  0x3b   : > { %v6467_v12 = vsel %vm227_vm5, %v981_v4, %v980_v21 }
  0x3e   : > { %972 = vrot.lane.b32.xlu1 %v967_v24, %s6162_s24  ;;  %v1421_v24 = vrot.slane %v6473_v22, 7 }
  0x95   : > { %v250_v25 = vpop.permute.xlu0 %249 }
  0x96   : > { %v252_v26 = vsel %vm212_vm8, 0.0, %v250_v25  ;;  %v1425_v25 = vrot.slane %v6479_v23, 5 }
  0x97   : > { %v265_v28 = vsel %vm230_vm10, %v252_v26, %v263_v49  ;;  %v158_v49 = vlaneseq  ;;  %v6485_v26 = vld [vmem:[%s6277_s8 + $0x1] sm:$0x1] }
  0x99   : > { %v254_v27 = vpop.permute.xlu0 %253  ;;  %v6422_v50 = vshrl.u32 %v158_v49, 7 }
  0x9a   : > { %v256_v29 = vsel %vm217_vm9, %v254_v27, 0.0  ;;  %v1422_v27 = vsel %vm201_vm0, %v1421_v24, %v6470_v13 }
  0x9b   : > { %v268_v30 = vpack.c.bf16 %v256_v29, %v265_v28  ;;  %v160_v51 = vadd.s32 8, %v6422_v50  ;;  %v163_v52 = vmul.u32 2, %v6422_v50  ;;  %v6490_v28 = vld [vmem:[%s6277_s8 + $0x11] sm:$0x1]  ;;  %v6493_v29 = vld [vmem:[%s6277_s8 + $0x21] sm:$0x1] }
  0x9c   : > { %v210_v31 = vpop.permute.xlu1 %209 }
  0x9d   : > { %v213_v32 = vsel %vm212_vm8, 0.0, %v210_v31  ;;  %v275_v33 = vsel %vm7638_vm11, %v268_v30, 0  ;;  %v380_v35 = vpop.permute.xlu0 %379  ;;  %v164_v53 = vmul.u32 2, %v160_v51  ;;  %v171_v55 = vadd.s32 1, %v163_v52  ;;  %v6496_v30 = vld [vmem:[%s6277_s8 + $0x31] sm:$0x1] }
  0x9e   : > { %5442 = vmatpush3.bf16.msra.mxu0 %v275_v33  ;;  %v231_v36 = vsel %vm230_vm10, %v213_v32, %v228_v54  ;;  %v382_v39 = vsel %vm212_vm8, 0.0, %v380_v35  ;;  %v162_v54 = vand.u32 127, %v158_v49  ;;  %v1424_v31 = vsel %vm204_vm1, %v1423_v16, %v1422_v27  ;;  %v825_v16 = vld [vmem:[%s7635_s1] sm:$0xf] }
  0x9f   : > { %5447 = vmatprep.subr.bf16.mxu0 %v6160_v3  ;;  %v395_v42 = vsel %vm230_vm10, %v382_v39, %v6320_v56  ;;  %v172_v56 = vadd.s32 1, %v164_v53  ;;  %v1388_v32 = vrot.slane %v6490_v28, 7  ;;  %v1390_v33 = vrot.slane %v6493_v29, 6  ;;  %v6514_v39 = vld [vmem:[%s6277_s8 + $0x23] sm:$0x1] }
  0xa0   : > { %v215_v37 = vpop.permute.xlu1 %214  ;;  %vm173_vm13 = vcmp.eq.s32.totalorder %v162_v54, %v171_v55  ;;  %vm165_vm6 = vcmp.eq.s32.totalorder %v162_v54, %v163_v52  ;;  %v1426_v35 = vsel %vm7640_vm2, %v1425_v25, %v1424_v31  ;;  %v1435_v27 = vrot.slane %v6470_v13, 4 }
  0xa1   : > { %v218_v38 = vsel %vm217_vm9, %v215_v37, 0.0  ;;  %5444 = vmatmul.mubr.msk.bf16.vlgmr.msra.gmra.mrb[0].mxu0 %vm7637_vm12, %v5067_v34  ;;  %vm174_vm14 = vcmp.eq.s32.totalorder %v162_v54, %v172_v56  ;;  %v1392_v34 = vrot.slane %v6496_v30, 5  ;;  %v6507_v37 = vld [vmem:[%s6277_s8 + $0x13] sm:$0x1]  ;;  %1427 = vrot.lane.b32.xlu0 %v1426_v35, %s6161_s21  ;;  %v842_v55 = vpop.permute.xlu0 %841  ;;  %v1436_v31 = vrot.slane %v6473_v22, 3 }
  0xa2   : > { %v233_v40 = vpack.c.bf16 %v218_v38, %v231_v36  ;;  %5449 = vmatprep.mubr.msk.bf16.mxu0 %vm6163_vm7, %v6160_v3  ;;  %vm6426_vm15 = vmpackc.low %vm174_vm14, %vm173_vm13  ;;  %v6504_v36 = vld [vmem:[%s6277_s8 + $0x3] sm:$0x1]  ;;  %1431 = vrot.lane.b32.xlu1 %v1426_v35, %s6162_s24  ;;  %v1389_v38 = vsel %vm201_vm0, %v1388_v32, %v6485_v26  ;;  %v844_v56 = vsel %vm212_vm8, 0.0, %v842_v55  ;;  %vm7648_vm13 = vcmask 1045504   ;;  %v6651_v55 = vld [vmem:[%s6277_s8 + $0x32] sm:$0x1] }
  0xa3   : > { %5811 = vmatpush3.bf16.msk.msra.mxu1 %vm6426_vm15, %v6165_v62  ;;  %v857_v9 = vsel %vm230_vm10, %v844_v56, %v6449_v14  ;;  %vm7649_vm14 = vmmov %vm7648_vm13  ;;  %v1438_v32 = vrot.slane %v6476_v15, 2  ;;  %v1403_v13 = vrot.slane %v6490_v28, 3  ;;  %v1405_v22 = vrot.slane %v6493_v29, 2 }
  0xa4   : > { %v321_v41 = vsel %vm7638_vm11, %v233_v40, 0  ;;  %v384_v43 = vpop.permute.xlu1 %383  ;;  %5812 = vmatprep.subr.bf16.mxu1 %v6164_v6  ;;  %v6517_v40 = vld [vmem:[%s6277_s8 + $0x33] sm:$0x1]  ;;  %v1407_v15 = vrot.slane %v6496_v30, 1 }
  0xa5   : > { %5448 = vmatpush3.bf16.msra.mxu0 %v321_v41  ;;  %v386_v44 = vsel %vm217_vm9, %v384_v43, 0.0  ;;  %v1548_v41 = vrot.slane %v6507_v37, 7  ;;  %v1550_v43 = vrot.slane %v6514_v39, 6  ;;  %v809_v7 = vpop.permute.xlu0 %808  ;;  %v1567_v29 = vrot.slane %v6517_v40, 1 }
  0xa6   : > { %5453 = vmatprep.subr.bf16.mxu0 %v6160_v3  ;;  %v398_v45 = vpack.c.bf16 %v386_v44, %v395_v42  ;;  %v1391_v42 = vsel %vm204_vm1, %v1390_v33, %v1389_v38  ;;  %v1552_v44 = vrot.slane %v6517_v40, 5  ;;  %v811_v11 = vsel %vm212_vm8, 0.0, %v809_v7 }
  0xa7   : > { %v824_v14 = vsel %vm230_vm10, %v811_v11, %v6461_v2  ;;  %v1440_v33 = vrot.slane %v6479_v23, 1  ;;  %v6662_v11 = vld [vmem:[%s6277_s8 + $0x14] sm:$0x1] }
  0xa8   : > { %v403_v47 = vsel %vm7638_vm11, %v398_v45, 0  ;;  %v1393_v45 = vsel %vm7640_vm2, %v1392_v34, %v1391_v42  ;;  %v846_v1 = vpop.permute.xlu1 %845  ;;  %v1437_v34 = vsel %vm221_vm3, %v1436_v31, %v1435_v27  ;;  %v1562_v42 = vrot.slane %v6504_v36, 4 }
  0xa9   : > { %1394 = vrot.lane.b32.xlu0 %v1393_v45, %s6161_s21  ;;  %1398 = vrot.lane.b32.xlu1 %v1393_v45, %s6162_s24  ;;  %v848_v10 = vsel %vm217_vm9, %v846_v1, 0.0  ;;  %v969_v20 = vpop.permute.xlu0 %968  ;;  %v1439_v35 = vsel %vm224_vm4, %v1438_v32, %v1437_v34 }
  0xaa   : > { %v859_v57 = vpack.c.bf16 %v848_v10, %v857_v9  ;;  %v971_v2 = vsel %vm212_vm8, 0.0, %v969_v20  ;;  %v6604_v38 = vsel %vm227_vm5, %v1440_v33, %v1439_v35  ;;  %v6659_v10 = vld [vmem:[%s6277_s8 + $0x4] sm:$0x1] }
  0xab   : > { %v984_v5 = vsel %vm230_vm10, %v971_v2, %v6467_v12  ;;  %v5101_v12 = vld [vmem:[%s7635_s1 + $0x8] sm:$0xf] }
  0xac   : > { %v813_v17 = vpop.permute.xlu1 %812  ;;  %v864_v18 = vsel %vm7648_vm13, %v859_v57, 0  ;;  %v6669_v57 = vld [vmem:[%s6277_s8 + $0x24] sm:$0x1] }
  0xad   : > { %5450 = vmatmul.mubr.msk.bf16.vlgmr.msra.gmra.mrb[0].mxu0 %vm7637_vm12, %v232_v46  ;;  %v1549_v46 = vsel %vm201_vm0, %v1548_v41, %v6504_v36  ;;  %v815_v58 = vsel %vm217_vm9, %v813_v17, 0.0  ;;  %v1402_v41 = vrot.slane %v6485_v26, 4  ;;  %v1565_v26 = vrot.slane %v6514_v39, 2  ;;  %v6631_v39 = vld [vmem:[%s6277_s8 + $0x23] sm:$0x1] }
  0xae   : > { %5454 = vmatpush3.bf16.msra.mxu0 %v403_v47  ;;  %5455 = vmatprep.mubr.msk.bf16.mxu0 %vm6163_vm7, %v6160_v3  ;;  %v1551_v47 = vsel %vm204_vm1, %v1550_v43, %v1549_v46  ;;  %v826_v60 = vpack.c.bf16 %v815_v58, %v824_v14  ;;  %v1563_v43 = vrot.slane %v6507_v37, 3  ;;  %v6625_v37 = vld [vmem:[%s6277_s8 + $0x3] sm:$0x1]  ;;  %v6628_v46 = vld [vmem:[%s6277_s8 + $0x13] sm:$0x1]  ;;  %v2009_v40 = vrot.slane %v6631_v39, 6 }
  0xaf   : > { %5821 = vmatprep.subr.bf16.mxu0 %v6164_v6  ;;  %v1404_v23 = vsel %vm221_vm3, %v1403_v13, %v1402_v41  ;;  %v6672_v14 = vld [vmem:[%s6277_s8 + $0x34] sm:$0x1]  ;;  %v2134_v58 = vrot.slane %v6662_v11, 7 }
  0xb0   : > { %v910_v0 = vsel %vm7649_vm14, %v826_v60, 0  ;;  %v973_v4 = vpop.permute.xlu1 %972  ;;  %v1564_v30 = vsel %vm221_vm3, %v1563_v43, %v1562_v42  ;;  %v2136_v60 = vrot.slane %v6669_v57, 6 }
  0xb1   : > { %v975_v21 = vsel %vm217_vm9, %v973_v4, 0.0  ;;  %v1566_v45 = vsel %vm224_vm4, %v1565_v26, %v1564_v30  ;;  %v2135_v20 = vsel %vm201_vm0, %v2134_v58, %v6659_v10  ;;  %v6166_v4 = vmov 1966171168  }
  0xb2   : > { %v986_v24 = vpack.c.bf16 %v975_v21, %v984_v5  ;;  %v6622_v36 = vsel %vm227_vm5, %v1567_v29, %v1566_v45  ;;  %v595_v5 = vunpack.c.l.s4 %v6166_v4  ;;  %v2021_v4 = vrot.slane %v6625_v37, 4 }
  0xb4   : > { %v991_v25 = vsel %vm7648_vm13, %v986_v24, 0  ;;  %v596_v21 = vunpack.c.0.s8 %v595_v5  ;;  %vm7639_vm13 = vcmask 253952   ;;  %v2022_v5 = vrot.slane %v6628_v46, 3 }
  0xb6   : > { %v6688_v24 = vsub.s32 %v596_v21, %v6422_v50  ;;  %v2024_v21 = vrot.slane %v6631_v39, 2  ;;  %v1993_v39 = vrot.slane %v6651_v55, 1 }
  0xb9   : > { %5456 = vmatmul.mubr.msk.bf16.vlgmr.msra.gmra.mrb[0].mxu0 %vm7637_vm12, %v5075_v48  ;;  %vm166_vm12 = vcmp.eq.s32.totalorder %v162_v54, %v164_v53  ;;  %v1553_v48 = vsel %vm7640_vm2, %v1552_v44, %v1551_v47  ;;  %v1406_v44 = vsel %vm224_vm4, %v1405_v22, %v1404_v23  ;;  %v6634_v47 = vld [vmem:[%s6277_s8 + $0x33] sm:$0x1] }
  0xba   : > { %5509 = vmatprep.mubr.msk.f32.mxu0 %vm6163_vm7, %v6160_v3  ;;  %5823 = vmatpush3.bf16.msk.msra.mxu0 %vm6426_vm15, %v6165_v62  ;;  %vm6438_vm11 = vmpackc.low %vm166_vm12, %vm165_vm6  ;;  %vm448_vm12 = vcmask 130048   ;;  %vm7650_vm6 = vcmask 97280   ;;  %v6616_v28 = vsel %vm227_vm5, %v1407_v15, %v1406_v44 }
  0xbb   : > { %5824 = vmatprep.subr.bf16.mxu0 %v6164_v6  ;;  %1554 = vrot.lane.b32.xlu0 %v1553_v48, %s6161_s21  ;;  %vm7651_vm14 = vmmov %vm7650_vm6 }
  0xbc   : > { %1558 = vrot.lane.b32.xlu1 %v1553_v48, %s6162_s24  ;;  %v2007_v48 = vrot.slane %v6628_v46, 7 }
 0x113   : > { %v1428_v44 = vpop.permute.xlu0 %1427 }
 0x114   : > { %v1430_v26 = vsel %vm212_vm8, 0.0, %v1428_v44  ;;  %v1432_v29 = vpop.permute.xlu1 %1431  ;;  %v6826_v44 = vld [vmem:[%s6277_s8 + $0x33] sm:$0x1] }
 0x11b   : > { %v1395_v30 = vpop.permute.xlu0 %1394 }
 0x12d   : > { %v1555_v58 = vpop.permute.xlu0 %1554 }
 0x18c   : > { %v439_v49 = vpop.f32.mrb[0].mxu0 }
 0x18d   : > { %v447_v51 = vrot.slane %v439_v49, 2  ;;  %v5457_v52 = vpop.f32.mrb[1].mxu0  ;;  %v621_v8 = vrot.slane %v439_v49, 6  ;;  %v694_v59 = vrot.slane %v439_v49, 4 }
 0x18e   : > { %v442_v53 = vpop.f32.mrb[2].mxu0  ;;  %v2008_v52 = vsel %vm201_vm0, %v2007_v48, %v6625_v37  ;;  %v1443_v48 = vsel %vm230_vm10, %v1430_v26, %v6604_v38 }
 0x18f   : > { %v5458_v54 = vpop.f32.mrb[3].mxu0  ;;  %5464 = vmatmul.mubr.msk.f32.vlgmr.msra.gmra.mrb[0].mxu1 %vm448_vm12, %v447_v51  ;;  %v6640_v51 = vld [vmem:[%s6277_s8 + $0x2] sm:$0x1]  ;;  %v6645_v53 = vld [vmem:[%s6277_s8 + $0x12] sm:$0x1]  ;;  %v2010_v56 = vsel %vm204_vm1, %v2009_v40, %v2008_v52  ;;  %v1434_v40 = vsel %vm217_vm9, %v1432_v29, 0.0  ;;  %v1399_v52 = vpop.permute.xlu1 %1398 }
 0x190   : > { %5814 = vmatpush3.bf16.msk.msra.mxu1 %vm6438_vm11, %v6165_v62  ;;  %5470 = vmatprep.mubr.msk.f32.mxu1 %vm6163_vm7, %v6160_v3  ;;  %v6648_v54 = vld [vmem:[%s6277_s8 + $0x22] sm:$0x1]  ;;  %v1974_v1 = vrot.slane %v6645_v53, 7  ;;  %v1989_v37 = vrot.slane %v6645_v53, 3 }
 0x191   : > { %5815 = vmatprep.subr.bf16.mxu1 %v6164_v6  ;;  %v1976_v7 = vrot.slane %v6648_v54, 6  ;;  %v1991_v46 = vrot.slane %v6648_v54, 2  ;;  %v2153_v54 = vrot.slane %v6672_v14, 1 }
 0x192   : > { %v1975_v17 = vsel %vm201_vm0, %v1974_v1, %v6640_v51  ;;  %v1401_v1 = vsel %vm217_vm9, %v1399_v52, 0.0 }
 0x197   : > { %5471 = vmatmul.mubr.msk.f32.vlgmr.msra.gmra.mrb[0].mxu1 %vm448_vm12, %v439_v49  ;;  %v2011_v49 = vrot.slane %v6634_v47, 5 }
 0x198   : > { %5817 = vmatpush3.bf16.msk.msra.mxu1 %vm6426_vm15, %v6165_v62  ;;  %5477 = vmatprep.mubr.msk.f32.mxu1 %vm6163_vm7, %v6160_v3 }
 0x199   : > { %5818 = vmatprep.subr.bf16.mxu1 %v6164_v6  ;;  %v2012_v9 = vsel %vm7640_vm2, %v2011_v49, %v2010_v56  ;;  %v1397_v49 = vsel %vm212_vm8, 0.0, %v1395_v30  ;;  %v1445_v56 = vpack.c.bf16 %v1434_v40, %v1443_v48  ;;  %v6834_v40 = vld [vmem:[%s6277_s8 + $0x5] sm:$0x1] }
 0x19a   : > { %2013 = vrot.lane.b32.xlu0 %v2012_v9, %s6161_s21  ;;  %2017 = vrot.lane.b32.xlu1 %v2012_v9, %s6162_s24  ;;  %v1410_v38 = vsel %vm230_vm10, %v1397_v49, %v6616_v28  ;;  %v6837_v49 = vld [vmem:[%s6277_s8 + $0x15] sm:$0x1] }
 0x19b   : > { %5478 = vmatmul.mubr.msk.f32.vlgmr.msra.gmra.mrb[2].mxu1 %vm448_vm12, %v621_v8  ;;  %v1978_v8 = vrot.slane %v6651_v55, 5 }
 0x19c   : > { %5820 = vmatpush3.bf16.msk.msra.mxu1 %vm6438_vm11, %v6165_v62  ;;  %5484 = vmatprep.mubr.msk.f32.mxu1 %vm6163_vm7, %v6160_v3 }
 0x19d   : > { %5487 = vmatprep.subr.bf16.mxu1 %v6160_v3 }
 0x1a3   : > { %5485 = vmatmul.mubr.msk.f32.vlgmr.msra.gmra.mrb[2].mxu1 %vm448_vm12, %v694_v59  ;;  %v1977_v59 = vsel %vm204_vm1, %v1976_v7, %v1975_v17  ;;  %v5123_v17 = vld [vmem:[%s7635_s1 + $0x4] sm:$0xf] }
 0x1a4   : > { %5488 = vmatpush3.bf16.msra.mxu1 %v864_v18  ;;  %5489 = vmatprep.mubr.msk.bf16.mxu1 %vm6163_vm7, %v6160_v3  ;;  %v2138_v18 = vrot.slane %v6672_v14, 5 }
 0x1a5   : > { %5493 = vmatprep.subr.bf16.mxu1 %v6160_v3 }
 0x1a7   : > { %5490 = vmatmul.mubr.msk.bf16.vlgmr.msra.gmra.mrb[4].mxu1 %vm7650_vm6, %v5093_v19  ;;  %v1979_v19 = vsel %vm7640_vm2, %v1978_v8, %v1977_v59  ;;  %v1412_v8 = vpack.c.bf16 %v1401_v1, %v1410_v38  ;;  %v1557_v59 = vsel %vm212_vm8, 0.0, %v1555_v58  ;;  %v6847_v38 = vld [vmem:[%s6277_s8 + $0x35] sm:$0x1]  ;;  %v2720_v1 = vrot.slane %v6837_v49, 7 }
 0x1a8   : > { %5494 = vmatpush3.bf16.msra.mxu1 %v910_v0  ;;  %5495 = vmatprep.mubr.msk.bf16.mxu1 %vm6163_vm7, %v6160_v3  ;;  %v2137_v0 = vsel %vm204_vm1, %v2136_v60, %v2135_v20  ;;  %v1559_v60 = vpop.permute.xlu1 %1558 }
 0x1a9   : > { %5499 = vmatprep.subr.bf16.mxu1 %v6160_v3  ;;  %1980 = vrot.lane.b32.xlu0 %v1979_v19, %s6161_s21  ;;  %v2139_v2 = vsel %vm7640_vm2, %v2138_v18, %v2137_v0  ;;  %v1570_v18 = vsel %vm230_vm10, %v1557_v59, %v6622_v36  ;;  %v1411_v0 = vld [vmem:[%s7635_s1] sm:$0xf]  ;;  %v5131_v36 = vld [vmem:[%s7635_s1 + $0x8] sm:$0xf]  ;;  %v2721_v58 = vsel %vm201_vm0, %v2720_v1, %v6834_v40 }
 0x1aa   : > { %1984 = vrot.lane.b32.xlu1 %v1979_v19, %s6162_s24  ;;  %v1561_v19 = vsel %vm217_vm9, %v1559_v60, 0.0 }
 0x1ab   : > { %v1572_v20 = vpack.c.bf16 %v1561_v19, %v1570_v18 }
 0x1ad   : > { %2140 = vrot.lane.b32.xlu0 %v2139_v2, %s6161_s21 }
 0x1ae   : > { %2144 = vrot.lane.b32.xlu1 %v2139_v2, %s6162_s24 }
 0x1b3   : > { %5496 = vmatmul.mubr.msk.bf16.vlgmr.msra.gmra.mrb[4].mxu1 %vm7651_vm14, %v825_v16  ;;  %vm7652_vm14 = vcmask 1045504  }
 0x1b4   : > { %5500 = vmatpush3.bf16.msra.mxu1 %v991_v25  ;;  %5501 = vmatprep.mubr.msk.bf16.mxu1 %vm6163_vm7, %v6160_v3  ;;  %v1450_v9 = vsel %vm7652_vm14, %v1445_v56, 0  ;;  %v6844_v56 = vld [vmem:[%s6277_s8 + $0x25] sm:$0x1] }
 0x1b5   : > { %5833 = vmatprep.subr.bf16.mxu1 %v6164_v6 }
 0x1bf   : > { %5502 = vmatmul.mubr.msk.bf16.vlgmr.msra.gmra.mrb[4].mxu1 %vm7650_vm6, %v5101_v12  ;;  %vm7653_vm6 = vmmov %vm7652_vm14  ;;  %vm7656_vm14 = vcmask 97280  }
 0x1c0   : > { %5835 = vmatpush3.bf16.msk.msra.mxu1 %vm6426_vm15, %v6165_v62  ;;  %5555 = vmatprep.mubr.msk.f32.mxu1 %vm6163_vm7, %v6160_v3  ;;  %v1496_v28 = vsel %vm7653_vm6, %v1412_v8, 0  ;;  %v2722_v8 = vrot.slane %v6844_v56, 6 }
 0x1c1   : > { %5836 = vmatprep.subr.bf16.mxu1 %v6164_v6 }
 0x26a   : > { %v589_v16 = vpop.f32.mrb[0].mxu1 }
 0x26b   : > { %v600_v25 = vrot.slane %v589_v16, %v6688_v24  ;;  %v5472_v12 = vpop.f32.mrb[1].mxu1  ;;  %v2026_v16 = vrot.slane %v6634_v47, 1 }
 0x26d   : > { %v601_v27 = vcombine.high %v600_v25, %v600_v25  ;;  %v608_v31 = vrot.slane %v600_v25, %v6688_v24  ;;  %v2023_v25 = vsel %vm221_vm3, %v2022_v5, %v2021_v4 }
 0x26e   : > { %v2025_v12 = vsel %vm224_vm4, %v2024_v21, %v2023_v25 }
 0x26f   : > { %v615_v32 = vrot.slane %v601_v27, %v6688_v24  ;;  %619 = vst.msk [vmem:[%s6695_s3] sm:$0x1] %vm7639_vm13, %v608_v31  ;;  %v6779_v27 = vsel %vm227_vm5, %v2026_v16, %v2025_v12  ;;  %v1988_v31 = vrot.slane %v6640_v51, 4  ;;  %v2151_v51 = vrot.slane %v6669_v57, 2  ;;  %v6806_v57 = vld [vmem:[%s6277_s8 + $0x24] sm:$0x1] }
 0x270   : > { %v2595_v14 = vrot.slane %v6806_v57, 6 }
 0x271   : > { %620 = vst.msk [vmem:[%s6695_s3 + $0x10] sm:$0x1] %vm7639_vm13, %v615_v32  ;;  %v1990_v47 = vsel %vm221_vm3, %v1989_v37, %v1988_v31  ;;  %v2148_v32 = vrot.slane %v6659_v10, 4 }
 0x276   : > { %v763_v50 = vpop.f32.mrb[2].mxu1 }
 0x277   : > { %v774_v33 = vrot.slane %v763_v50, %v6688_v24  ;;  %v5486_v34 = vpop.f32.mrb[3].mxu1  ;;  %v2149_v50 = vrot.slane %v6662_v11, 3  ;;  %v6800_v11 = vld [vmem:[%s6277_s8 + $0x4] sm:$0x1] }
 0x279   : > { %v775_v35 = vcombine.high %v774_v33, %v774_v33  ;;  %v782_v41 = vrot.slane %v774_v33, %v6688_v24  ;;  %v1992_v33 = vsel %vm224_vm4, %v1991_v46, %v1990_v47  ;;  %v2150_v55 = vsel %vm221_vm3, %v2149_v50, %v2148_v32  ;;  %v2014_v47 = vpop.permute.xlu0 %2013  ;;  %v2018_v50 = vpop.permute.xlu1 %2017 }
 0x27a   : > { %v6791_v53 = vsel %vm227_vm5, %v1993_v39, %v1992_v33  ;;  %v2152_v34 = vsel %vm224_vm4, %v2151_v51, %v2150_v55  ;;  %v2016_v32 = vsel %vm212_vm8, 0.0, %v2014_v47  ;;  %v2020_v55 = vsel %vm217_vm9, %v2018_v50, 0.0  ;;  %v6994_v47 = vld [vmem:[%s6277_s8 + $0x34] sm:$0x1] }
 0x27b   : > { %v789_v13 = vrot.slane %v775_v35, %v6688_v24  ;;  %792 = vst.msk [vmem:[%s6695_s3 + $0x1] sm:$0x1] %vm7639_vm13, %v782_v41  ;;  %v6797_v10 = vsel %vm227_vm5, %v2153_v54, %v2152_v34  ;;  %v6803_v35 = vld [vmem:[%s6277_s8 + $0x14] sm:$0x1]  ;;  %v2029_v54 = vsel %vm230_vm10, %v2016_v32, %v6779_v27 }
 0x27c   : > { %v6809_v41 = vld [vmem:[%s6277_s8 + $0x34] sm:$0x1] }
 0x27d   : > { %793 = vst.msk [vmem:[%s6695_s3 + $0x11] sm:$0x1] %vm7639_vm13, %v789_v13  ;;  %vm7654_vm13 = vcmask 97280   ;;  %v2593_v13 = vrot.slane %v6803_v35, 7  ;;  %v1981_v33 = vpop.permute.xlu0 %1980 }
 0x27e   : > { %v1983_v34 = vsel %vm212_vm8, 0.0, %v1981_v33 }
 0x27f   : > { %v1996_v27 = vsel %vm230_vm10, %v1983_v34, %v6791_v53  ;;  %v7005_v34 = vld [vmem:[%s6277_s8 + $0x16] sm:$0x1] }
 0x292   : > { %v1027_v22 = vpop.f32.mrb[4].mxu1 }
 0x293   : > { %v1035_v15 = vrot.slane %v1027_v22, 2  ;;  %v5503_v23 = vpop.f32.mrb[5].mxu1  ;;  %v1207_v45 = vrot.slane %v1027_v22, 6  ;;  %v1280_v7 = vrot.slane %v1027_v22, 4 }
 0x294   : > { %v1030_v42 = vpop.f32.mrb[6].mxu1  ;;  %v2594_v23 = vsel %vm201_vm0, %v2593_v13, %v6800_v11  ;;  %v1985_v13 = vpop.permute.xlu1 %1984 }
 0x295   : > { %v5504_v43 = vpop.f32.mrb[7].mxu1  ;;  %5510 = vmatmul.mubr.msk.f32.vlgmr.msra.gmra.mrb[4].mxu0 %vm448_vm12, %v1035_v15  ;;  %v6815_v15 = vld [vmem:[%s6277_s8 + $0x3] sm:$0x1]  ;;  %v6820_v42 = vld [vmem:[%s6277_s8 + $0x13] sm:$0x1]  ;;  %v2596_v26 = vsel %vm204_vm1, %v2595_v14, %v2594_v23  ;;  %v2031_v14 = vpack.c.bf16 %v2020_v55, %v2029_v54 }
 0x296   : > { %5826 = vmatpush3.bf16.msk.msra.mxu0 %vm6438_vm11, %v6165_v62  ;;  %5516 = vmatprep.mubr.msk.f32.mxu0 %vm6163_vm7, %v6160_v3  ;;  %v6823_v43 = vld [vmem:[%s6277_s8 + $0x23] sm:$0x1]  ;;  %v2560_v29 = vrot.slane %v6820_v42, 7  ;;  %v7002_v55 = vld [vmem:[%s6277_s8 + $0x6] sm:$0x1] }
 0x297   : > { %5827 = vmatprep.subr.bf16.mxu0 %v6164_v6  ;;  %v2562_v30 = vrot.slane %v6823_v43, 6 }
 0x298   : > { %v2561_v52 = vsel %vm201_vm0, %v2560_v29, %v6815_v15 }
 0x29d   : > { %5517 = vmatmul.mubr.msk.f32.vlgmr.msra.gmra.mrb[4].mxu0 %vm448_vm12, %v1027_v22  ;;  %v2597_v22 = vrot.slane %v6809_v41, 5 }
 0x29e   : > { %5829 = vmatpush3.bf16.msk.msra.mxu0 %vm6426_vm15, %v6165_v62  ;;  %5523 = vmatprep.mubr.msk.f32.mxu0 %vm6163_vm7, %v6160_v3 }
 0x29f   : > { %5830 = vmatprep.subr.bf16.mxu0 %v6164_v6  ;;  %v2598_v48 = vsel %vm7640_vm2, %v2597_v22, %v2596_v26  ;;  %v1987_v22 = vsel %vm217_vm9, %v1985_v13, 0.0 }
 0x2a0   : > { %2599 = vrot.lane.b32.xlu0 %v2598_v48, %s6161_s21  ;;  %2603 = vrot.lane.b32.xlu1 %v2598_v48, %s6162_s24  ;;  %v1998_v26 = vpack.c.bf16 %v1987_v22, %v1996_v27  ;;  %v7015_v27 = vld [vmem:[%s6277_s8 + $0x36] sm:$0x1]  ;;  %v3306_v22 = vrot.slane %v7005_v34, 7 }
 0x2a1   : > { %5524 = vmatmul.mubr.msk.f32.vlgmr.msra.gmra.mrb[6].mxu0 %vm448_vm12, %v1207_v45  ;;  %v2564_v45 = vrot.slane %v6826_v44, 5 }
 0x2a2   : > { %5832 = vmatpush3.bf16.msk.msra.mxu0 %vm6438_vm11, %v6165_v62  ;;  %5530 = vmatprep.mubr.msk.f32.mxu0 %vm6163_vm7, %v6160_v3 }
 0x2a3   : > { %5533 = vmatprep.subr.bf16.mxu0 %v6160_v3 }
 0x2a9   : > { %5531 = vmatmul.mubr.msk.f32.vlgmr.msra.gmra.mrb[6].mxu0 %vm448_vm12, %v1280_v7  ;;  %v2563_v7 = vsel %vm204_vm1, %v2562_v30, %v2561_v52  ;;  %v5153_v30 = vld [vmem:[%s7635_s1 + $0x4] sm:$0xf]  ;;  %v2145_v52 = vpop.permute.xlu1 %2144 }
 0x2aa   : > { %5534 = vmatpush3.bf16.msra.mxu0 %v1450_v9  ;;  %5535 = vmatprep.mubr.msk.bf16.mxu0 %vm6163_vm7, %v6160_v3  ;;  %v2724_v9 = vrot.slane %v6847_v38, 5 }
 0x2ab   : > { %5539 = vmatprep.subr.bf16.mxu0 %v6160_v3 }
 0x2ad   : > { %5536 = vmatmul.mubr.msk.bf16.vlgmr.msra.gmra.mrb[8].mxu0 %vm7654_vm13, %v5123_v17  ;;  %vm7655_vm13 = vmmov %vm7653_vm6  ;;  %v2565_v17 = vsel %vm7640_vm2, %v2564_v45, %v2563_v7  ;;  %v2141_v45 = vpop.permute.xlu0 %2140  ;;  %v2147_v7 = vsel %vm217_vm9, %v2145_v52, 0.0 }
 0x2ae   : > { %5540 = vmatpush3.bf16.msra.mxu0 %v1496_v28  ;;  %5541 = vmatprep.mubr.msk.bf16.mxu0 %vm6163_vm7, %v6160_v3  ;;  %v1577_v2 = vsel %vm7655_vm13, %v1572_v20, 0  ;;  %vm7657_vm6 = vmmov %vm7656_vm14  ;;  %v2723_v28 = vsel %vm204_vm1, %v2722_v8, %v2721_v58  ;;  %vm7658_vm13 = vcmask 253952   ;;  %v2143_v48 = vsel %vm212_vm8, 0.0, %v2141_v45 }
 0x2af   : > { %5545 = vmatprep.subr.bf16.mxu0 %v6160_v3  ;;  %2566 = vrot.lane.b32.xlu0 %v2565_v17, %s6161_s21  ;;  %v2725_v59 = vsel %vm7640_vm2, %v2724_v9, %v2723_v28  ;;  %v2156_v1 = vsel %vm230_vm10, %v2143_v48, %v6797_v10  ;;  %v1997_v9 = vld [vmem:[%s7635_s1] sm:$0xf]  ;;  %v5161_v10 = vld [vmem:[%s7635_s1 + $0x8] sm:$0xf]  ;;  %v2607_v58 = vrot.slane %v6800_v11, 4  ;;  %v2608_v28 = vrot.slane %v6803_v35, 3 }
 0x2b0   : > { %2570 = vrot.lane.b32.xlu1 %v2565_v17, %s6162_s24  ;;  %v2158_v8 = vpack.c.bf16 %v2147_v7, %v2156_v1  ;;  %v2575_v11 = vrot.slane %v6820_v42, 3  ;;  %v2577_v35 = vrot.slane %v6823_v43, 2  ;;  %v2739_v43 = vrot.slane %v6847_v38, 1 }
 0x2b1   : > { %v3307_v45 = vsel %vm201_vm0, %v3306_v22, %v7002_v55 }
 0x2b3   : > { %2726 = vrot.lane.b32.xlu0 %v2725_v59, %s6161_s21 }
 0x2b4   : > { %2730 = vrot.lane.b32.xlu1 %v2725_v59, %s6162_s24  ;;  %v2610_v59 = vrot.slane %v6806_v57, 2  ;;  %v2579_v57 = vrot.slane %v6826_v44, 1 }
 0x2b9   : > { %5542 = vmatmul.mubr.msk.bf16.vlgmr.msra.gmra.mrb[8].mxu0 %vm7656_vm14, %v1411_v0  ;;  %vm7659_vm14 = vmmov %vm7658_vm13 }
 0x2ba   : > { %5546 = vmatpush3.bf16.msra.mxu0 %v1577_v2  ;;  %5547 = vmatprep.mubr.msk.bf16.mxu0 %vm6163_vm7, %v6160_v3 }
 0x2bb   : > { %5845 = vmatprep.subr.bf16.mxu0 %v6164_v6 }
 0x2c5   : > { %5548 = vmatmul.mubr.msk.bf16.vlgmr.msra.gmra.mrb[8].mxu0 %vm7657_vm6, %v5131_v36  ;;  %vm7660_vm6 = vmmov %vm7658_vm13 }
 0x2c6   : > { %5847 = vmatpush3.bf16.msk.msra.mxu0 %vm6426_vm15, %v6165_v62  ;;  %5601 = vmatprep.mubr.msk.f32.mxu0 %vm6163_vm7, %v6160_v3  ;;  %vm7661_vm2 = vmmov %vm7660_vm6 }
 0x2c7   : > { %5848 = vmatprep.subr.bf16.mxu0 %v6164_v6 }
 0x370   : > { %v1176_v60 = vpop.f32.mrb[4].mxu0 }
 0x371   : > { %v1187_v18 = vrot.slane %v1176_v60, %v6688_v24  ;;  %v5518_v19 = vpop.f32.mrb[5].mxu0  ;;  %v2612_v60 = vrot.slane %v6809_v41, 1 }
 0x373   : > { %v1188_v20 = vcombine.high %v1187_v18, %v1187_v18  ;;  %v1195_v0 = vrot.slane %v1187_v18, %v6688_v24  ;;  %v2609_v18 = vsel %vm221_vm3, %v2608_v28, %v2607_v58 }
 0x374   : > { %v2611_v19 = vsel %vm224_vm4, %v2610_v59, %v2609_v18 }
 0x375   : > { %v1202_v2 = vrot.slane %v1188_v20, %v6688_v24  ;;  %1205 = vst.msk [vmem:[%s6695_s3 + $0x2] sm:$0x1] %vm7658_vm13, %v1195_v0  ;;  %v6947_v20 = vsel %vm227_vm5, %v2612_v60, %v2611_v19  ;;  %v2574_v0 = vrot.slane %v6815_v15, 4  ;;  %v2737_v15 = vrot.slane %v6844_v56, 2  ;;  %v6974_v56 = vld [vmem:[%s6277_s8 + $0x25] sm:$0x1] }
 0x376   : > { %v3181_v38 = vrot.slane %v6974_v56, 6 }
 0x377   : > { %1206 = vst.msk [vmem:[%s6695_s3 + $0x12] sm:$0x1] %vm7659_vm14, %v1202_v2  ;;  %vm7664_vm14 = vcmask 97280   ;;  %v2576_v41 = vsel %vm221_vm3, %v2575_v11, %v2574_v0  ;;  %v2734_v2 = vrot.slane %v6834_v40, 4 }
 0x37c   : > { %v1349_v36 = vpop.f32.mrb[6].mxu0 }
 0x37d   : > { %v1360_v4 = vrot.slane %v1349_v36, %v6688_v24  ;;  %v5532_v5 = vpop.f32.mrb[7].mxu0  ;;  %v2735_v36 = vrot.slane %v6837_v49, 3  ;;  %v6968_v49 = vld [vmem:[%s6277_s8 + $0x5] sm:$0x1] }
 0x37f   : > { %v1361_v21 = vcombine.high %v1360_v4, %v1360_v4  ;;  %v1368_v16 = vrot.slane %v1360_v4, %v6688_v24  ;;  %v2578_v4 = vsel %vm224_vm4, %v2577_v35, %v2576_v41  ;;  %v2736_v44 = vsel %vm221_vm3, %v2735_v36, %v2734_v2  ;;  %v2600_v41 = vpop.permute.xlu0 %2599  ;;  %v2604_v36 = vpop.permute.xlu1 %2603 }
 0x380   : > { %v6959_v42 = vsel %vm227_vm5, %v2579_v57, %v2578_v4  ;;  %v2738_v5 = vsel %vm224_vm4, %v2737_v15, %v2736_v44  ;;  %v2602_v2 = vsel %vm212_vm8, 0.0, %v2600_v41  ;;  %v2606_v44 = vsel %vm217_vm9, %v2604_v36, 0.0  ;;  %v7162_v41 = vld [vmem:[%s6277_s8 + $0x35] sm:$0x1] }
 0x381   : > { %v1375_v25 = vrot.slane %v1361_v21, %v6688_v24  ;;  %1378 = vst.msk [vmem:[%s6695_s3 + $0x3] sm:$0x1] %vm7660_vm6, %v1368_v16  ;;  %v6965_v40 = vsel %vm227_vm5, %v2739_v43, %v2738_v5  ;;  %v6971_v21 = vld [vmem:[%s6277_s8 + $0x15] sm:$0x1]  ;;  %v2615_v43 = vsel %vm230_vm10, %v2602_v2, %v6947_v20 }
 0x382   : > { %v6977_v16 = vld [vmem:[%s6277_s8 + $0x35] sm:$0x1] }
 0x383   : > { %1379 = vst.msk [vmem:[%s6695_s3 + $0x13] sm:$0x1] %vm7661_vm2, %v1375_v25  ;;  %vm7662_vm2 = vcmask 1045504   ;;  %v3179_v25 = vrot.slane %v6971_v21, 7  ;;  %v2567_v4 = vpop.permute.xlu0 %2566 }
 0x384   : > { %v2036_v29 = vsel %vm7662_vm2, %v2031_v14, 0  ;;  %vm7663_vm13 = vmmov %vm7662_vm2  ;;  %v7012_v14 = vld [vmem:[%s6277_s8 + $0x26] sm:$0x1]  ;;  %v2569_v5 = vsel %vm212_vm8, 0.0, %v2567_v4 }
 0x385   : > { %v2082_v53 = vsel %vm7663_vm13, %v1998_v26, 0  ;;  %vm7665_vm6 = vmmov %vm7662_vm2  ;;  %v3308_v26 = vrot.slane %v7012_v14, 6  ;;  %v2582_v20 = vsel %vm230_vm10, %v2569_v5, %v6959_v42  ;;  %v7173_v5 = vld [vmem:[%s6277_s8 + $0x17] sm:$0x1] }
 0x386   : > { %v2163_v17 = vsel %vm7665_vm6, %v2158_v8, 0  ;;  %vm7666_vm2 = vmmov %vm7664_vm14 }
 0x387   : > { %vm7667_vm13 = vmmov %vm7666_vm2 }
 0x398   : > { %v1613_v12 = vpop.f32.mrb[8].mxu0 }
 0x399   : > { %v1621_v31 = vrot.slane %v1613_v12, 2  ;;  %v5549_v37 = vpop.f32.mrb[9].mxu0  ;;  %v1793_v51 = vrot.slane %v1613_v12, 6  ;;  %v1866_v23 = vrot.slane %v1613_v12, 4 }
 0x39a   : > { %v1616_v46 = vpop.f32.mrb[10].mxu0  ;;  %v3180_v37 = vsel %vm201_vm0, %v3179_v25, %v6968_v49  ;;  %v2571_v25 = vpop.permute.xlu1 %2570 }
 0x39b   : > { %v5550_v39 = vpop.f32.mrb[11].mxu0  ;;  %5556 = vmatmul.mubr.msk.f32.vlgmr.msra.gmra.mrb[8].mxu1 %vm448_vm12, %v1621_v31  ;;  %v6983_v31 = vld [vmem:[%s6277_s8 + $0x4] sm:$0x1]  ;;  %v6988_v46 = vld [vmem:[%s6277_s8 + $0x14] sm:$0x1]  ;;  %v3182_v32 = vsel %vm204_vm1, %v3181_v38, %v3180_v37  ;;  %v2617_v38 = vpack.c.bf16 %v2606_v44, %v2615_v43 }
 0x39c   : > { %5838 = vmatpush3.bf16.msk.msra.mxu1 %vm6438_vm11, %v6165_v62  ;;  %5562 = vmatprep.mubr.msk.f32.mxu1 %vm6163_vm7, %v6160_v3  ;;  %v6991_v39 = vld [vmem:[%s6277_s8 + $0x24] sm:$0x1]  ;;  %v3146_v50 = vrot.slane %v6988_v46, 7  ;;  %v7170_v44 = vld [vmem:[%s6277_s8 + $0x7] sm:$0x1] }
 0x39d   : > { %5839 = vmatprep.subr.bf16.mxu1 %v6164_v6  ;;  %v3148_v33 = vrot.slane %v6991_v39, 6 }
 0x39e   : > { %v3147_v13 = vsel %vm201_vm0, %v3146_v50, %v6983_v31 }
 0x3a3   : > { %5563 = vmatmul.mubr.msk.f32.vlgmr.msra.gmra.mrb[8].mxu1 %vm448_vm12, %v1613_v12  ;;  %v3183_v12 = vrot.slane %v6977_v16, 5 }
 0x3a4   : > { %5841 = vmatpush3.bf16.msk.msra.mxu1 %vm6426_vm15, %v6165_v62  ;;  %5569 = vmatprep.mubr.msk.f32.mxu1 %vm6163_vm7, %v6160_v3 }
 0x3a5   : > { %5842 = vmatprep.subr.bf16.mxu1 %v6164_v6 }
 0x3a7   : > { %5570 = vmatmul.mubr.msk.f32.vlgmr.msra.gmra.mrb[10].mxu1 %vm448_vm12, %v1793_v51  ;;  %v3150_v51 = vrot.slane %v6994_v47, 5 }
 0x3a8   : > { %5844 = vmatpush3.bf16.msk.msra.mxu1 %vm6438_vm11, %v6165_v62  ;;  %5576 = vmatprep.mubr.msk.f32.mxu1 %vm6163_vm7, %v6160_v3 }
 0x3a9   : > { %5579 = vmatprep.subr.bf16.mxu1 %v6160_v3 }
 0x3af   : > { %5577 = vmatmul.mubr.msk.f32.vlgmr.msra.gmra.mrb[10].mxu1 %vm448_vm12, %v1866_v23  ;;  %v3149_v23 = vsel %vm204_vm1, %v3148_v33, %v3147_v13  ;;  %v5183_v33 = vld [vmem:[%s7635_s1 + $0x4] sm:$0xf]  ;;  %v2731_v13 = vpop.permute.xlu1 %2730 }
 0x3b0   : > { %5580 = vmatpush3.bf16.msra.mxu1 %v2036_v29  ;;  %5581 = vmatprep.mubr.msk.bf16.mxu1 %vm6163_vm7, %v6160_v3  ;;  %v3310_v29 = vrot.slane %v7015_v27, 5 }
 0x3b1   : > { %5585 = vmatprep.subr.bf16.mxu1 %v6160_v3 }
 0x3b3   : > { %5582 = vmatmul.mubr.msk.bf16.vlgmr.msra.gmra.mrb[12].mxu1 %vm7664_vm14, %v5153_v30  ;;  %vm7668_vm14 = vcmask 1043459  }
 0x3b4   : > { %5586 = vmatpush3.bf16.msra.mxu1 %v2082_v53  ;;  %5587 = vmatprep.mubr.msk.bf16.mxu1 %vm6163_vm7, %v6160_v3  ;;  %v3184_v54 = vsel %vm7668_vm14, %v3183_v12, %v3182_v32  ;;  %vm7669_vm6 = vmmov %vm7668_vm14  ;;  %v3309_v53 = vsel %vm204_vm1, %v3308_v26, %v3307_v45  ;;  %v2573_v12 = vsel %vm217_vm9, %v2571_v25, 0.0  ;;  %v3193_v45 = vrot.slane %v6968_v49, 4 }
 0x3b5   : > { %5591 = vmatprep.subr.bf16.mxu1 %v6160_v3  ;;  %3185 = vrot.lane.b32.xlu0 %v3184_v54, %s6161_s21  ;;  %v3151_v30 = vsel %vm7669_vm6, %v3150_v51, %v3149_v23  ;;  %v2584_v32 = vpack.c.bf16 %v2573_v12, %v2582_v20  ;;  %v2727_v51 = vpop.permute.xlu0 %2726  ;;  %v2733_v23 = vsel %vm217_vm9, %v2731_v13, 0.0  ;;  %v3161_v49 = vrot.slane %v6988_v46, 3  ;;  %v7183_v20 = vld [vmem:[%s6277_s8 + $0x37] sm:$0x1] }
 0x3b6   : > { %3189 = vrot.lane.b32.xlu1 %v3184_v54, %s6162_s24  ;;  %v2729_v54 = vsel %vm212_vm8, 0.0, %v2727_v51  ;;  %v3892_v12 = vrot.slane %v7173_v5, 7 }
 0x3b7   : > { %v2742_v22 = vsel %vm230_vm10, %v2729_v54, %v6965_v40  ;;  %v5191_v40 = vld [vmem:[%s7635_s1 + $0x8] sm:$0xf] }
 0x3b8   : > { %v2744_v26 = vpack.c.bf16 %v2733_v23, %v2742_v22  ;;  %v3893_v51 = vsel %vm201_vm0, %v3892_v12, %v7170_v44 }
 0x3b9   : > { %3152 = vrot.lane.b32.xlu0 %v3151_v30, %s6161_s21 }
 0x3ba   : > { %3156 = vrot.lane.b32.xlu1 %v3151_v30, %s6162_s24 }
 0x3bf   : > { %5588 = vmatmul.mubr.msk.bf16.vlgmr.msra.gmra.mrb[12].mxu1 %vm7666_vm2, %v1997_v9  ;;  %vm7670_vm2 = vmmov %vm7669_vm6 }
 0x3c0   : > { %5592 = vmatpush3.bf16.msra.mxu1 %v2163_v17  ;;  %5593 = vmatprep.mubr.msk.bf16.mxu1 %vm6163_vm7, %v6160_v3  ;;  %v3311_v48 = vsel %vm7670_vm2, %v3310_v29, %v3309_v53  ;;  %v2583_v29 = vld [vmem:[%s7635_s1] sm:$0xf]  ;;  %v3194_v53 = vrot.slane %v6971_v21, 3  ;;  %v3163_v21 = vrot.slane %v6991_v39, 2  ;;  %v3325_v39 = vrot.slane %v7015_v27, 1 }
 0x3c1   : > { %5857 = vmatprep.subr.bf16.mxu1 %v6164_v6  ;;  %3312 = vrot.lane.b32.xlu0 %v3311_v48, %s6161_s21 }
 0x3c2   : > { %3316 = vrot.lane.b32.xlu1 %v3311_v48, %s6162_s24  ;;  %v3196_v48 = vrot.slane %v6974_v56, 2  ;;  %v3165_v56 = vrot.slane %v6994_v47, 1 }
 0x3cb   : > { %5594 = vmatmul.mubr.msk.bf16.vlgmr.msra.gmra.mrb[12].mxu1 %vm7667_vm13, %v5161_v10  ;;  %vm7671_vm13 = vcmask 253952  }
 0x3cc   : > { %5859 = vmatpush3.bf16.msk.msra.mxu1 %vm6426_vm15, %v6165_v62  ;;  %5647 = vmatprep.mubr.msk.f32.mxu1 %vm6163_vm7, %v6160_v3  ;;  %vm7672_vm14 = vmmov %vm7671_vm13 }
 0x3cd   : > { %5860 = vmatprep.subr.bf16.mxu1 %v6164_v6  ;;  %vm7673_vm6 = vmmov %vm7671_vm13 }
 0x3ce   : > { %vm7674_vm2 = vmmov %vm7673_vm6 }
 0x476   : > { %v1762_v52 = vpop.f32.mrb[8].mxu1 }
 0x477   : > { %v1773_v1 = vrot.slane %v1762_v52, %v6688_v24  ;;  %v5564_v7 = vpop.f32.mrb[9].mxu1  ;;  %v3198_v52 = vrot.slane %v6977_v16, 1 }
 0x479   : > { %v1774_v8 = vcombine.high %v1773_v1, %v1773_v1  ;;  %v1781_v9 = vrot.slane %v1773_v1, %v6688_v24  ;;  %v3195_v1 = vsel %vm221_vm3, %v3194_v53, %v3193_v45 }
 0x47a   : > { %v3197_v7 = vsel %vm224_vm4, %v3196_v48, %v3195_v1 }
 0x47b   : > { %v1788_v17 = vrot.slane %v1774_v8, %v6688_v24  ;;  %1791 = vst.msk [vmem:[%s6695_s3 + $0x4] sm:$0x1] %vm7671_vm13, %v1781_v9  ;;  %vm7675_vm13 = vcmask 1045504   ;;  %v7115_v8 = vsel %vm227_vm5, %v3198_v52, %v3197_v7  ;;  %v3160_v9 = vrot.slane %v6983_v31, 4 }
 0x47c   : > { %v2622_v50 = vsel %vm7675_vm13, %v2617_v38, 0  ;;  %v3323_v31 = vrot.slane %v7012_v14, 2  ;;  %v7142_v14 = vld [vmem:[%s6277_s8 + $0x26] sm:$0x1]  ;;  %v7180_v38 = vld [vmem:[%s6277_s8 + $0x27] sm:$0x1] }
 0x47d   : > { %1792 = vst.msk [vmem:[%s6695_s3 + $0x14] sm:$0x1] %vm7672_vm14, %v1788_v17  ;;  %vm7676_vm14 = vmmov %vm7675_vm13  ;;  %v3162_v16 = vsel %vm221_vm3, %v3161_v49, %v3160_v9  ;;  %v3320_v17 = vrot.slane %v7002_v55, 4  ;;  %v3767_v27 = vrot.slane %v7142_v14, 6 }
 0x47e   : > { %v2668_v42 = vsel %vm7676_vm14, %v2584_v32, 0  ;;  %v3894_v32 = vrot.slane %v7180_v38, 6 }
 0x482   : > { %v1935_v10 = vpop.f32.mrb[10].mxu1 }
 0x483   : > { %v1946_v58 = vrot.slane %v1935_v10, %v6688_v24  ;;  %v5578_v28 = vpop.f32.mrb[11].mxu1  ;;  %v3321_v10 = vrot.slane %v7005_v34, 3  ;;  %v7136_v34 = vld [vmem:[%s6277_s8 + $0x6] sm:$0x1] }
 0x485   : > { %v1947_v59 = vcombine.high %v1946_v58, %v1946_v58  ;;  %v1954_v60 = vrot.slane %v1946_v58, %v6688_v24  ;;  %v3164_v58 = vsel %vm224_vm4, %v3163_v21, %v3162_v16  ;;  %v3322_v47 = vsel %vm221_vm3, %v3321_v10, %v3320_v17  ;;  %v3186_v16 = vpop.permute.xlu0 %3185  ;;  %v3190_v10 = vpop.permute.xlu1 %3189 }
 0x486   : > { %v7127_v46 = vsel %vm227_vm5, %v3165_v56, %v3164_v58  ;;  %v3324_v28 = vsel %vm224_vm4, %v3323_v31, %v3322_v47  ;;  %v3188_v17 = vsel %vm212_vm8, 0.0, %v3186_v16  ;;  %v3192_v47 = vsel %vm217_vm9, %v3190_v10, 0.0  ;;  %v7331_v16 = vld [vmem:[%s6277_s8 + $0x36] sm:$0x1] }
 0x487   : > { %v1961_v18 = vrot.slane %v1947_v59, %v6688_v24  ;;  %1964 = vst.msk [vmem:[%s6695_s3 + $0x5] sm:$0x1] %vm7673_vm6, %v1954_v60  ;;  %vm7677_vm6 = vcmask 97280   ;;  %v7133_v55 = vsel %vm227_vm5, %v3325_v39, %v3324_v28  ;;  %v7139_v59 = vld [vmem:[%s6277_s8 + $0x16] sm:$0x1]  ;;  %v3201_v39 = vsel %vm230_vm10, %v3188_v17, %v7115_v8 }
 0x488   : > { %vm7680_vm14 = vmmov %vm7677_vm6  ;;  %v7145_v60 = vld [vmem:[%s6277_s8 + $0x36] sm:$0x1] }
 0x489   : > { %1965 = vst.msk [vmem:[%s6695_s3 + $0x15] sm:$0x1] %vm7674_vm2, %v1961_v18  ;;  %vm7678_vm2 = vmmov %vm7675_vm13  ;;  %v3765_v18 = vrot.slane %v7139_v59, 7  ;;  %v3153_v58 = vpop.permute.xlu0 %3152 }
 0x48a   : > { %v2749_v30 = vsel %vm7678_vm2, %v2744_v26, 0  ;;  %vm7679_vm13 = vmmov %vm7677_vm6  ;;  %v3155_v28 = vsel %vm212_vm8, 0.0, %v3153_v58 }
 0x48b   : > { %v3168_v8 = vsel %vm230_vm10, %v3155_v28, %v7127_v46 }
 0x49e   : > { %v2199_v19 = vpop.f32.mrb[12].mxu1 }
 0x49f   : > { %v2207_v0 = vrot.slane %v2199_v19, 2  ;;  %v5595_v11 = vpop.f32.mrb[13].mxu1  ;;  %v2379_v15 = vrot.slane %v2199_v19, 6  ;;  %v2452_v37 = vrot.slane %v2199_v19, 4 }
 0x4a0   : > { %v2202_v35 = vpop.f32.mrb[14].mxu1  ;;  %v3766_v11 = vsel %vm201_vm0, %v3765_v18, %v7136_v34  ;;  %v3157_v18 = vpop.permute.xlu1 %3156 }
 0x4a1   : > { %v5596_v57 = vpop.f32.mrb[15].mxu1  ;;  %5602 = vmatmul.mubr.msk.f32.vlgmr.msra.gmra.mrb[12].mxu0 %vm448_vm12, %v2207_v0  ;;  %v7151_v0 = vld [vmem:[%s6277_s8 + $0x5] sm:$0x1]  ;;  %v7156_v35 = vld [vmem:[%s6277_s8 + $0x15] sm:$0x1]  ;;  %v3768_v2 = vsel %vm204_vm1, %v3767_v27, %v3766_v11  ;;  %v3203_v27 = vpack.c.bf16 %v3192_v47, %v3201_v39 }
 0x4a2   : > { %5850 = vmatpush3.bf16.msk.msra.mxu0 %vm6438_vm11, %v6165_v62  ;;  %5608 = vmatprep.mubr.msk.f32.mxu0 %vm6163_vm7, %v6160_v3  ;;  %v7159_v57 = vld [vmem:[%s6277_s8 + $0x25] sm:$0x1]  ;;  %v3732_v36 = vrot.slane %v7156_v35, 7 }
 0x4a3   : > { %5851 = vmatprep.subr.bf16.mxu0 %v6164_v6  ;;  %v3734_v4 = vrot.slane %v7159_v57, 6 }
 0x4a4   : > { %v3733_v25 = vsel %vm201_vm0, %v3732_v36, %v7151_v0 }
 0x4a9   : > { %5609 = vmatmul.mubr.msk.f32.vlgmr.msra.gmra.mrb[12].mxu0 %vm448_vm12, %v2199_v19  ;;  %v3769_v19 = vrot.slane %v7145_v60, 5 }
 0x4aa   : > { %5853 = vmatpush3.bf16.msk.msra.mxu0 %vm6426_vm15, %v6165_v62  ;;  %5615 = vmatprep.mubr.msk.f32.mxu0 %vm6163_vm7, %v6160_v3 }
 0x4ab   : > { %5854 = vmatprep.subr.bf16.mxu0 %v6164_v6 }
 0x4ad   : > { %5616 = vmatmul.mubr.msk.f32.vlgmr.msra.gmra.mrb[14].mxu0 %vm448_vm12, %v2379_v15  ;;  %v3736_v15 = vrot.slane %v7162_v41, 5 }
 0x4ae   : > { %5856 = vmatpush3.bf16.msk.msra.mxu0 %vm6438_vm11, %v6165_v62  ;;  %5622 = vmatprep.mubr.msk.f32.mxu0 %vm6163_vm7, %v6160_v3 }
 0x4af   : > { %5625 = vmatprep.subr.bf16.mxu0 %v6160_v3 }
 0x4b5   : > { %5623 = vmatmul.mubr.msk.f32.vlgmr.msra.gmra.mrb[14].mxu0 %vm448_vm12, %v2452_v37  ;;  %v3735_v37 = vsel %vm204_vm1, %v3734_v4, %v3733_v25  ;;  %v5213_v4 = vld [vmem:[%s7635_s1 + $0x4] sm:$0xf]  ;;  %v3317_v25 = vpop.permute.xlu1 %3316 }
 0x4b6   : > { %5626 = vmatpush3.bf16.msra.mxu0 %v2622_v50  ;;  %5627 = vmatprep.mubr.msk.bf16.mxu0 %vm6163_vm7, %v6160_v3  ;;  %v3896_v50 = vrot.slane %v7183_v20, 5 }
 0x4b7   : > { %5631 = vmatprep.subr.bf16.mxu0 %v6160_v3 }
 0x4b9   : > { %5628 = vmatmul.mubr.msk.bf16.vlgmr.msra.gmra.mrb[16].mxu0 %vm7677_vm6, %v5183_v33  ;;  %vm7681_vm6 = vcmask 1043459  }
 0x4ba   : > { %5632 = vmatpush3.bf16.msra.mxu0 %v2668_v42  ;;  %5633 = vmatprep.mubr.msk.bf16.mxu0 %vm6163_vm7, %v6160_v3  ;;  %v3770_v43 = vsel %vm7681_vm6, %v3769_v19, %v3768_v2  ;;  %vm7682_vm2 = vmmov %vm7681_vm6  ;;  %v3895_v42 = vsel %vm204_vm1, %v3894_v32, %v3893_v51  ;;  %v3159_v19 = vsel %vm217_vm9, %v3157_v18, 0.0  ;;  %v3779_v51 = vrot.slane %v7136_v34, 4 }
 0x4bb   : > { %5637 = vmatprep.subr.bf16.mxu0 %v6160_v3  ;;  %3771 = vrot.lane.b32.xlu0 %v3770_v43, %s6161_s21  ;;  %v3737_v33 = vsel %vm7682_vm2, %v3736_v15, %v3735_v37  ;;  %v3170_v2 = vpack.c.bf16 %v3159_v19, %v3168_v8  ;;  %v3313_v15 = vpop.permute.xlu0 %3312  ;;  %v3319_v37 = vsel %vm217_vm9, %v3317_v25, 0.0  ;;  %v3747_v34 = vrot.slane %v7156_v35, 3  ;;  %v4473_v8 = vld [vmem:[%s4471_s5 + $0x10] sm:$0x1]  ;;  %v4474_v19 = vld [vmem:[%s4471_s5 + $0x20] sm:$0x1] }
 0x4bc   : > { %3775 = vrot.lane.b32.xlu1 %v3770_v43, %s6162_s24  ;;  %v3315_v43 = vsel %vm212_vm8, 0.0, %v3313_v15 }
 0x4bd   : > { %v3328_v12 = vsel %vm230_vm10, %v3315_v43, %v7133_v55  ;;  %v5221_v55 = vld [vmem:[%s7635_s1 + $0x8] sm:$0xf] }
 0x4be   : > { %v3330_v32 = vpack.c.bf16 %v3319_v37, %v3328_v12 }
 0x4bf   : > { %3738 = vrot.lane.b32.xlu0 %v3737_v33, %s6161_s21 }
 0x4c0   : > { %3742 = vrot.lane.b32.xlu1 %v3737_v33, %s6162_s24 }
 0x4c5   : > { %5634 = vmatmul.mubr.msk.bf16.vlgmr.msra.gmra.mrb[16].mxu0 %vm7679_vm13, %v2583_v29  ;;  %vm7683_vm13 = vmmov %vm7682_vm2 }
 0x4c6   : > { %5638 = vmatpush3.bf16.msra.mxu0 %v2749_v30  ;;  %5639 = vmatprep.mubr.msk.bf16.mxu0 %vm6163_vm7, %v6160_v3  ;;  %v3897_v54 = vsel %vm7683_vm13, %v3896_v50, %v3895_v42  ;;  %v3169_v50 = vld [vmem:[%s7635_s1] sm:$0xf]  ;;  %v3780_v42 = vrot.slane %v7139_v59, 3  ;;  %v3749_v59 = vrot.slane %v7159_v57, 2  ;;  %v3911_v57 = vrot.slane %v7183_v20, 1 }
 0x4c7   : > { %5869 = vmatprep.subr.bf16.mxu0 %v6164_v6  ;;  %3898 = vrot.lane.b32.xlu0 %v3897_v54, %s6161_s21 }
 0x4c8   : > { %3902 = vrot.lane.b32.xlu1 %v3897_v54, %s6162_s24  ;;  %v3782_v54 = vrot.slane %v7142_v14, 2  ;;  %v3751_v14 = vrot.slane %v7162_v41, 1 }
 0x4d1   : > { %5640 = vmatmul.mubr.msk.bf16.vlgmr.msra.gmra.mrb[16].mxu0 %vm7680_vm14, %v5191_v40  ;;  %vm7684_vm14 = vcmask 253952  }
 0x4d2   : > { %5871 = vmatpush3.bf16.msk.msra.mxu0 %vm6426_vm15, %v6165_v62  ;;  %5693 = vmatprep.mubr.msk.f32.mxu0 %vm6163_vm7, %v6160_v3  ;;  %vm7685_vm6 = vmmov %vm7684_vm14 }
 0x4d3   : > { %5872 = vmatprep.subr.bf16.mxu0 %v6164_v6  ;;  %vm7686_vm2 = vmmov %vm7685_vm6 }
 0x4d4   : > { %vm7687_vm13 = vmmov %vm7686_vm2 }
 0x57c   : > { %v2348_v13 = vpop.f32.mrb[12].mxu0 }
 0x57d   : > { %v2359_v22 = vrot.slane %v2348_v13, %v6688_v24  ;;  %v5610_v23 = vpop.f32.mrb[13].mxu0  ;;  %v3784_v13 = vrot.slane %v7145_v60, 1 }
 0x57f   : > { %v2360_v26 = vcombine.high %v2359_v22, %v2359_v22  ;;  %v2367_v29 = vrot.slane %v2359_v22, %v6688_v24  ;;  %v3781_v22 = vsel %vm221_vm3, %v3780_v42, %v3779_v51 }
 0x580   : > { %v3783_v23 = vsel %vm224_vm4, %v3782_v54, %v3781_v22 }
 0x581   : > { %v2374_v30 = vrot.slane %v2360_v26, %v6688_v24  ;;  %2377 = vst.msk [vmem:[%s6695_s3 + $0x6] sm:$0x1] %vm7684_vm14, %v2367_v29  ;;  %vm7688_vm14 = vcmask 1045504   ;;  %v7283_v26 = vsel %vm227_vm5, %v3784_v13, %v3783_v23  ;;  %v3746_v29 = vrot.slane %v7151_v0, 4 }
 0x582   : > { %v3208_v36 = vsel %vm7688_vm14, %v3203_v27, 0  ;;  %v3909_v0 = vrot.slane %v7180_v38, 2  ;;  %v7310_v38 = vld [vmem:[%s6277_s8 + $0x27] sm:$0x1]  ;;  %v4472_v27 = vld [vmem:[%s4471_s5] sm:$0x1] }
 0x583   : > { %2378 = vst.msk [vmem:[%s6695_s3 + $0x16] sm:$0x1] %vm7685_vm6, %v2374_v30  ;;  %vm7689_vm6 = vmmov %vm7688_vm14  ;;  %v3748_v60 = vsel %vm221_vm3, %v3747_v34, %v3746_v29  ;;  %v3906_v30 = vrot.slane %v7170_v44, 4  ;;  %v4353_v20 = vrot.slane %v7310_v38, 6 }
 0x584   : > { %v3254_v46 = vsel %vm7689_vm6, %v3170_v2, 0  ;;  %v4475_v2 = vld [vmem:[%s4471_s5 + $0x30] sm:$0x1]  ;;  %s4908_s5 = scalar_lea.sflag [#allocation3], %s148_s29 }
 0x588   : > { %v2521_v40 = vpop.f32.mrb[14].mxu0 }
 0x589   : > { %v2532_v45 = vrot.slane %v2521_v40, %v6688_v24  ;;  %v5624_v53 = vpop.f32.mrb[15].mxu0  ;;  %v3907_v40 = vrot.slane %v7173_v5, 3  ;;  %v7304_v5 = vld [vmem:[%s6277_s8 + $0x7] sm:$0x1] }
 0x58b   : > { %v2533_v48 = vcombine.high %v2532_v45, %v2532_v45  ;;  %v2540_v52 = vrot.slane %v2532_v45, %v6688_v24  ;;  %v3750_v45 = vsel %vm224_vm4, %v3749_v59, %v3748_v60  ;;  %v3908_v41 = vsel %vm221_vm3, %v3907_v40, %v3906_v30 }
 0x58c   : > { %v7295_v35 = vsel %vm227_vm5, %v3751_v14, %v3750_v45  ;;  %v3910_v44 = vsel %vm224_vm4, %v3909_v0, %v3908_v41 }
 0x58d   : > { %v2547_v1 = vrot.slane %v2533_v48, %v6688_v24  ;;  %2550 = vst.msk [vmem:[%s6695_s3 + $0x7] sm:$0x1] %vm7686_vm2, %v2540_v52  ;;  %vm7690_vm2 = vcmask 97280   ;;  %v7301_v53 = vsel %vm227_vm5, %v3911_v57, %v3910_v44  ;;  %v7307_v48 = vld [vmem:[%s6277_s8 + $0x17] sm:$0x1]  ;;  %v3772_v57 = vpop.permute.xlu0 %3771  ;;  %v3776_v44 = vpop.permute.xlu1 %3775 }
 0x58e   : > { %vm7692_vm14 = vmmov %vm7690_vm2  ;;  %v7313_v52 = vld [vmem:[%s6277_s8 + $0x37] sm:$0x1]  ;;  %v3774_v41 = vsel %vm212_vm8, 0.0, %v3772_v57 }
 0x58f   : > { %2551 = vst.msk [vmem:[%s6695_s3 + $0x17] sm:$0x1] %vm7687_vm13, %v2547_v1  ;;  %vm7691_vm13 = vmmov %vm7689_vm6  ;;  %v4351_v1 = vrot.slane %v7307_v48, 7 }
 0x590   : > { %v3335_v33 = vsel %vm7691_vm13, %v3330_v32, 0  ;;  %vm7693_vm6 = vmmov %vm7690_vm2 }
 0x5a4   : > { %v2785_v7 = vpop.f32.mrb[16].mxu0 }
 0x5a5   : > { %v2793_v9 = vrot.slane %v2785_v7, 2  ;;  %v5641_v49 = vpop.f32.mrb[17].mxu0  ;;  %v2965_v31 = vrot.slane %v2785_v7, 6  ;;  %v3038_v11 = vrot.slane %v2785_v7, 4 }
 0x5a6   : > { %v2788_v21 = vpop.f32.mrb[18].mxu0  ;;  %v4352_v49 = vsel %vm201_vm0, %v4351_v1, %v7304_v5  ;;  %v3739_v1 = vpop.permute.xlu0 %3738 }
 0x5a7   : > { %v5642_v56 = vpop.f32.mrb[19].mxu0  ;;  %5648 = vmatmul.mubr.msk.f32.vlgmr.msra.gmra.mrb[16].mxu1 %vm448_vm12, %v2793_v9  ;;  %v7319_v9 = vld [vmem:[%s6277_s8 + $0x6] sm:$0x1]  ;;  %v7325_v21 = vld [vmem:[%s6277_s8 + $0x16] sm:$0x1]  ;;  %v4354_v17 = vsel %vm204_vm1, %v4353_v20, %v4352_v49  ;;  %v3778_v49 = vsel %vm217_vm9, %v3776_v44, 0.0 }
 0x5a8   : > { %5862 = vmatpush3.bf16.msk.msra.mxu1 %vm6438_vm11, %v6165_v62  ;;  %5654 = vmatprep.mubr.msk.f32.mxu1 %vm6163_vm7, %v6160_v3  ;;  %v7328_v56 = vld [vmem:[%s6277_s8 + $0x26] sm:$0x1]  ;;  %v4318_v10 = vrot.slane %v7325_v21, 7  ;;  %s4478_s8 = scalar_select %p4477_p2, 1, 0 }
 0x5a9   : > { %5863 = vmatprep.subr.bf16.mxu1 %v6164_v6  ;;  %v4320_v58 = vrot.slane %v7328_v56, 6 }
 0x5aa   : > { %v4319_v47 = vsel %vm201_vm0, %v4318_v10, %v7319_v9  ;;  %v3743_v10 = vpop.permute.xlu1 %3742 }
 0x5ab   : > { %v4321_v28 = vsel %vm204_vm1, %v4320_v58, %v4319_v47 }
 0x5af   : > { %5655 = vmatmul.mubr.msk.f32.vlgmr.msra.gmra.mrb[16].mxu1 %vm448_vm12, %v2785_v7  ;;  %v4355_v7 = vrot.slane %v7313_v52, 5 }
 0x5b0   : > { %5865 = vmatpush3.bf16.msk.msra.mxu1 %vm6426_vm15, %v6165_v62  ;;  %5661 = vmatprep.mubr.msk.f32.mxu1 %vm6163_vm7, %v6160_v3 }
 0x5b1   : > { %5866 = vmatprep.subr.bf16.mxu1 %v6164_v6 }
 0x5b3   : > { %5662 = vmatmul.mubr.msk.f32.vlgmr.msra.gmra.mrb[18].mxu1 %vm448_vm12, %v2965_v31  ;;  %v4322_v31 = vrot.slane %v7331_v16, 5 }
 0x5b4   : > { %5868 = vmatpush3.bf16.msk.msra.mxu1 %vm6438_vm11, %v6165_v62  ;;  %5668 = vmatprep.mubr.msk.f32.mxu1 %vm6163_vm7, %v6160_v3 }
 0x5b5   : > { %5671 = vmatprep.subr.bf16.mxu1 %v6160_v3 }
 0x5bb   : > { %5669 = vmatmul.mubr.msk.f32.vlgmr.msra.gmra.mrb[18].mxu1 %vm448_vm12, %v3038_v11  ;;  %v4479_v11 = vstv %s4478_s8 }
 0x5bc   : > { %5672 = vmatpush3.bf16.msra.mxu1 %v3208_v36  ;;  %5673 = vmatprep.mubr.msk.bf16.mxu1 %vm6163_vm7, %v6160_v3 }
 0x5bd   : > { %5677 = vmatprep.subr.bf16.mxu1 %v6160_v3 }
 0x5bf   : > { %5674 = vmatmul.mubr.msk.bf16.vlgmr.msra.gmra.mrb[20].mxu1 %vm7690_vm2, %v5213_v4  ;;  %vm7694_vm2 = vcmask 1043459  }
 0x5c0   : > { %5678 = vmatpush3.bf16.msra.mxu1 %v3254_v46  ;;  %5679 = vmatprep.mubr.msk.bf16.mxu1 %vm6163_vm7, %v6160_v3  ;;  %v4356_v39 = vsel %vm7694_vm2, %v4355_v7, %v4354_v17  ;;  %vm7695_vm13 = vmmov %vm7694_vm2  ;;  %v3787_v7 = vsel %vm230_vm10, %v3774_v41, %v7283_v26  ;;  %v3741_v17 = vsel %vm212_vm8, 0.0, %v3739_v1 }
 0x5c1   : > { %5683 = vmatprep.subr.bf16.mxu1 %v6160_v3  ;;  %4357 = vrot.lane.b32.xlu0 %v4356_v39, %s6161_s21  ;;  %v4323_v18 = vsel %vm7695_vm13, %v4322_v31, %v4321_v28  ;;  %v3789_v58 = vpack.c.bf16 %v3778_v49, %v3787_v7  ;;  %v3754_v26 = vsel %vm230_vm10, %v3741_v17, %v7295_v35  ;;  %v3745_v31 = vsel %vm217_vm9, %v3743_v10, 0.0 }
 0x5c2   : > { %4361 = vrot.lane.b32.xlu1 %v4356_v39, %s6162_s24  ;;  %v3756_v47 = vpack.c.bf16 %v3745_v31, %v3754_v26 }
 0x5c5   : > { %4324 = vrot.lane.b32.xlu0 %v4323_v18, %s6161_s21 }
 0x5c6   : > { %4328 = vrot.lane.b32.xlu1 %v4323_v18, %s6162_s24  ;;  %v5243_v18 = vld [vmem:[%s7635_s1 + $0x4] sm:$0xf] }
 0x5cb   : > { %5680 = vmatmul.mubr.msk.bf16.vlgmr.msra.gmra.mrb[20].mxu1 %vm7692_vm14, %v3169_v50  ;;  %vm4480_vm14 = vcmp.eq.s32.totalorder %v4479_v11, 1 }
 0x5cc   : > { %5684 = vmatpush3.bf16.msra.mxu1 %v3335_v33  ;;  %5685 = vmatprep.mubr.msk.bf16.mxu1 %vm6163_vm7, %v6160_v3  ;;  %v7348_v36 = vsel %vm4480_vm14, %v4472_v27, 0.0  ;;  %v7350_v4 = vsel %vm4480_vm14, %v4473_v8, 0.0  ;;  %v7352_v15 = vsel %vm4480_vm14, %v4474_v19, 0.0  ;;  %v7354_v46 = vsel %vm4480_vm14, %v4475_v2, 0.0  ;;  %v3899_v27 = vpop.permute.xlu0 %3898  ;;  %v3903_v19 = vpop.permute.xlu1 %3902 }
 0x5cd   : > { %5881 = vmatprep.subr.bf16.mxu1 %v6164_v6  ;;  %v4489_v43 = vrot.slane %v7350_v4, 7  ;;  %v4491_v25 = vrot.slane %v7352_v15, 6  ;;  %v4493_v12 = vrot.slane %v7354_v46, 5  ;;  %vm7701_vm14 = vcmask 1045504  }
 0x5ce   : > { %v3794_v28 = vsel %vm7701_vm14, %v3789_v58, 0  ;;  %v3901_v8 = vsel %vm212_vm8, 0.0, %v3899_v27  ;;  %v3905_v2 = vsel %vm217_vm9, %v3903_v19, 0.0 }
 0x5cf   : > { %v4490_v37 = vsel %vm201_vm0, %v4489_v43, %v7348_v36  ;;  %vm7697_vm0 = vcmask 253952   ;;  %v3914_v11 = vsel %vm230_vm10, %v3901_v8, %v7301_v53  ;;  %v5251_v53 = vld [vmem:[%s7635_s1 + $0x8] sm:$0xf] }
 0x5d0   : > { %v4492_v32 = vsel %vm204_vm1, %v4491_v25, %v4490_v37  ;;  %vm7698_vm1 = vmmov %vm7697_vm0  ;;  %v3916_v43 = vpack.c.bf16 %v3905_v2, %v3914_v11  ;;  %v3755_v25 = vld [vmem:[%s7635_s1] sm:$0xf]  ;;  %v4365_v37 = vrot.slane %v7304_v5, 4  ;;  %v4337_v5 = vrot.slane %v7331_v16, 1  ;;  %v5273_v2 = vld [vmem:[%s7635_s1 + $0x4] sm:$0xf] }
 0x5d1   : > { %vm7700_vm13 = vmmov %vm7697_vm0 }
 0x5d7   : > { %5686 = vmatmul.mubr.msk.bf16.vlgmr.msra.gmra.mrb[20].mxu1 %vm7693_vm6, %v5221_v55  ;;  %vm7696_vm6 = vmmov %vm7694_vm2 }
 0x5d8   : > { %5883 = vmatpush3.bf16.msk.msra.mxu1 %vm6426_vm15, %v6165_v62  ;;  %5739 = vmatprep.mubr.msk.f32.mxu1 %vm6163_vm7, %v6160_v3  ;;  %v4494_v50 = vsel %vm7696_vm6, %v4493_v12, %v4492_v32  ;;  %vm7699_vm2 = vmmov %vm7697_vm0  ;;  %v4366_v32 = vrot.slane %v7307_v48, 3 }
 0x5d9   : > { %5884 = vmatprep.subr.bf16.mxu1 %v6164_v6  ;;  %4495 = vrot.lane.b32.xlu0 %v4494_v50, %s6161_s21  ;;  %vm7702_vm6 = vmmov %vm7701_vm14  ;;  %vm7707_vm14 = vcmask 253952  }
 0x5da   : > { %4499 = vrot.lane.b32.xlu1 %v4494_v50, %s6162_s24  ;;  %v3840_v35 = vsel %vm7702_vm6, %v3756_v47, 0  ;;  %v4368_v50 = vrot.slane %v7310_v38, 2  ;;  %v4503_v38 = vrot.slane %v7348_v36, 4 }
 0x633   : > { %v4358_v49 = vpop.permute.xlu0 %4357 }
 0x634   : > { %v4360_v17 = vsel %vm212_vm8, 0.0, %v4358_v49  ;;  %v4362_v10 = vpop.permute.xlu1 %4361 }
 0x637   : > { %v4325_v58 = vpop.permute.xlu0 %4324 }
 0x638   : > { %v4327_v47 = vsel %vm212_vm8, 0.0, %v4325_v58 }
 0x682   : > { %v2934_v33 = vpop.f32.mrb[16].mxu1 }
 0x683   : > { %v2945_v55 = vrot.slane %v2934_v33, %v6688_v24  ;;  %v5656_v51 = vpop.f32.mrb[17].mxu1  ;;  %v4370_v33 = vrot.slane %v7313_v52, 1  ;;  %v4504_v52 = vrot.slane %v7350_v4, 3 }
 0x685   : > { %v2946_v42 = vcombine.high %v2945_v55, %v2945_v55  ;;  %v2953_v54 = vrot.slane %v2945_v55, %v6688_v24  ;;  %v4367_v55 = vsel %vm221_vm3, %v4366_v32, %v4365_v37 }
 0x686   : > { %v4369_v51 = vsel %vm224_vm4, %v4368_v50, %v4367_v55 }
 0x687   : > { %v2960_v13 = vrot.slane %v2946_v42, %v6688_v24  ;;  %2963 = vst.msk [vmem:[%s6695_s3 + $0x8] sm:$0x1] %vm7697_vm0, %v2953_v54  ;;  %vm7703_vm0 = vcmask 97280   ;;  %v4371_v42 = vsel %vm227_vm5, %v4370_v33, %v4369_v51  ;;  %v4332_v54 = vrot.slane %v7319_v9, 4  ;;  %v4341_v33 = vld [vmem:[%s7635_s1] sm:$0xf] }
 0x688   : > { %v4373_v31 = vsel %vm230_vm10, %v4360_v17, %v4371_v42  ;;  %v5276_v51 = vld [vmem:[%s7635_s1 + $0x8] sm:$0xf] }
 0x689   : > { %2964 = vst.msk [vmem:[%s6695_s3 + $0x18] sm:$0x1] %vm7698_vm1, %v2960_v13  ;;  %vm7704_vm1 = vmmov %vm7702_vm6  ;;  %v4333_v13 = vrot.slane %v7325_v21, 3  ;;  %v4508_v21 = vrot.slane %v7354_v46, 1 }
 0x68a   : > { %v3921_v12 = vsel %vm7704_vm1, %v3916_v43, 0  ;;  %vm7708_vm6 = vmmov %vm7707_vm14  ;;  %v4496_v43 = vpop.permute.xlu0 %4495 }
 0x68b   : > { %v4334_v48 = vsel %vm221_vm3, %v4333_v13, %v4332_v54 }
 0x68e   : > { %v3107_v22 = vpop.f32.mrb[18].mxu1 }
 0x68f   : > { %v3118_v23 = vrot.slane %v3107_v22, %v6688_v24  ;;  %v5670_v29 = vpop.f32.mrb[19].mxu1  ;;  %v4335_v22 = vrot.slane %v7328_v56, 2  ;;  %v4505_v56 = vsel %vm221_vm3, %v4504_v52, %v4503_v38  ;;  %vm7709_vm3 = vmmov %vm7708_vm6 }
 0x690   : > { %v4506_v29 = vrot.slane %v7352_v15, 2 }
 0x691   : > { %v3119_v34 = vcombine.high %v3118_v23, %v3118_v23  ;;  %v3126_v59 = vrot.slane %v3118_v23, %v6688_v24  ;;  %v4336_v23 = vsel %vm224_vm4, %v4335_v22, %v4334_v48 }
 0x692   : > { %v4338_v9 = vsel %vm227_vm5, %v4337_v5, %v4336_v23  ;;  %v4507_v16 = vsel %vm224_vm4, %v4506_v29, %v4505_v56  ;;  %vm7710_vm4 = vmmov %vm7709_vm3 }
 0x693   : > { %v3133_v14 = vrot.slane %v3119_v34, %v6688_v24  ;;  %3136 = vst.msk [vmem:[%s6695_s3 + $0x9] sm:$0x1] %vm7699_vm2, %v3126_v59  ;;  %vm7705_vm2 = vmmov %vm7703_vm0  ;;  %v7464_v34 = vsel %vm227_vm5, %v4508_v21, %v4507_v16  ;;  %v4340_v27 = vsel %vm230_vm10, %v4327_v47, %v4338_v9 }
 0x694   : > { %vm7711_vm5 = vmmov %vm7704_vm1 }
 0x695   : > { %3137 = vst.msk [vmem:[%s6695_s3 + $0x19] sm:$0x1] %vm7700_vm13, %v3133_v14  ;;  %vm7706_vm13 = vmmov %vm7703_vm0 }
 0x6aa   : > { %v3371_v60 = vpop.f32.mrb[20].mxu1 }
 0x6ab   : > { %v3379_v30 = vrot.slane %v3371_v60, 2  ;;  %v5687_v40 = vpop.f32.mrb[21].mxu1  ;;  %v3551_v20 = vrot.slane %v3371_v60, 6  ;;  %v3624_v39 = vrot.slane %v3371_v60, 4 }
 0x6ac   : > { %v3374_v45 = vpop.f32.mrb[22].mxu1 }
 0x6ad   : > { %v5688_v0 = vpop.f32.mrb[23].mxu1  ;;  %5694 = vmatmul.mubr.msk.f32.vlgmr.msra.gmra.mrb[20].mxu0 %vm448_vm12, %v3379_v30 }
 0x6ae   : > { %5874 = vmatpush3.bf16.msk.msra.mxu0 %vm6438_vm11, %v6165_v62  ;;  %5700 = vmatprep.mubr.msk.f32.mxu0 %vm6163_vm7, %v6160_v3 }
 0x6af   : > { %5875 = vmatprep.subr.bf16.mxu0 %v6164_v6 }
 0x6b5   : > { %5701 = vmatmul.mubr.msk.f32.vlgmr.msra.gmra.mrb[20].mxu0 %vm448_vm12, %v3371_v60 }
 0x6b6   : > { %5877 = vmatpush3.bf16.msk.msra.mxu0 %vm6426_vm15, %v6165_v62  ;;  %5707 = vmatprep.mubr.msk.f32.mxu0 %vm6163_vm7, %v6160_v3 }
 0x6b7   : > { %5878 = vmatprep.subr.bf16.mxu0 %v6164_v6 }
 0x6b9   : > { %5708 = vmatmul.mubr.msk.f32.vlgmr.msra.gmra.mrb[22].mxu0 %vm448_vm12, %v3551_v20 }
 0x6ba   : > { %5880 = vmatpush3.bf16.msk.msra.mxu0 %vm6438_vm11, %v6165_v62  ;;  %5714 = vmatprep.mubr.msk.f32.mxu0 %vm6163_vm7, %v6160_v3 }
 0x6bb   : > { %5717 = vmatprep.subr.bf16.mxu0 %v6160_v3 }
 0x6c1   : > { %5715 = vmatmul.mubr.msk.f32.vlgmr.msra.gmra.mrb[22].mxu0 %vm448_vm12, %v3624_v39  ;;  %v4364_v39 = vsel %vm217_vm9, %v4362_v10, 0.0 }
 0x6c2   : > { %5718 = vmatpush3.bf16.msra.mxu0 %v3794_v28  ;;  %5719 = vmatprep.mubr.msk.bf16.mxu0 %vm6163_vm7, %v6160_v3  ;;  %v4329_v28 = vpop.permute.xlu1 %4328 }
 0x6c3   : > { %5723 = vmatprep.subr.bf16.mxu0 %v6160_v3 }
 0x6c5   : > { %5720 = vmatmul.mubr.msk.bf16.vlgmr.msra.gmra.mrb[24].mxu0 %vm7703_vm0, %v5243_v18  ;;  %v4375_v18 = vpack.c.bf16 %v4364_v39, %v4373_v31  ;;  %vm7712_vm0 = vmmov %vm7704_vm1 }
 0x6c6   : > { %5724 = vmatpush3.bf16.msra.mxu0 %v3840_v35  ;;  %5725 = vmatprep.mubr.msk.bf16.mxu0 %vm6163_vm7, %v6160_v3  ;;  %v4331_v35 = vsel %vm217_vm9, %v4329_v28, 0.0  ;;  %vm7713_vm1 = vmmov %vm7705_vm2 }
 0x6c7   : > { %5729 = vmatprep.subr.bf16.mxu0 %v6160_v3  ;;  %v4342_v19 = vpack.c.bf16 %v4331_v35, %v4340_v27  ;;  %v4380_v11 = vsel %vm7711_vm5, %v4375_v18, 0 }
 0x6d1   : > { %5726 = vmatmul.mubr.msk.bf16.vlgmr.msra.gmra.mrb[24].mxu0 %vm7705_vm2, %v3755_v25  ;;  %v4426_v25 = vsel %vm7712_vm0, %v4342_v19, 0  ;;  %vm7715_vm2 = vmmov %vm7713_vm1 }
 0x6d2   : > { %5730 = vmatpush3.bf16.msra.mxu0 %v3921_v12  ;;  %5731 = vmatprep.mubr.msk.bf16.mxu0 %vm6163_vm7, %v6160_v3  ;;  %v4498_v12 = vsel %vm212_vm8, 0.0, %v4496_v43  ;;  %vm7714_vm8 = vmmov %vm7712_vm0 }
 0x6d3   : > { %5893 = vmatprep.subr.bf16.mxu0 %v6164_v6  ;;  %v4511_v37 = vsel %vm230_vm10, %v4498_v12, %v7464_v34  ;;  %vm7716_vm10 = vmmov %vm7713_vm1 }
 0x6dd   : > { %5732 = vmatmul.mubr.msk.bf16.vlgmr.msra.gmra.mrb[24].mxu0 %vm7706_vm13, %v5251_v53  ;;  %v4500_v53 = vpop.permute.xlu1 %4499  ;;  %vm7718_vm13 = vmmov %vm7709_vm3 }
 0x6de   : > { %5895 = vmatpush3.bf16.msk.msra.mxu0 %vm6426_vm15, %v6165_v62  ;;  %5785 = vmatprep.mubr.msk.f32.mxu0 %vm6163_vm7, %v6160_v3  ;;  %v4502_v32 = vsel %vm217_vm9, %v4500_v53, 0.0  ;;  %vm7717_vm9 = vmmov %vm7709_vm3 }
 0x6df   : > { %5896 = vmatprep.subr.bf16.mxu0 %v6164_v6  ;;  %v4513_v50 = vpack.c.bf16 %v4502_v32, %v4511_v37 }
 0x6e1   : > { %v4518_v55 = vsel %vm7714_vm8, %v4513_v50, 0 }
 0x788   : > { %v3520_v36 = vpop.f32.mrb[20].mxu0 }
 0x789   : > { %v3531_v4 = vrot.slane %v3520_v36, %v6688_v24  ;;  %v5702_v59 = vpop.f32.mrb[21].mxu0 }
 0x78b   : > { %v3532_v14 = vcombine.high %v3531_v4, %v3531_v4  ;;  %v3539_v15 = vrot.slane %v3531_v4, %v6688_v24 }
 0x78d   : > { %v3546_v60 = vrot.slane %v3532_v14, %v6688_v24  ;;  %3549 = vst.msk [vmem:[%s6695_s3 + $0xa] sm:$0x1] %vm7707_vm14, %v3539_v15  ;;  %vm7719_vm14 = vmmov %vm7709_vm3 }
 0x78f   : > { %3550 = vst.msk [vmem:[%s6695_s3 + $0x1a] sm:$0x1] %vm7708_vm6, %v3546_v60  ;;  %vm7720_vm6 = vmmov %vm7709_vm3 }
 0x794   : > { %v3693_v46 = vpop.f32.mrb[22].mxu0 }
 0x795   : > { %v3704_v30 = vrot.slane %v3693_v46, %v6688_v24  ;;  %v5716_v40 = vpop.f32.mrb[23].mxu0 }
 0x797   : > { %v3705_v45 = vcombine.high %v3704_v30, %v3704_v30  ;;  %v3712_v0 = vrot.slane %v3704_v30, %v6688_v24 }
 0x799   : > { %v3719_v57 = vrot.slane %v3705_v45, %v6688_v24  ;;  %3722 = vst.msk [vmem:[%s6695_s3 + $0xb] sm:$0x1] %vm7709_vm3, %v3712_v0 }
 0x79b   : > { %3723 = vst.msk [vmem:[%s6695_s3 + $0x1b] sm:$0x1] %vm7710_vm4, %v3719_v57 }
 0x7b0   : > { %v3957_v41 = vpop.f32.mrb[24].mxu0 }
 0x7b1   : > { %v3965_v44 = vrot.slane %v3957_v41, 2  ;;  %v5733_v1 = vpop.f32.mrb[25].mxu0  ;;  %v4137_v26 = vrot.slane %v3957_v41, 6  ;;  %v4210_v8 = vrot.slane %v3957_v41, 4 }
 0x7b2   : > { %v3960_v20 = vpop.f32.mrb[26].mxu0 }
 0x7b3   : > { %v5734_v7 = vpop.f32.mrb[27].mxu0  ;;  %5740 = vmatmul.mubr.msk.f32.vlgmr.msra.gmra.mrb[24].mxu1 %vm448_vm12, %v3965_v44 }
 0x7b4   : > { %5886 = vmatpush3.bf16.msk.msra.mxu1 %vm6438_vm11, %v6165_v62  ;;  %5746 = vmatprep.mubr.msk.f32.mxu1 %vm6163_vm7, %v6160_v3 }
 0x7b5   : > { %5887 = vmatprep.subr.bf16.mxu1 %v6164_v6 }
 0x7bb   : > { %5747 = vmatmul.mubr.msk.f32.vlgmr.msra.gmra.mrb[24].mxu1 %vm448_vm12, %v3957_v41 }
 0x7bc   : > { %5889 = vmatpush3.bf16.msk.msra.mxu1 %vm6426_vm15, %v6165_v62  ;;  %5753 = vmatprep.mubr.msk.f32.mxu1 %vm6163_vm7, %v6160_v3 }
 0x7bd   : > { %5890 = vmatprep.subr.bf16.mxu1 %v6164_v6 }
 0x7bf   : > { %5754 = vmatmul.mubr.msk.f32.vlgmr.msra.gmra.mrb[26].mxu1 %vm448_vm12, %v4137_v26 }
 0x7c0   : > { %5892 = vmatpush3.bf16.msk.msra.mxu1 %vm6438_vm11, %v6165_v62  ;;  %5760 = vmatprep.mubr.msk.f32.mxu1 %vm6163_vm7, %v6160_v3 }
 0x7c1   : > { %5763 = vmatprep.subr.bf16.mxu1 %v6160_v3 }
 0x7c7   : > { %5761 = vmatmul.mubr.msk.f32.vlgmr.msra.gmra.mrb[26].mxu1 %vm448_vm12, %v4210_v8 }
 0x7c8   : > { %5764 = vmatpush3.bf16.msra.mxu1 %v4380_v11  ;;  %5765 = vmatprep.mubr.msk.bf16.mxu1 %vm6163_vm7, %v6160_v3 }
 0x7c9   : > { %5769 = vmatprep.subr.bf16.mxu1 %v6160_v3 }
 0x7cb   : > { %5766 = vmatmul.mubr.msk.bf16.vlgmr.msra.gmra.mrb[28].mxu1 %vm7713_vm1, %v5273_v2 }
 0x7cc   : > { %5770 = vmatpush3.bf16.msra.mxu1 %v4426_v25  ;;  %5771 = vmatprep.mubr.msk.bf16.mxu1 %vm6163_vm7, %v6160_v3 }
 0x7cd   : > { %5775 = vmatprep.subr.bf16.mxu1 %v6160_v3 }
 0x7d7   : > { %5772 = vmatmul.mubr.msk.bf16.vlgmr.msra.gmra.mrb[28].mxu1 %vm7715_vm2, %v4341_v33 }
 0x7d8   : > { %5776 = vmatpush3.bf16.msra.mxu1 %v4518_v55  ;;  %5777 = vmatprep.mubr.msk.bf16.mxu1 %vm6163_vm7, %v6160_v3 }
 0x7e3   : > { %5778 = vmatmul.mubr.msk.bf16.vlgmr.msra.gmra.mrb[28].mxu1 %vm7716_vm10, %v5276_v51 }
 0x88e   : > { %v4106_v42 = vpop.f32.mrb[24].mxu1 }
 0x88f   : > { %v4117_v54 = vrot.slane %v4106_v42, %v6688_v24  ;;  %v5748_v13 = vpop.f32.mrb[25].mxu1 }
 0x891   : > { %v4118_v22 = vcombine.high %v4117_v54, %v4117_v54  ;;  %v4125_v5 = vrot.slane %v4117_v54, %v6688_v24 }
 0x893   : > { %v4132_v48 = vrot.slane %v4118_v22, %v6688_v24  ;;  %4135 = vst.msk [vmem:[%s6695_s3 + $0xc] sm:$0x1] %vm7717_vm9, %v4125_v5 }
 0x895   : > { %4136 = vst.msk [vmem:[%s6695_s3 + $0x1c] sm:$0x1] %vm7718_vm13, %v4132_v48 }
 0x89a   : > { %v4279_v38 = vpop.f32.mrb[26].mxu1 }
 0x89b   : > { %v4290_v52 = vrot.slane %v4279_v38, %v6688_v24  ;;  %v5762_v23 = vpop.f32.mrb[27].mxu1 }
 0x89d   : > { %v4291_v29 = vcombine.high %v4290_v52, %v4290_v52  ;;  %v4298_v9 = vrot.slane %v4290_v52, %v6688_v24 }
 0x89f   : > { %v4305_v21 = vrot.slane %v4291_v29, %v6688_v24  ;;  %4308 = vst.msk [vmem:[%s6695_s3 + $0xd] sm:$0x1] %vm7719_vm14, %v4298_v9 }
 0x8a1   : > { %4309 = vst.msk [vmem:[%s6695_s3 + $0x1d] sm:$0x1] %vm7720_vm6, %v4305_v21 }
 0x8b6   : > { %v4554_v56 = vpop.f32.mrb[28].mxu1 }
 0x8b7   : > { %v4562_v16 = vrot.slane %v4554_v56, 2  ;;  %v5779_v34 = vpop.f32.mrb[29].mxu1  ;;  %v4734_v59 = vrot.slane %v4554_v56, 6  ;;  %v4807_v14 = vrot.slane %v4554_v56, 4 }
 0x8b8   : > { %v4557_v36 = vpop.f32.mrb[30].mxu1 }
 0x8b9   : > { %v5780_v4 = vpop.f32.mrb[31].mxu1  ;;  %5786 = vmatmul.mubr.msk.f32.vlgmr.msra.gmra.mrb[28].mxu0 %vm448_vm12, %v4562_v16 }
 0x8ba   : > { %5898 = vmatpush3.bf16.msk.msra.mxu0 %vm6438_vm11, %v6165_v62  ;;  %5792 = vmatprep.mubr.msk.f32.mxu0 %vm6163_vm7, %v6160_v3 }
 0x8bb   : > { %5899 = vmatprep.subr.bf16.mxu0 %v6164_v6 }
 0x8c1   : > { %5793 = vmatmul.mubr.msk.f32.vlgmr.msra.gmra.mrb[28].mxu0 %vm448_vm12, %v4554_v56 }
 0x8c2   : > { %5901 = vmatpush3.bf16.msk.msra.mxu0 %vm6426_vm15, %v6165_v62  ;;  %5799 = vmatprep.mubr.msk.f32.mxu0 %vm6163_vm7, %v6160_v3  ;;  %vm7721_vm15 = vmmov %vm7709_vm3 }
 0x8c3   : > { %5902 = vmatprep.subr.bf16.mxu0 %v6164_v6 }
 0x8c5   : > { %5800 = vmatmul.mubr.msk.f32.vlgmr.msra.gmra.mrb[30].mxu0 %vm448_vm12, %v4734_v59 }
 0x8c6   : > { %5904 = vmatpush3.bf16.msk.msra.mxu0 %vm6438_vm11, %v6165_v62  ;;  %5806 = vmatprep.mubr.msk.f32.mxu0 %vm6163_vm7, %v6160_v3  ;;  %vm7722_vm11 = vmmov %vm7709_vm3 }
 0x8c7   : > { %vm7723_vm7 = vmmov %vm7709_vm3 }
 0x8cd   : > { %5807 = vmatmul.mubr.msk.f32.vlgmr.msra.gmra.mrb[30].mxu0 %vm448_vm12, %v4807_v14  ;;  %vm7724_vm12 = vmmov %vm7709_vm3 }
 0x994   : > { %v4703_v61 = vpop.f32.mrb[28].mxu0 }
 0x995   : > { %v4714_v15 = vrot.slane %v4703_v61, %v6688_v24  ;;  %v5794_v60 = vpop.f32.mrb[29].mxu0 }
 0x997   : > { %v4715_v6 = vcombine.high %v4714_v15, %v4714_v15  ;;  %v4722_v46 = vrot.slane %v4714_v15, %v6688_v24 }
 0x999   : > { %v4729_v30 = vrot.slane %v4715_v6, %v6688_v24  ;;  %4732 = vst.msk [vmem:[%s6695_s3 + $0xe] sm:$0x1] %vm7721_vm15, %v4722_v46 }
 0x99b   : > { %4733 = vst.msk [vmem:[%s6695_s3 + $0x1e] sm:$0x1] %vm7722_vm11, %v4729_v30 }
 0x9a0   : > { %v4876_v3 = vpop.f32.mrb[30].mxu0 }
 0x9a1   : > { %v4887_v62 = vrot.slane %v4876_v3, %v6688_v24  ;;  %v5808_v63 = vpop.f32.mrb[31].mxu0 }
 0x9a3   : > { %v4888_v40 = vcombine.high %v4887_v62, %v4887_v62  ;;  %v4895_v45 = vrot.slane %v4887_v62, %v6688_v24 }
 0x9a5   : > { %v4902_v0 = vrot.slane %v4888_v40, %v6688_v24  ;;  %4905 = vst.msk [vmem:[%s6695_s3 + $0xf] sm:$0x1] %vm7723_vm7, %v4895_v45 }
 0x9a7   : > { %4906 = vst.msk [vmem:[%s6695_s3 + $0x1f] sm:$0x1] %vm7724_vm12, %v4902_v0 }
 0x9a8   : > { %s5291_s6 = sshll.u32 %s6142_s12, 1  ;;  %s5292_s21 = sshll.u32 %s6146_s13, 3 }
 0x9a9   : > { %s4920_s24 = sadd.s32 %s5292_s21, %s5291_s6  ;;  %s4939_s7 = sshll.u32 %s6695_s3, 4  ;;  %s4940_s7 = int_to_ptr.vmem [resolvable:$true] %s4939_s7 }
 0x9aa   : > { %s5293_s17 = sshll.u32 %s4920_s24, 7  ;;  %s6167_s26 = smov 256  }
 0x9ab   : > { %s4922_s29 = scalar_lea.hbm %s7636_s2, %s5293_s17  ;;  %6001 = sst [smem:[#allocation5]] (%p6240_p3), %s6167_s26 }
 0x9ac   : > { %s6168_s30 = smov 512   ;;  %s6169_s4 = smov 2  }
 0x9ad   : > { %6002 = sst [smem:[#allocation5 + $0x1]] (%p6240_p3), %s6168_s30  ;;  %s6170_s12 = smov 128  }
 0x9ae   : > { %6003 = sst [smem:[#allocation5 + $0x2]] (%p6240_p3), %s6169_s4  ;;  %s6171_s13 = smov 8  }
 0x9af   : > { %6004 = sst [smem:[#allocation5 + $0x3]] (%p6240_p3), %s6170_s12  ;;  %s6172_s3 = smov [#allocation4]  }
 0x9b0   : > { %6005 = sst [smem:[#allocation5 + $0x4]] (%p6240_p3), %s6170_s12  ;;  %s6173_s28 = smov 0  }
 0x9b1   : > { %6006 = sst [smem:[#allocation5 + $0x5]] (%p6240_p3), %s6171_s13 }
 0x9b2   : > { %6007 = dma.general (%p6240_p3), %s4940_s7, 512, %s4922_s29, %s4908_s5, %s6172_s3, [#allocation5], %s6173_s28, 0  }
 0x9b3 PF: > { %p6013_p4 = scmp.ge.s32.totalorder %s6158_s16, 2  ;;  %s4967_s8 = sand.u32 1, %s6130_s9  }
 0x9b4   : > { %s4968_s6 = scalar_lea.sflag [#allocation3], %s4967_s8 }
 0x9b5   : > { %p6010_p5 = pnand %p6013_p4, %p6249_p8 }
 0x9b7   : > { %6125 = dma.done.wait (!%p6010_p5), %s4968_s6, 512  }
 0x9b8   : > { %6127 = vsyncadd (!%p6010_p5), %s4968_s6, 4294966784  ;;  %s15_s16 = sadd.s32 1, %s6158_s16   ;;  %s7725_s9 = smov %s6134_s10 }
 0x9b9   : > { %p12_p6 = scmp.ge.s32.totalorder %s15_s16, 6   ;;  %s7726_s10 = smov %s6138_s11 }
 0x9ba   : > { %s7727_s11 = smov %s6258_s27  ;;  %s7728_s12 = smov %s6150_s14 }
 0x9bb   : > { %s7729_s13 = smov %s6154_s15  ;;  %s7730_s14 = smov %s7733_s19 }
 0x9bc   : > { %s7731_s15 = smov %s7737_s20  ;;  %14 = sbr.rel (!%p12_p6) target bundleno = 5 (0x5), region = 80 }
 0x9c3   :  { %4973 = vsyncpa [#allocation3], 1 }
 0x9c4   :  { %4975 = vsyncpa [#allocation3 + $0x1], 1 }

</bundles_post_ra>
